<compile_context>
chip_gen: v7x
topology: tpu7x:2x2x1
jax: 0.10.0
libtpu: 0.0.40
codegen_flags: <defaults>
</compile_context>

<pallas_src>
import functools
import math

import jax
import jax.numpy as jnp
from jax import lax
from jax.experimental import pallas as pl
from jax.experimental.pallas import tpu as pltpu

_VMEM_LIMIT = 48 * 1024 * 1024   # fits v7x's 64 MiB physical VMEM with headroom


# --------------------------- fused linear kernel ---------------------------

def _fused_linear_kernel(*refs, n_parts, ln, act, has_res, out_splits, eps):
    idx = 0
    x_refs = refs[idx:idx + n_parts]
    idx += n_parts
    if ln:
        g_ref, bln_ref = refs[idx], refs[idx + 1]
        idx += 2
    w_refs = refs[idx:idx + n_parts]
    idx += n_parts
    b_ref = refs[idx]
    idx += 1
    if has_res:
        r_ref = refs[idx]
        idx += 1
    out_refs = refs[idx:]

    x0 = x_refs[0][...].astype(jnp.float32)
    if ln:
        mu = jnp.mean(x0, axis=-1, keepdims=True)
        var = jnp.mean(jnp.square(x0 - mu), axis=-1, keepdims=True)
        x0 = (x0 - mu) * lax.rsqrt(var + eps)
        x0 = x0 * g_ref[...] + bln_ref[...]
    # bf16 operands on the MXU, f32 accumulation.
    y = jnp.dot(x0.astype(jnp.bfloat16), w_refs[0][...],
                preferred_element_type=jnp.float32)
    for p in range(1, n_parts):
        y = y + jnp.dot(x_refs[p][...].astype(jnp.bfloat16), w_refs[p][...],
                        preferred_element_type=jnp.float32)
    y = y + b_ref[...].astype(jnp.float32)
    if act == "gelu":
        # exact (erf-based) GELU, matching torch.nn.GELU default
        y = 0.5 * y * (1.0 + lax.erf(y * (1.0 / math.sqrt(2.0))))
    if has_res:
        y = y + r_ref[...].astype(jnp.float32)
    for o_ref, (st, sz) in zip(out_refs, out_splits):
        o_ref[...] = y[:, st:st + sz].astype(o_ref.dtype)


def fused_linear(x_parts, w_parts, bias, *, ln=None, act=None, residual=None,
                 out_splits=None, out_dtype=None, block_rows=256):
    """y = act(LN(x) @ W + b) [+ residual], with optional column-split outputs.

    x_parts / w_parts: list of (M, K_p) / (K_p, N) pieces that are summed
    (i.e. a concatenation along K without materializing the concat in HBM).
    Row-tiled grid -> pipelined, fits VMEM at real CSWin sizes.
    """
    M = x_parts[0].shape[0]
    N = w_parts[0].shape[1]
    if out_splits is None:
        out_splits = ((0, N),)
    out_splits = tuple(out_splits)
    tm = M if M <= block_rows else (block_rows // 8) * 8
    grid = (pl.cdiv(M, tm),)

    inputs, in_specs = [], []
    for xp in x_parts:
        inputs.append(xp)
        in_specs.append(pl.BlockSpec((tm, xp.shape[1]), lambda i: (i, 0)))
    if ln is not None:
        g, bln = ln
        c = g.shape[0]
        inputs += [g.reshape(1, c), bln.reshape(1, c)]
        in_specs += [pl.BlockSpec((1, c), lambda i: (0, 0)),
                     pl.BlockSpec((1, c), lambda i: (0, 0))]
    for wp in w_parts:
        inputs.append(wp.astype(jnp.bfloat16))          # feed the MXU bf16
        in_specs.append(pl.BlockSpec(wp.shape, lambda i: (0, 0)))
    inputs.append(bias.reshape(1, N).astype(jnp.float32))
    in_specs.append(pl.BlockSpec((1, N), lambda i: (0, 0)))
    if residual is not None:
        inputs.append(residual)
        in_specs.append(pl.BlockSpec((tm, residual.shape[1]), lambda i: (i, 0)))

    out_dtype = out_dtype or x_parts[0].dtype
    out_specs = tuple(pl.BlockSpec((tm, sz), lambda i: (i, 0))
                      for _, sz in out_splits)
    out_shape = tuple(jax.ShapeDtypeStruct((M, sz), out_dtype)
                      for _, sz in out_splits)

    kernel = functools.partial(
        _fused_linear_kernel, n_parts=len(x_parts), ln=ln is not None, act=act,
        has_res=residual is not None, out_splits=out_splits, eps=1e-5)
    outs = pl.pallas_call(
        kernel, grid=grid, in_specs=in_specs, out_specs=out_specs,
        out_shape=out_shape,
        compiler_params=pltpu.CompilerParams(
            dimension_semantics=("parallel",),
            vmem_limit_bytes=_VMEM_LIMIT),
    )(*inputs)
    if not isinstance(outs, (list, tuple)):
        outs = (outs,)
    return list(outs)


# ------------------- fused window attention + LePE kernel -------------------

def _attn_lepe_kernel(q_ref, k_ref, v_ref, w9_ref, cb_ref, *rest,
                      W_sp, heads, scale, return_attn):
    if return_attn:
        x_ref, a_ref, lepe_ref = rest
    else:
        x_ref, lepe_ref = rest
        a_ref = None
    NB, S, Ch = q_ref.shape
    d = Ch // heads

    # ---- LePE: depthwise 3x3 conv (zero-padded per window) done directly on
    #      the flattened window-token axis with static shifted slices and a
    #      column-boundary mask, accumulated into a VMEM scratch ref.
    v_f = v_ref[...].astype(jnp.float32)
    w9 = w9_ref[...]
    lepe_ref[...] = jnp.zeros_like(lepe_ref)
    for kh in range(3):
        dh = kh - 1
        for kw in range(3):
            dw = kw - 1
            if W_sp == 1 and dw != 0:
                continue
            s_off = dh * W_sp + dw
            o0 = max(0, -s_off)
            o1 = S - max(0, s_off)
            if o1 <= o0:
                continue
            tap = w9[kh * 3 + kw]                                 # (Ch,)
            contrib = v_f[:, o0 + s_off:o1 + s_off, :] * tap      # (NB,n,Ch)
            if dw != 0:
                tok = o0 + lax.broadcasted_iota(jnp.int32, (1, o1 - o0, 1), 1)
                w_pos = tok % W_sp
                valid = jnp.logical_and(w_pos + dw >= 0, w_pos + dw < W_sp)
                contrib = jnp.where(valid, contrib, 0.0)
            lepe_ref[:, o0:o1, :] += contrib
    lepe = lepe_ref[...] + cb_ref[...]                            # (NB, S, Ch)

    # ---- multi-head attention; one static channel slice per head.
    q = q_ref[...]
    k = k_ref[...]
    for h in range(heads):
        sl = slice(h * d, (h + 1) * d)
        qh = q[:, :, sl].astype(jnp.bfloat16)
        kh2 = k[:, :, sl].astype(jnp.bfloat16)
        vh = v_f[:, :, sl].astype(jnp.bfloat16)
        s = jnp.einsum("bqd,bkd->bqk", qh, kh2,
                       preferred_element_type=jnp.float32) * scale
        m = jnp.max(s, axis=-1, keepdims=True)
        e = jnp.exp(s - m)
        p = e * pl.reciprocal(jnp.sum(e, axis=-1, keepdims=True), approx=True)
        if return_attn:
            a_ref[:, h:h + 1, :, :] = p[:, None, :, :].astype(a_ref.dtype)
        o = jnp.einsum("bqk,bkd->bqd", p.astype(jnp.bfloat16), vh,
                       preferred_element_type=jnp.float32) + lepe[:, :, sl]
        x_ref[:, :, sl] = o.astype(x_ref.dtype)


def _pick_nb(nw, s, ch, heads, budget=6 * 1024 * 1024, max_nb=8):
    """Largest divisor of nw (<= max_nb) whose per-step working set fits."""
    best = 1
    for nb in range(1, min(max_nb, nw) + 1):
        if nw % nb:
            continue
        approx_bytes = 4 * nb * (10 * s * ch + (2 * heads + 3) * s * s)
        if nb > 1 and approx_bytes > budget:
            continue
        best = nb
    return best


def lepe_window_attention(qw, kw, vw, w9, cb, heads, W_sp, *, return_attn=True):
    """qw/kw/vw: (Nw, S, Ch) windows. Returns ((Nw, S, Ch), (Nw, heads, S, S))."""
    Nw, S, Ch = qw.shape
    d = Ch // heads
    scale = d ** (-0.5)
    NB = _pick_nb(Nw, S, Ch, heads)
    grid = (Nw // NB,)

    def tok_spec():
        return pl.BlockSpec((NB, S, Ch), lambda g: (g, 0, 0))

    in_specs = [tok_spec(), tok_spec(), tok_spec(),
                pl.BlockSpec((9, Ch), lambda g: (0, 0)),
                pl.BlockSpec((1, Ch), lambda g: (0, 0))]
    out_specs = [tok_spec()]
    out_shape = [jax.ShapeDtypeStruct((Nw, S, Ch), qw.dtype)]
    if return_attn:
        out_specs.append(pl.BlockSpec((NB, heads, S, S),
                                      lambda g: (g, 0, 0, 0)))
        out_shape.append(jax.ShapeDtypeStruct((Nw, heads, S, S), qw.dtype))

    kernel = functools.partial(_attn_lepe_kernel, W_sp=W_sp, heads=heads,
                               scale=scale, return_attn=return_attn)
    outs = pl.pallas_call(
        kernel, grid=grid, in_specs=in_specs,
        out_specs=tuple(out_specs), out_shape=tuple(out_shape),
        scratch_shapes=[pltpu.VMEM((NB, S, Ch), jnp.float32)],
        compiler_params=pltpu.CompilerParams(
            dimension_semantics=("parallel",),
            vmem_limit_bytes=_VMEM_LIMIT),
    )(qw, kw, vw, w9, cb.reshape(1, Ch))
    if not isinstance(outs, (list, tuple)):
        outs = (outs,)
    x_out = outs[0]
    attn = outs[1] if return_attn else None
    return x_out, attn


# ------------------------------- window glue -------------------------------

def _to_windows(t2d, B, H, W, H_sp, W_sp):
    Ch = t2d.shape[-1]
    t = t2d.reshape(B, H // H_sp, H_sp, W // W_sp, W_sp, Ch)
    t = t.transpose(0, 1, 3, 2, 4, 5)
    return t.reshape(B * (H // H_sp) * (W // W_sp), H_sp * W_sp, Ch)


def _from_windows(tw, B, H, W, H_sp, W_sp):
    Ch = tw.shape[-1]
    t = tw.reshape(B, H // H_sp, W // W_sp, H_sp, W_sp, Ch)
    t = t.transpose(0, 1, 3, 2, 4, 5)
    return t.reshape(B * H * W, Ch)


def _lepe_branch(q2d, k2d, v2d, B, H, W, H_sp, W_sp, heads, w9, cb,
                 return_attn):
    # TODO(synk): windows of the vertical-strip / last-stage branch are
    # contiguous rows of (B, L, C) and could be gathered via the kernel's
    # index_map to skip this glue transpose entirely.
    qw = _to_windows(q2d, B, H, W, H_sp, W_sp)
    kw = _to_windows(k2d, B, H, W, H_sp, W_sp)
    vw = _to_windows(v2d, B, H, W, H_sp, W_sp)
    xw, attn = lepe_window_attention(qw, kw, vw, w9, cb, heads, W_sp,
                                     return_attn=return_attn)
    return _from_windows(xw, B, H, W, H_sp, W_sp), attn


# --------------------------- CSWin block forward ---------------------------

def cswin_block_forward(x, params, *, res, split_size, num_heads,
                        return_attn=True):
    """x: (B, L=res*res, C).  Returns (x_out, attn) like the PyTorch module."""
    B, L, C = x.shape
    H = W = res
    M = B * L
    x2d = x.reshape(M, C)

    last_stage = (res == split_size)
    if last_stage:
        splits = ((0, C), (C, C), (2 * C, C))
    else:
        Ch = C // 2
        splits = ((0, Ch), (Ch, Ch),
                  (C, Ch), (C + Ch, Ch),
                  (2 * C, Ch), (2 * C + Ch, Ch))

    # norm1 + qkv, emitted pre-split per branch (no (2,0,1,3) permute / slice
    # passes over the (B, L, 3C) activation).
    qkv_parts = fused_linear([x2d], [params["qkv_w"]], params["qkv_b"],
                             ln=(params["norm1_g"], params["norm1_b"]),
                             out_splits=splits)

    if last_stage:
        q, k, v = qkv_parts
        att2d, attn = _lepe_branch(q, k, v, B, H, W, H, W, num_heads,
                                   params["getv_w0"], params["getv_b0"],
                                   return_attn)
        att_parts = [att2d]
        w_parts = [params["proj_w"]]
    else:
        Ch = C // 2
        hb = num_heads // 2
        q0, q1, k0, k1, v0, v1 = qkv_parts
        # branch 0 (idx=0): horizontal strips H_sp=res, W_sp=split_size
        x1, attn1 = _lepe_branch(q0, k0, v0, B, H, W, H, split_size, hb,
                                 params["getv_w0"], params["getv_b0"],
                                 return_attn)
        # branch 1 (idx=1): vertical strips H_sp=split_size, W_sp=res
        x2, attn2 = _lepe_branch(q1, k1, v1, B, H, W, split_size, W, hb,
                                 params["getv_w1"], params["getv_b1"],
                                 return_attn)
        att_parts = [x1, x2]
        w_parts = [params["proj_w"][:Ch], params["proj_w"][Ch:]]
        attn = (jnp.concatenate([attn1, attn2], axis=1)
                if return_attn else None)

    # proj + residual (drop_path / dropouts are 0.0 -> identity)
    (x_attn,) = fused_linear(att_parts, w_parts, params["proj_b"],
                             residual=x2d)
    # norm2 + fc1 + GELU
    (h,) = fused_linear([x_attn], [params["fc1_w"]], params["fc1_b"],
                        ln=(params["norm2_g"], params["norm2_b"]), act="gelu")
    # fc2 + residual
    (out2d,) = fused_linear([h], [params["fc2_w"]], params["fc2_b"],
                            residual=x_attn)
    return out2d.reshape(B, L, C), attn


# --------------------------------- main ---------------------------------

if __name__ == "__main__":
    # small config consistent with the module: res != split_size -> 2 branches
    B, res, split_size, C, num_heads = 2, 4, 2, 8, 2
    mlp_ratio = 4.0
    L = res * res
    hidden = round(C * mlp_ratio)
    Ch = C // 2

    key = jax.random.PRNGKey(0)
    keys = jax.random.split(key, 16)
    init = lambda k, shape, s=0.02: jax.random.normal(k, shape, jnp.float32) * s

    params = {
        "norm1_g": jnp.ones((C,), jnp.float32),
        "norm1_b": jnp.zeros((C,), jnp.float32),
        "norm2_g": jnp.ones((C,), jnp.float32),
        "norm2_b": jnp.zeros((C,), jnp.float32),
        # Linear weights stored pre-transposed as (in, out)
        "qkv_w": init(keys[0], (C, 3 * C)),
        "qkv_b": jnp.zeros((3 * C,), jnp.float32),      # qkv_bias=False
        "proj_w": init(keys[1], (C, C)),
        "proj_b": init(keys[2], (C,)),
        # get_v depthwise 3x3 taps stored as (9, Ch): tap[kh*3+kw, c]
        "getv_w0": init(keys[3], (9, Ch)),
        "getv_b0": init(keys[4], (Ch,)),
        "getv_w1": init(keys[5], (9, Ch)),
        "getv_b1": init(keys[6], (Ch,)),
        "fc1_w": init(keys[7], (C, hidden)),
        "fc1_b": init(keys[8], (hidden,)),
        "fc2_w": init(keys[9], (hidden, C)),
        "fc2_b": init(keys[10], (C,)),
    }

    x = jax.random.normal(keys[11], (B, L, C), jnp.float32)

    fwd = jax.jit(functools.partial(cswin_block_forward, res=res,
                                    split_size=split_size,
                                    num_heads=num_heads))
    out, attn = fwd(x, params)
    jax.block_until_ready(out)
    jax.block_until_ready(attn)

    assert out.shape == (B, L, C)
    assert attn.shape == (B * (res // split_size), num_heads,
                          res * split_size, res * split_size)
    print("KERNEL_OK")
</pallas_src>

<mosaic_0001>
module attributes {stable_mosaic.version = 11 : i64} {
  func.func @_fused_linear_kernel(%arg0: i32, %arg1: memref<32x8xf32, #tpu.memory_space<vmem>>, %arg2: memref<1x8xf32, #tpu.memory_space<vmem>>, %arg3: memref<1x8xf32, #tpu.memory_space<vmem>>, %arg4: memref<8x24xbf16, #tpu.memory_space<vmem>>, %arg5: memref<1x24xf32, #tpu.memory_space<vmem>>, %arg6: memref<32x4xf32, #tpu.memory_space<vmem>>, %arg7: memref<32x4xf32, #tpu.memory_space<vmem>>, %arg8: memref<32x4xf32, #tpu.memory_space<vmem>>, %arg9: memref<32x4xf32, #tpu.memory_space<vmem>>, %arg10: memref<32x4xf32, #tpu.memory_space<vmem>>, %arg11: memref<32x4xf32, #tpu.memory_space<vmem>>) attributes {dimension_semantics = [#tpu.dimension_semantics<parallel>], iteration_bounds = array<i64: 1>, scalar_prefetch = 0 : i64, scratch_operands = 0 : i64, tpu.core_type = #tpu.core_type<tc>, window_params = [{transform_indices = @transform_0, window_bounds = array<i64: 32, 8>}, {pipeline_mode = #tpu.pipeline_mode<synchronous>, transform_indices = @transform_1, window_bounds = array<i64: 1, 8>}, {pipeline_mode = #tpu.pipeline_mode<synchronous>, transform_indices = @transform_2, window_bounds = array<i64: 1, 8>}, {pipeline_mode = #tpu.pipeline_mode<synchronous>, transform_indices = @transform_3, window_bounds = array<i64: 8, 24>}, {pipeline_mode = #tpu.pipeline_mode<synchronous>, transform_indices = @transform_4, window_bounds = array<i64: 1, 24>}, {transform_indices = @transform_5, window_bounds = array<i64: 32, 4>}, {transform_indices = @transform_6, window_bounds = array<i64: 32, 4>}, {transform_indices = @transform_7, window_bounds = array<i64: 32, 4>}, {transform_indices = @transform_8, window_bounds = array<i64: 32, 4>}, {transform_indices = @transform_9, window_bounds = array<i64: 32, 4>}, {transform_indices = @transform_10, window_bounds = array<i64: 32, 4>}]} {
    %c0 = arith.constant 0 : index
    %c0_0 = arith.constant 0 : index
    %0 = vector.load %arg1[%c0, %c0_0] : memref<32x8xf32, #tpu.memory_space<vmem>>, vector<32x8xf32>
    %cst = arith.constant dense<0.000000e+00> : vector<32xf32>
    %1 = vector.multi_reduction <add>, %0, %cst [1] : vector<32x8xf32> to vector<32xf32>
    %2 = vector.shape_cast %1 : vector<32xf32> to vector<32x1xf32>
    %cst_1 = arith.constant 8.000000e+00 : f32
    %3 = vector.broadcast %cst_1 : f32 to vector<32x1xf32>
    %4 = arith.divf %2, %3 : vector<32x1xf32>
    %5 = vector.broadcast %4 : vector<32x1xf32> to vector<32x8xf32>
    %6 = arith.subf %0, %5 : vector<32x8xf32>
    %7 = arith.mulf %6, %6 : vector<32x8xf32>
    %cst_2 = arith.constant dense<0.000000e+00> : vector<32xf32>
    %8 = vector.multi_reduction <add>, %7, %cst_2 [1] : vector<32x8xf32> to vector<32xf32>
    %9 = vector.shape_cast %8 : vector<32xf32> to vector<32x1xf32>
    %cst_3 = arith.constant 8.000000e+00 : f32
    %10 = vector.broadcast %cst_3 : f32 to vector<32x1xf32>
    %11 = arith.divf %9, %10 : vector<32x1xf32>
    %12 = vector.broadcast %4 : vector<32x1xf32> to vector<32x8xf32>
    %13 = arith.subf %0, %12 : vector<32x8xf32>
    %cst_4 = arith.constant 9.99999974E-6 : f32
    %14 = vector.broadcast %cst_4 : f32 to vector<32x1xf32>
    %15 = arith.addf %11, %14 : vector<32x1xf32>
    %16 = math.rsqrt %15 : vector<32x1xf32>
    %17 = vector.broadcast %16 : vector<32x1xf32> to vector<32x8xf32>
    %18 = arith.mulf %13, %17 : vector<32x8xf32>
    %c0_5 = arith.constant 0 : index
    %c0_6 = arith.constant 0 : index
    %19 = vector.load %arg2[%c0_5, %c0_6] : memref<1x8xf32, #tpu.memory_space<vmem>>, vector<1x8xf32>
    %20 = vector.broadcast %19 : vector<1x8xf32> to vector<32x8xf32>
    %21 = arith.mulf %18, %20 : vector<32x8xf32>
    %c0_7 = arith.constant 0 : index
    %c0_8 = arith.constant 0 : index
    %22 = vector.load %arg3[%c0_7, %c0_8] : memref<1x8xf32, #tpu.memory_space<vmem>>, vector<1x8xf32>
    %23 = vector.broadcast %22 : vector<1x8xf32> to vector<32x8xf32>
    %24 = arith.addf %21, %23 : vector<32x8xf32>
    %25 = arith.truncf %24 : vector<32x8xf32> to vector<32x8xbf16>
    %c0_9 = arith.constant 0 : index
    %c0_10 = arith.constant 0 : index
    %26 = vector.load %arg4[%c0_9, %c0_10] : memref<8x24xbf16, #tpu.memory_space<vmem>>, vector<8x24xbf16>
    %cst_11 = arith.constant dense<0.000000e+00> : vector<32x24xf32>
    %27 = tpu.matmul %25, %26, %cst_11 {dimension_numbers = #tpu.dot_dimension_numbers<[1], [0], [0], [1], [0, 0, 1, 1], [], []>} : vector<32x8xbf16>, vector<8x24xbf16>, vector<32x24xf32> -> vector<32x24xf32>
    %c0_12 = arith.constant 0 : index
    %c0_13 = arith.constant 0 : index
    %28 = vector.load %arg5[%c0_12, %c0_13] : memref<1x24xf32, #tpu.memory_space<vmem>>, vector<1x24xf32>
    %29 = vector.broadcast %28 : vector<1x24xf32> to vector<32x24xf32>
    %30 = arith.addf %27, %29 : vector<32x24xf32>
    %31 = vector.extract_strided_slice %30 {offsets = [0, 0], sizes = [32, 4], strides = [1, 1]} : vector<32x24xf32> to vector<32x4xf32>
    %c0_14 = arith.constant 0 : index
    %c0_15 = arith.constant 0 : index
    %32 = vector.load %arg6[%c0_14, %c0_15] : memref<32x4xf32, #tpu.memory_space<vmem>>, vector<32x4xf32>
    tpu.vector_store %arg6[%c0_14, %c0_15], %31 {strides = array<i32>} : memref<32x4xf32, #tpu.memory_space<vmem>>, vector<32x4xf32>,
    %33 = vector.extract_strided_slice %30 {offsets = [0, 4], sizes = [32, 4], strides = [1, 1]} : vector<32x24xf32> to vector<32x4xf32>
    %c0_16 = arith.constant 0 : index
    %c0_17 = arith.constant 0 : index
    %34 = vector.load %arg7[%c0_16, %c0_17] : memref<32x4xf32, #tpu.memory_space<vmem>>, vector<32x4xf32>
    tpu.vector_store %arg7[%c0_16, %c0_17], %33 {strides = array<i32>} : memref<32x4xf32, #tpu.memory_space<vmem>>, vector<32x4xf32>,
    %35 = vector.extract_strided_slice %30 {offsets = [0, 8], sizes = [32, 4], strides = [1, 1]} : vector<32x24xf32> to vector<32x4xf32>
    %c0_18 = arith.constant 0 : index
    %c0_19 = arith.constant 0 : index
    %36 = vector.load %arg8[%c0_18, %c0_19] : memref<32x4xf32, #tpu.memory_space<vmem>>, vector<32x4xf32>
    tpu.vector_store %arg8[%c0_18, %c0_19], %35 {strides = array<i32>} : memref<32x4xf32, #tpu.memory_space<vmem>>, vector<32x4xf32>,
    %37 = vector.extract_strided_slice %30 {offsets = [0, 12], sizes = [32, 4], strides = [1, 1]} : vector<32x24xf32> to vector<32x4xf32>
    %c0_20 = arith.constant 0 : index
    %c0_21 = arith.constant 0 : index
    %38 = vector.load %arg9[%c0_20, %c0_21] : memref<32x4xf32, #tpu.memory_space<vmem>>, vector<32x4xf32>
    tpu.vector_store %arg9[%c0_20, %c0_21], %37 {strides = array<i32>} : memref<32x4xf32, #tpu.memory_space<vmem>>, vector<32x4xf32>,
    %39 = vector.extract_strided_slice %30 {offsets = [0, 16], sizes = [32, 4], strides = [1, 1]} : vector<32x24xf32> to vector<32x4xf32>
    %c0_22 = arith.constant 0 : index
    %c0_23 = arith.constant 0 : index
    %40 = vector.load %arg10[%c0_22, %c0_23] : memref<32x4xf32, #tpu.memory_space<vmem>>, vector<32x4xf32>
    tpu.vector_store %arg10[%c0_22, %c0_23], %39 {strides = array<i32>} : memref<32x4xf32, #tpu.memory_space<vmem>>, vector<32x4xf32>,
    %41 = vector.extract_strided_slice %30 {offsets = [0, 20], sizes = [32, 4], strides = [1, 1]} : vector<32x24xf32> to vector<32x4xf32>
    %c0_24 = arith.constant 0 : index
    %c0_25 = arith.constant 0 : index
    %42 = vector.load %arg11[%c0_24, %c0_25] : memref<32x4xf32, #tpu.memory_space<vmem>>, vector<32x4xf32>
    tpu.vector_store %arg11[%c0_24, %c0_25], %41 {strides = array<i32>} : memref<32x4xf32, #tpu.memory_space<vmem>>, vector<32x4xf32>,
    return
  }
  func.func @transform_0(%arg0: i32) -> (i32, i32) {
    %c0_i32 = arith.constant 0 : i32
    %c0_i32_0 = arith.constant 0 : i32
    return %arg0, %c0_i32 : i32, i32
  }
  func.func @transform_1(%arg0: i32) -> (i32, i32) {
    %c0_i32 = arith.constant 0 : i32
    %c0_i32_0 = arith.constant 0 : i32
    %c0_i32_1 = arith.constant 0 : i32
    return %c0_i32, %c0_i32_0 : i32, i32
  }
  func.func @transform_2(%arg0: i32) -> (i32, i32) {
    %c0_i32 = arith.constant 0 : i32
    %c0_i32_0 = arith.constant 0 : i32
    %c0_i32_1 = arith.constant 0 : i32
    return %c0_i32, %c0_i32_0 : i32, i32
  }
  func.func @transform_3(%arg0: i32) -> (i32, i32) {
    %c0_i32 = arith.constant 0 : i32
    %c0_i32_0 = arith.constant 0 : i32
    %c0_i32_1 = arith.constant 0 : i32
    return %c0_i32, %c0_i32_0 : i32, i32
  }
  func.func @transform_4(%arg0: i32) -> (i32, i32) {
    %c0_i32 = arith.constant 0 : i32
    %c0_i32_0 = arith.constant 0 : i32
    %c0_i32_1 = arith.constant 0 : i32
    return %c0_i32, %c0_i32_0 : i32, i32
  }
  func.func @transform_5(%arg0: i32) -> (i32, i32) {
    %c0_i32 = arith.constant 0 : i32
    %c0_i32_0 = arith.constant 0 : i32
    return %arg0, %c0_i32 : i32, i32
  }
  func.func @transform_6(%arg0: i32) -> (i32, i32) {
    %c0_i32 = arith.constant 0 : i32
    %c0_i32_0 = arith.constant 0 : i32
    return %arg0, %c0_i32 : i32, i32
  }
  func.func @transform_7(%arg0: i32) -> (i32, i32) {
    %c0_i32 = arith.constant 0 : i32
    %c0_i32_0 = arith.constant 0 : i32
    return %arg0, %c0_i32 : i32, i32
  }
  func.func @transform_8(%arg0: i32) -> (i32, i32) {
    %c0_i32 = arith.constant 0 : i32
    %c0_i32_0 = arith.constant 0 : i32
    return %arg0, %c0_i32 : i32, i32
  }
  func.func @transform_9(%arg0: i32) -> (i32, i32) {
    %c0_i32 = arith.constant 0 : i32
    %c0_i32_0 = arith.constant 0 : i32
    return %arg0, %c0_i32 : i32, i32
  }
  func.func @transform_10(%arg0: i32) -> (i32, i32) {
    %c0_i32 = arith.constant 0 : i32
    %c0_i32_0 = arith.constant 0 : i32
    return %arg0, %c0_i32 : i32, i32
  }
}

module attributes {stable_mosaic.version = 11 : i64} {
  func.func @_attn_lepe_kernel(%arg0: i32, %arg1: memref<4x8x4xf32, #tpu.memory_space<vmem>>, %arg2: memref<4x8x4xf32, #tpu.memory_space<vmem>>, %arg3: memref<4x8x4xf32, #tpu.memory_space<vmem>>, %arg4: memref<9x4xf32, #tpu.memory_space<vmem>>, %arg5: memref<1x4xf32, #tpu.memory_space<vmem>>, %arg6: memref<4x8x4xf32, #tpu.memory_space<vmem>>, %arg7: memref<4x1x8x8xf32, #tpu.memory_space<vmem>>, %arg8: memref<4x8x4xf32, #tpu.memory_space<vmem>>) attributes {dimension_semantics = [#tpu.dimension_semantics<parallel>], iteration_bounds = array<i64: 1>, scalar_prefetch = 0 : i64, scratch_operands = 1 : i64, tpu.core_type = #tpu.core_type<tc>, window_params = [{transform_indices = @transform_0, window_bounds = array<i64: 4, 8, 4>}, {transform_indices = @transform_1, window_bounds = array<i64: 4, 8, 4>}, {transform_indices = @transform_2, window_bounds = array<i64: 4, 8, 4>}, {pipeline_mode = #tpu.pipeline_mode<synchronous>, transform_indices = @transform_3, window_bounds = array<i64: 9, 4>}, {pipeline_mode = #tpu.pipeline_mode<synchronous>, transform_indices = @transform_4, window_bounds = array<i64: 1, 4>}, {transform_indices = @transform_5, window_bounds = array<i64: 4, 8, 4>}, {transform_indices = @transform_6, window_bounds = array<i64: 4, 1, 8, 8>}]} {
    %c0 = arith.constant 0 : index
    %c0_0 = arith.constant 0 : index
    %c0_1 = arith.constant 0 : index
    %0 = vector.load %arg3[%c0, %c0_0, %c0_1] : memref<4x8x4xf32, #tpu.memory_space<vmem>>, vector<4x8x4xf32>
    %c0_2 = arith.constant 0 : index
    %c0_3 = arith.constant 0 : index
    %1 = vector.load %arg4[%c0_2, %c0_3] : memref<9x4xf32, #tpu.memory_space<vmem>>, vector<9x4xf32>
    %cst = arith.constant 0.000000e+00 : f32
    %2 = vector.broadcast %cst : f32 to vector<4x8x4xf32>
    %c0_4 = arith.constant 0 : index
    %c0_5 = arith.constant 0 : index
    %c0_6 = arith.constant 0 : index
    %3 = vector.load %arg8[%c0_4, %c0_5, %c0_6] : memref<4x8x4xf32, #tpu.memory_space<vmem>>, vector<4x8x4xf32>
    tpu.vector_store %arg8[%c0_4, %c0_5, %c0_6], %2 {strides = array<i32>} : memref<4x8x4xf32, #tpu.memory_space<vmem>>, vector<4x8x4xf32>,
    %4 = vector.extract_strided_slice %1 {offsets = [0, 0], sizes = [1, 4], strides = [1, 1]} : vector<9x4xf32> to vector<1x4xf32>
    %5 = vector.shape_cast %4 : vector<1x4xf32> to vector<4xf32>
    %6 = vector.extract_strided_slice %0 {offsets = [0, 0, 0], sizes = [4, 3, 4], strides = [1, 1, 1]} : vector<4x8x4xf32> to vector<4x3x4xf32>
    %7 = vector.shape_cast %5 : vector<4xf32> to vector<1x1x4xf32>
    %8 = vector.broadcast %7 : vector<1x1x4xf32> to vector<4x3x4xf32>
    %9 = arith.mulf %6, %8 : vector<4x3x4xf32>
    %10 = tpu.iota {dimensions = array<i32: 1>} : vector<1x3x1xi32>
    %c5_i32 = arith.constant 5 : i32
    %11 = vector.broadcast %c5_i32 : i32 to vector<1x3x1xi32>
    %12 = arith.addi %11, %10 : vector<1x3x1xi32>
    %c4_i32 = arith.constant 4 : i32
    %c0_i32 = arith.constant 0 : i32
    %13 = arith.cmpi eq, %c4_i32, %c0_i32 : i32
    %c1_i32 = arith.constant 1 : i32
    %14 = arith.select %13, %c1_i32, %c4_i32 : i32
    %15 = vector.broadcast %14 : i32 to vector<1x3x1xi32>
    %16 = arith.remsi %12, %15 : vector<1x3x1xi32>
    %c0_i32_7 = arith.constant 0 : i32
    %17 = vector.broadcast %c0_i32_7 : i32 to vector<1x3x1xi32>
    %18 = arith.cmpi ne, %16, %17 : vector<1x3x1xi32>
    %c0_i32_8 = arith.constant 0 : i32
    %19 = vector.broadcast %c0_i32_8 : i32 to vector<1x3x1xi32>
    %20 = arith.cmpi slt, %16, %19 : vector<1x3x1xi32>
    %c0_i32_9 = arith.constant 0 : i32
    %21 = arith.cmpi slt, %14, %c0_i32_9 : i32
    %22 = vector.broadcast %21 : i1 to vector<1x3x1xi1>
    %23 = vector.broadcast %22 : vector<1x3x1xi1> to vector<1x3x1xi1>
    %24 = arith.xori %20, %23 : vector<1x3x1xi1>
    %25 = arith.andi %24, %18 : vector<1x3x1xi1>
    %26 = vector.broadcast %14 : i32 to vector<1x3x1xi32>
    %27 = arith.addi %16, %26 : vector<1x3x1xi32>
    %28 = arith.select %25, %27, %16 : vector<1x3x1xi1>, vector<1x3x1xi32>
    %c-1_i32 = arith.constant -1 : i32
    %29 = vector.broadcast %c-1_i32 : i32 to vector<1x3x1xi32>
    %30 = arith.addi %28, %29 : vector<1x3x1xi32>
    %c0_i32_10 = arith.constant 0 : i32
    %31 = vector.broadcast %c0_i32_10 : i32 to vector<1x3x1xi32>
    %32 = arith.cmpi sge, %30, %31 : vector<1x3x1xi32>
    %c-1_i32_11 = arith.constant -1 : i32
    %33 = vector.broadcast %c-1_i32_11 : i32 to vector<1x3x1xi32>
    %34 = arith.addi %28, %33 : vector<1x3x1xi32>
    %c4_i32_12 = arith.constant 4 : i32
    %35 = vector.broadcast %c4_i32_12 : i32 to vector<1x3x1xi32>
    %36 = arith.cmpi slt, %34, %35 : vector<1x3x1xi32>
    %37 = arith.andi %32, %36 : vector<1x3x1xi1>
    %cst_13 = arith.constant 0.000000e+00 : f32
    %38 = vector.shape_cast %37 : vector<1x3x1xi1> to vector<1x3x1xi1>
    %39 = vector.broadcast %38 : vector<1x3x1xi1> to vector<4x3x4xi1>
    %40 = vector.broadcast %cst_13 : f32 to vector<4x3x4xf32>
    %41 = arith.select %39, %9, %40 : vector<4x3x4xi1>, vector<4x3x4xf32>
    %c0_14 = arith.constant 0 : index
    %c5 = arith.constant 5 : index
    %c0_15 = arith.constant 0 : index
    %42 = vector.load %arg8[%c0_14, %c5, %c0_15] : memref<4x8x4xf32, #tpu.memory_space<vmem>>, vector<4x3x4xf32>
    %43 = arith.addf %42, %41 : vector<4x3x4xf32>
    %c0_16 = arith.constant 0 : index
    %c5_17 = arith.constant 5 : index
    %c0_18 = arith.constant 0 : index
    %44 = vector.load %arg8[%c0_16, %c5_17, %c0_18] : memref<4x8x4xf32, #tpu.memory_space<vmem>>, vector<4x3x4xf32>
    tpu.vector_store %arg8[%c0_16, %c5_17, %c0_18], %43 {strides = array<i32>} : memref<4x8x4xf32, #tpu.memory_space<vmem>>, vector<4x3x4xf32>,
    %45 = vector.extract_strided_slice %1 {offsets = [1, 0], sizes = [1, 4], strides = [1, 1]} : vector<9x4xf32> to vector<1x4xf32>
    %46 = vector.shape_cast %45 : vector<1x4xf32> to vector<4xf32>
    %47 = vector.extract_strided_slice %0 {offsets = [0, 0, 0], sizes = [4, 4, 4], strides = [1, 1, 1]} : vector<4x8x4xf32> to vector<4x4x4xf32>
    %48 = vector.shape_cast %46 : vector<4xf32> to vector<1x1x4xf32>
    %49 = vector.broadcast %48 : vector<1x1x4xf32> to vector<4x4x4xf32>
    %50 = arith.mulf %47, %49 : vector<4x4x4xf32>
    %c0_19 = arith.constant 0 : index
    %c4 = arith.constant 4 : index
    %c0_20 = arith.constant 0 : index
    %51 = vector.load %arg8[%c0_19, %c4, %c0_20] : memref<4x8x4xf32, #tpu.memory_space<vmem>>, vector<4x4x4xf32>
    %52 = arith.addf %51, %50 : vector<4x4x4xf32>
    %c0_21 = arith.constant 0 : index
    %c4_22 = arith.constant 4 : index
    %c0_23 = arith.constant 0 : index
    %53 = vector.load %arg8[%c0_21, %c4_22, %c0_23] : memref<4x8x4xf32, #tpu.memory_space<vmem>>, vector<4x4x4xf32>
    tpu.vector_store %arg8[%c0_21, %c4_22, %c0_23], %52 {strides = array<i32>} : memref<4x8x4xf32, #tpu.memory_space<vmem>>, vector<4x4x4xf32>,
    %54 = vector.extract_strided_slice %1 {offsets = [2, 0], sizes = [1, 4], strides = [1, 1]} : vector<9x4xf32> to vector<1x4xf32>
    %55 = vector.shape_cast %54 : vector<1x4xf32> to vector<4xf32>
    %56 = vector.extract_strided_slice %0 {offsets = [0, 0, 0], sizes = [4, 5, 4], strides = [1, 1, 1]} : vector<4x8x4xf32> to vector<4x5x4xf32>
    %57 = vector.shape_cast %55 : vector<4xf32> to vector<1x1x4xf32>
    %58 = vector.broadcast %57 : vector<1x1x4xf32> to vector<4x5x4xf32>
    %59 = arith.mulf %56, %58 : vector<4x5x4xf32>
    %60 = tpu.iota {dimensions = array<i32: 1>} : vector<1x5x1xi32>
    %c3_i32 = arith.constant 3 : i32
    %61 = vector.broadcast %c3_i32 : i32 to vector<1x5x1xi32>
    %62 = arith.addi %61, %60 : vector<1x5x1xi32>
    %c4_i32_24 = arith.constant 4 : i32
    %c0_i32_25 = arith.constant 0 : i32
    %63 = arith.cmpi eq, %c4_i32_24, %c0_i32_25 : i32
    %c1_i32_26 = arith.constant 1 : i32
    %64 = arith.select %63, %c1_i32_26, %c4_i32_24 : i32
    %65 = vector.broadcast %64 : i32 to vector<1x5x1xi32>
    %66 = arith.remsi %62, %65 : vector<1x5x1xi32>
    %c0_i32_27 = arith.constant 0 : i32
    %67 = vector.broadcast %c0_i32_27 : i32 to vector<1x5x1xi32>
    %68 = arith.cmpi ne, %66, %67 : vector<1x5x1xi32>
    %c0_i32_28 = arith.constant 0 : i32
    %69 = vector.broadcast %c0_i32_28 : i32 to vector<1x5x1xi32>
    %70 = arith.cmpi slt, %66, %69 : vector<1x5x1xi32>
    %c0_i32_29 = arith.constant 0 : i32
    %71 = arith.cmpi slt, %64, %c0_i32_29 : i32
    %72 = vector.broadcast %71 : i1 to vector<1x5x1xi1>
    %73 = vector.broadcast %72 : vector<1x5x1xi1> to vector<1x5x1xi1>
    %74 = arith.xori %70, %73 : vector<1x5x1xi1>
    %75 = arith.andi %74, %68 : vector<1x5x1xi1>
    %76 = vector.broadcast %64 : i32 to vector<1x5x1xi32>
    %77 = arith.addi %66, %76 : vector<1x5x1xi32>
    %78 = arith.select %75, %77, %66 : vector<1x5x1xi1>, vector<1x5x1xi32>
    %c1_i32_30 = arith.constant 1 : i32
    %79 = vector.broadcast %c1_i32_30 : i32 to vector<1x5x1xi32>
    %80 = arith.addi %78, %79 : vector<1x5x1xi32>
    %c0_i32_31 = arith.constant 0 : i32
    %81 = vector.broadcast %c0_i32_31 : i32 to vector<1x5x1xi32>
    %82 = arith.cmpi sge, %80, %81 : vector<1x5x1xi32>
    %c1_i32_32 = arith.constant 1 : i32
    %83 = vector.broadcast %c1_i32_32 : i32 to vector<1x5x1xi32>
    %84 = arith.addi %78, %83 : vector<1x5x1xi32>
    %c4_i32_33 = arith.constant 4 : i32
    %85 = vector.broadcast %c4_i32_33 : i32 to vector<1x5x1xi32>
    %86 = arith.cmpi slt, %84, %85 : vector<1x5x1xi32>
    %87 = arith.andi %82, %86 : vector<1x5x1xi1>
    %cst_34 = arith.constant 0.000000e+00 : f32
    %88 = vector.shape_cast %87 : vector<1x5x1xi1> to vector<1x5x1xi1>
    %89 = vector.broadcast %88 : vector<1x5x1xi1> to vector<4x5x4xi1>
    %90 = vector.broadcast %cst_34 : f32 to vector<4x5x4xf32>
    %91 = arith.select %89, %59, %90 : vector<4x5x4xi1>, vector<4x5x4xf32>
    %c0_35 = arith.constant 0 : index
    %c3 = arith.constant 3 : index
    %c0_36 = arith.constant 0 : index
    %92 = vector.load %arg8[%c0_35, %c3, %c0_36] : memref<4x8x4xf32, #tpu.memory_space<vmem>>, vector<4x5x4xf32>
    %93 = arith.addf %92, %91 : vector<4x5x4xf32>
    %c0_37 = arith.constant 0 : index
    %c3_38 = arith.constant 3 : index
    %c0_39 = arith.constant 0 : index
    %94 = vector.load %arg8[%c0_37, %c3_38, %c0_39] : memref<4x8x4xf32, #tpu.memory_space<vmem>>, vector<4x5x4xf32>
    tpu.vector_store %arg8[%c0_37, %c3_38, %c0_39], %93 {strides = array<i32>} : memref<4x8x4xf32, #tpu.memory_space<vmem>>, vector<4x5x4xf32>,
    %95 = vector.extract_strided_slice %1 {offsets = [3, 0], sizes = [1, 4], strides = [1, 1]} : vector<9x4xf32> to vector<1x4xf32>
    %96 = vector.shape_cast %95 : vector<1x4xf32> to vector<4xf32>
    %97 = vector.extract_strided_slice %0 {offsets = [0, 0, 0], sizes = [4, 7, 4], strides = [1, 1, 1]} : vector<4x8x4xf32> to vector<4x7x4xf32>
    %98 = vector.shape_cast %96 : vector<4xf32> to vector<1x1x4xf32>
    %99 = vector.broadcast %98 : vector<1x1x4xf32> to vector<4x7x4xf32>
    %100 = arith.mulf %97, %99 : vector<4x7x4xf32>
    %101 = tpu.iota {dimensions = array<i32: 1>} : vector<1x7x1xi32>
    %c1_i32_40 = arith.constant 1 : i32
    %102 = vector.broadcast %c1_i32_40 : i32 to vector<1x7x1xi32>
    %103 = arith.addi %102, %101 : vector<1x7x1xi32>
    %c4_i32_41 = arith.constant 4 : i32
    %c0_i32_42 = arith.constant 0 : i32
    %104 = arith.cmpi eq, %c4_i32_41, %c0_i32_42 : i32
    %c1_i32_43 = arith.constant 1 : i32
    %105 = arith.select %104, %c1_i32_43, %c4_i32_41 : i32
    %106 = vector.broadcast %105 : i32 to vector<1x7x1xi32>
    %107 = arith.remsi %103, %106 : vector<1x7x1xi32>
    %c0_i32_44 = arith.constant 0 : i32
    %108 = vector.broadcast %c0_i32_44 : i32 to vector<1x7x1xi32>
    %109 = arith.cmpi ne, %107, %108 : vector<1x7x1xi32>
    %c0_i32_45 = arith.constant 0 : i32
    %110 = vector.broadcast %c0_i32_45 : i32 to vector<1x7x1xi32>
    %111 = arith.cmpi slt, %107, %110 : vector<1x7x1xi32>
    %c0_i32_46 = arith.constant 0 : i32
    %112 = arith.cmpi slt, %105, %c0_i32_46 : i32
    %113 = vector.broadcast %112 : i1 to vector<1x7x1xi1>
    %114 = vector.broadcast %113 : vector<1x7x1xi1> to vector<1x7x1xi1>
    %115 = arith.xori %111, %114 : vector<1x7x1xi1>
    %116 = arith.andi %115, %109 : vector<1x7x1xi1>
    %117 = vector.broadcast %105 : i32 to vector<1x7x1xi32>
    %118 = arith.addi %107, %117 : vector<1x7x1xi32>
    %119 = arith.select %116, %118, %107 : vector<1x7x1xi1>, vector<1x7x1xi32>
    %c-1_i32_47 = arith.constant -1 : i32
    %120 = vector.broadcast %c-1_i32_47 : i32 to vector<1x7x1xi32>
    %121 = arith.addi %119, %120 : vector<1x7x1xi32>
    %c0_i32_48 = arith.constant 0 : i32
    %122 = vector.broadcast %c0_i32_48 : i32 to vector<1x7x1xi32>
    %123 = arith.cmpi sge, %121, %122 : vector<1x7x1xi32>
    %c-1_i32_49 = arith.constant -1 : i32
    %124 = vector.broadcast %c-1_i32_49 : i32 to vector<1x7x1xi32>
    %125 = arith.addi %119, %124 : vector<1x7x1xi32>
    %c4_i32_50 = arith.constant 4 : i32
    %126 = vector.broadcast %c4_i32_50 : i32 to vector<1x7x1xi32>
    %127 = arith.cmpi slt, %125, %126 : vector<1x7x1xi32>
    %128 = arith.andi %123, %127 : vector<1x7x1xi1>
    %cst_51 = arith.constant 0.000000e+00 : f32
    %129 = vector.shape_cast %128 : vector<1x7x1xi1> to vector<1x7x1xi1>
    %130 = vector.broadcast %129 : vector<1x7x1xi1> to vector<4x7x4xi1>
    %131 = vector.broadcast %cst_51 : f32 to vector<4x7x4xf32>
    %132 = arith.select %130, %100, %131 : vector<4x7x4xi1>, vector<4x7x4xf32>
    %c0_52 = arith.constant 0 : index
    %c1 = arith.constant 1 : index
    %c0_53 = arith.constant 0 : index
    %133 = vector.load %arg8[%c0_52, %c1, %c0_53] : memref<4x8x4xf32, #tpu.memory_space<vmem>>, vector<4x7x4xf32>
    %134 = arith.addf %133, %132 : vector<4x7x4xf32>
    %c0_54 = arith.constant 0 : index
    %c1_55 = arith.constant 1 : index
    %c0_56 = arith.constant 0 : index
    %135 = vector.load %arg8[%c0_54, %c1_55, %c0_56] : memref<4x8x4xf32, #tpu.memory_space<vmem>>, vector<4x7x4xf32>
    tpu.vector_store %arg8[%c0_54, %c1_55, %c0_56], %134 {strides = array<i32>} : memref<4x8x4xf32, #tpu.memory_space<vmem>>, vector<4x7x4xf32>,
    %136 = vector.extract_strided_slice %1 {offsets = [4, 0], sizes = [1, 4], strides = [1, 1]} : vector<9x4xf32> to vector<1x4xf32>
    %137 = vector.shape_cast %136 : vector<1x4xf32> to vector<4xf32>
    %138 = vector.shape_cast %137 : vector<4xf32> to vector<1x1x4xf32>
    %139 = vector.broadcast %138 : vector<1x1x4xf32> to vector<4x8x4xf32>
    %140 = arith.mulf %0, %139 : vector<4x8x4xf32>
    %c0_57 = arith.constant 0 : index
    %c0_58 = arith.constant 0 : index
    %c0_59 = arith.constant 0 : index
    %141 = vector.load %arg8[%c0_57, %c0_58, %c0_59] : memref<4x8x4xf32, #tpu.memory_space<vmem>>, vector<4x8x4xf32>
    %142 = arith.addf %141, %140 : vector<4x8x4xf32>
    %c0_60 = arith.constant 0 : index
    %c0_61 = arith.constant 0 : index
    %c0_62 = arith.constant 0 : index
    %143 = vector.load %arg8[%c0_60, %c0_61, %c0_62] : memref<4x8x4xf32, #tpu.memory_space<vmem>>, vector<4x8x4xf32>
    tpu.vector_store %arg8[%c0_60, %c0_61, %c0_62], %142 {strides = array<i32>} : memref<4x8x4xf32, #tpu.memory_space<vmem>>, vector<4x8x4xf32>,
    %144 = vector.extract_strided_slice %1 {offsets = [5, 0], sizes = [1, 4], strides = [1, 1]} : vector<9x4xf32> to vector<1x4xf32>
    %145 = vector.shape_cast %144 : vector<1x4xf32> to vector<4xf32>
    %146 = vector.extract_strided_slice %0 {offsets = [0, 1, 0], sizes = [4, 7, 4], strides = [1, 1, 1]} : vector<4x8x4xf32> to vector<4x7x4xf32>
    %147 = vector.shape_cast %145 : vector<4xf32> to vector<1x1x4xf32>
    %148 = vector.broadcast %147 : vector<1x1x4xf32> to vector<4x7x4xf32>
    %149 = arith.mulf %146, %148 : vector<4x7x4xf32>
    %150 = tpu.iota {dimensions = array<i32: 1>} : vector<1x7x1xi32>
    %c0_i32_63 = arith.constant 0 : i32
    %151 = vector.broadcast %c0_i32_63 : i32 to vector<1x7x1xi32>
    %152 = arith.addi %151, %150 : vector<1x7x1xi32>
    %c4_i32_64 = arith.constant 4 : i32
    %c0_i32_65 = arith.constant 0 : i32
    %153 = arith.cmpi eq, %c4_i32_64, %c0_i32_65 : i32
    %c1_i32_66 = arith.constant 1 : i32
    %154 = arith.select %153, %c1_i32_66, %c4_i32_64 : i32
    %155 = vector.broadcast %154 : i32 to vector<1x7x1xi32>
    %156 = arith.remsi %152, %155 : vector<1x7x1xi32>
    %c0_i32_67 = arith.constant 0 : i32
    %157 = vector.broadcast %c0_i32_67 : i32 to vector<1x7x1xi32>
    %158 = arith.cmpi ne, %156, %157 : vector<1x7x1xi32>
    %c0_i32_68 = arith.constant 0 : i32
    %159 = vector.broadcast %c0_i32_68 : i32 to vector<1x7x1xi32>
    %160 = arith.cmpi slt, %156, %159 : vector<1x7x1xi32>
    %c0_i32_69 = arith.constant 0 : i32
    %161 = arith.cmpi slt, %154, %c0_i32_69 : i32
    %162 = vector.broadcast %161 : i1 to vector<1x7x1xi1>
    %163 = vector.broadcast %162 : vector<1x7x1xi1> to vector<1x7x1xi1>
    %164 = arith.xori %160, %163 : vector<1x7x1xi1>
    %165 = arith.andi %164, %158 : vector<1x7x1xi1>
    %166 = vector.broadcast %154 : i32 to vector<1x7x1xi32>
    %167 = arith.addi %156, %166 : vector<1x7x1xi32>
    %168 = arith.select %165, %167, %156 : vector<1x7x1xi1>, vector<1x7x1xi32>
    %c1_i32_70 = arith.constant 1 : i32
    %169 = vector.broadcast %c1_i32_70 : i32 to vector<1x7x1xi32>
    %170 = arith.addi %168, %169 : vector<1x7x1xi32>
    %c0_i32_71 = arith.constant 0 : i32
    %171 = vector.broadcast %c0_i32_71 : i32 to vector<1x7x1xi32>
    %172 = arith.cmpi sge, %170, %171 : vector<1x7x1xi32>
    %c1_i32_72 = arith.constant 1 : i32
    %173 = vector.broadcast %c1_i32_72 : i32 to vector<1x7x1xi32>
    %174 = arith.addi %168, %173 : vector<1x7x1xi32>
    %c4_i32_73 = arith.constant 4 : i32
    %175 = vector.broadcast %c4_i32_73 : i32 to vector<1x7x1xi32>
    %176 = arith.cmpi slt, %174, %175 : vector<1x7x1xi32>
    %177 = arith.andi %172, %176 : vector<1x7x1xi1>
    %cst_74 = arith.constant 0.000000e+00 : f32
    %178 = vector.shape_cast %177 : vector<1x7x1xi1> to vector<1x7x1xi1>
    %179 = vector.broadcast %178 : vector<1x7x1xi1> to vector<4x7x4xi1>
    %180 = vector.broadcast %cst_74 : f32 to vector<4x7x4xf32>
    %181 = arith.select %179, %149, %180 : vector<4x7x4xi1>, vector<4x7x4xf32>
    %c0_75 = arith.constant 0 : index
    %c0_76 = arith.constant 0 : index
    %c0_77 = arith.constant 0 : index
    %182 = vector.load %arg8[%c0_75, %c0_76, %c0_77] : memref<4x8x4xf32, #tpu.memory_space<vmem>>, vector<4x7x4xf32>
    %183 = arith.addf %182, %181 : vector<4x7x4xf32>
    %c0_78 = arith.constant 0 : index
    %c0_79 = arith.constant 0 : index
    %c0_80 = arith.constant 0 : index
    %184 = vector.load %arg8[%c0_78, %c0_79, %c0_80] : memref<4x8x4xf32, #tpu.memory_space<vmem>>, vector<4x7x4xf32>
    tpu.vector_store %arg8[%c0_78, %c0_79, %c0_80], %183 {strides = array<i32>} : memref<4x8x4xf32, #tpu.memory_space<vmem>>, vector<4x7x4xf32>,
    %185 = vector.extract_strided_slice %1 {offsets = [6, 0], sizes = [1, 4], strides = [1, 1]} : vector<9x4xf32> to vector<1x4xf32>
    %186 = vector.shape_cast %185 : vector<1x4xf32> to vector<4xf32>
    %187 = vector.extract_strided_slice %0 {offsets = [0, 3, 0], sizes = [4, 5, 4], strides = [1, 1, 1]} : vector<4x8x4xf32> to vector<4x5x4xf32>
    %188 = vector.shape_cast %186 : vector<4xf32> to vector<1x1x4xf32>
    %189 = vector.broadcast %188 : vector<1x1x4xf32> to vector<4x5x4xf32>
    %190 = arith.mulf %187, %189 : vector<4x5x4xf32>
    %191 = tpu.iota {dimensions = array<i32: 1>} : vector<1x5x1xi32>
    %c0_i32_81 = arith.constant 0 : i32
    %192 = vector.broadcast %c0_i32_81 : i32 to vector<1x5x1xi32>
    %193 = arith.addi %192, %191 : vector<1x5x1xi32>
    %c4_i32_82 = arith.constant 4 : i32
    %c0_i32_83 = arith.constant 0 : i32
    %194 = arith.cmpi eq, %c4_i32_82, %c0_i32_83 : i32
    %c1_i32_84 = arith.constant 1 : i32
    %195 = arith.select %194, %c1_i32_84, %c4_i32_82 : i32
    %196 = vector.broadcast %195 : i32 to vector<1x5x1xi32>
    %197 = arith.remsi %193, %196 : vector<1x5x1xi32>
    %c0_i32_85 = arith.constant 0 : i32
    %198 = vector.broadcast %c0_i32_85 : i32 to vector<1x5x1xi32>
    %199 = arith.cmpi ne, %197, %198 : vector<1x5x1xi32>
    %c0_i32_86 = arith.constant 0 : i32
    %200 = vector.broadcast %c0_i32_86 : i32 to vector<1x5x1xi32>
    %201 = arith.cmpi slt, %197, %200 : vector<1x5x1xi32>
    %c0_i32_87 = arith.constant 0 : i32
    %202 = arith.cmpi slt, %195, %c0_i32_87 : i32
    %203 = vector.broadcast %202 : i1 to vector<1x5x1xi1>
    %204 = vector.broadcast %203 : vector<1x5x1xi1> to vector<1x5x1xi1>
    %205 = arith.xori %201, %204 : vector<1x5x1xi1>
    %206 = arith.andi %205, %199 : vector<1x5x1xi1>
    %207 = vector.broadcast %195 : i32 to vector<1x5x1xi32>
    %208 = arith.addi %197, %207 : vector<1x5x1xi32>
    %209 = arith.select %206, %208, %197 : vector<1x5x1xi1>, vector<1x5x1xi32>
    %c-1_i32_88 = arith.constant -1 : i32
    %210 = vector.broadcast %c-1_i32_88 : i32 to vector<1x5x1xi32>
    %211 = arith.addi %209, %210 : vector<1x5x1xi32>
    %c0_i32_89 = arith.constant 0 : i32
    %212 = vector.broadcast %c0_i32_89 : i32 to vector<1x5x1xi32>
    %213 = arith.cmpi sge, %211, %212 : vector<1x5x1xi32>
    %c-1_i32_90 = arith.constant -1 : i32
    %214 = vector.broadcast %c-1_i32_90 : i32 to vector<1x5x1xi32>
    %215 = arith.addi %209, %214 : vector<1x5x1xi32>
    %c4_i32_91 = arith.constant 4 : i32
    %216 = vector.broadcast %c4_i32_91 : i32 to vector<1x5x1xi32>
    %217 = arith.cmpi slt, %215, %216 : vector<1x5x1xi32>
    %218 = arith.andi %213, %217 : vector<1x5x1xi1>
    %cst_92 = arith.constant 0.000000e+00 : f32
    %219 = vector.shape_cast %218 : vector<1x5x1xi1> to vector<1x5x1xi1>
    %220 = vector.broadcast %219 : vector<1x5x1xi1> to vector<4x5x4xi1>
    %221 = vector.broadcast %cst_92 : f32 to vector<4x5x4xf32>
    %222 = arith.select %220, %190, %221 : vector<4x5x4xi1>, vector<4x5x4xf32>
    %c0_93 = arith.constant 0 : index
    %c0_94 = arith.constant 0 : index
    %c0_95 = arith.constant 0 : index
    %223 = vector.load %arg8[%c0_93, %c0_94, %c0_95] : memref<4x8x4xf32, #tpu.memory_space<vmem>>, vector<4x5x4xf32>
    %224 = arith.addf %223, %222 : vector<4x5x4xf32>
    %c0_96 = arith.constant 0 : index
    %c0_97 = arith.constant 0 : index
    %c0_98 = arith.constant 0 : index
    %225 = vector.load %arg8[%c0_96, %c0_97, %c0_98] : memref<4x8x4xf32, #tpu.memory_space<vmem>>, vector<4x5x4xf32>
    tpu.vector_store %arg8[%c0_96, %c0_97, %c0_98], %224 {strides = array<i32>} : memref<4x8x4xf32, #tpu.memory_space<vmem>>, vector<4x5x4xf32>,
    %226 = vector.extract_strided_slice %1 {offsets = [7, 0], sizes = [1, 4], strides = [1, 1]} : vector<9x4xf32> to vector<1x4xf32>
    %227 = vector.shape_cast %226 : vector<1x4xf32> to vector<4xf32>
    %228 = vector.extract_strided_slice %0 {offsets = [0, 4, 0], sizes = [4, 4, 4], strides = [1, 1, 1]} : vector<4x8x4xf32> to vector<4x4x4xf32>
    %229 = vector.shape_cast %227 : vector<4xf32> to vector<1x1x4xf32>
    %230 = vector.broadcast %229 : vector<1x1x4xf32> to vector<4x4x4xf32>
    %231 = arith.mulf %228, %230 : vector<4x4x4xf32>
    %c0_99 = arith.constant 0 : index
    %c0_100 = arith.constant 0 : index
    %c0_101 = arith.constant 0 : index
    %232 = vector.load %arg8[%c0_99, %c0_100, %c0_101] : memref<4x8x4xf32, #tpu.memory_space<vmem>>, vector<4x4x4xf32>
    %233 = arith.addf %232, %231 : vector<4x4x4xf32>
    %c0_102 = arith.constant 0 : index
    %c0_103 = arith.constant 0 : index
    %c0_104 = arith.constant 0 : index
    %234 = vector.load %arg8[%c0_102, %c0_103, %c0_104] : memref<4x8x4xf32, #tpu.memory_space<vmem>>, vector<4x4x4xf32>
    tpu.vector_store %arg8[%c0_102, %c0_103, %c0_104], %233 {strides = array<i32>} : memref<4x8x4xf32, #tpu.memory_space<vmem>>, vector<4x4x4xf32>,
    %235 = vector.extract_strided_slice %1 {offsets = [8, 0], sizes = [1, 4], strides = [1, 1]} : vector<9x4xf32> to vector<1x4xf32>
    %236 = vector.shape_cast %235 : vector<1x4xf32> to vector<4xf32>
    %237 = vector.extract_strided_slice %0 {offsets = [0, 5, 0], sizes = [4, 3, 4], strides = [1, 1, 1]} : vector<4x8x4xf32> to vector<4x3x4xf32>
    %238 = vector.shape_cast %236 : vector<4xf32> to vector<1x1x4xf32>
    %239 = vector.broadcast %238 : vector<1x1x4xf32> to vector<4x3x4xf32>
    %240 = arith.mulf %237, %239 : vector<4x3x4xf32>
    %241 = tpu.iota {dimensions = array<i32: 1>} : vector<1x3x1xi32>
    %c0_i32_105 = arith.constant 0 : i32
    %242 = vector.broadcast %c0_i32_105 : i32 to vector<1x3x1xi32>
    %243 = arith.addi %242, %241 : vector<1x3x1xi32>
    %c4_i32_106 = arith.constant 4 : i32
    %c0_i32_107 = arith.constant 0 : i32
    %244 = arith.cmpi eq, %c4_i32_106, %c0_i32_107 : i32
    %c1_i32_108 = arith.constant 1 : i32
    %245 = arith.select %244, %c1_i32_108, %c4_i32_106 : i32
    %246 = vector.broadcast %245 : i32 to vector<1x3x1xi32>
    %247 = arith.remsi %243, %246 : vector<1x3x1xi32>
    %c0_i32_109 = arith.constant 0 : i32
    %248 = vector.broadcast %c0_i32_109 : i32 to vector<1x3x1xi32>
    %249 = arith.cmpi ne, %247, %248 : vector<1x3x1xi32>
    %c0_i32_110 = arith.constant 0 : i32
    %250 = vector.broadcast %c0_i32_110 : i32 to vector<1x3x1xi32>
    %251 = arith.cmpi slt, %247, %250 : vector<1x3x1xi32>
    %c0_i32_111 = arith.constant 0 : i32
    %252 = arith.cmpi slt, %245, %c0_i32_111 : i32
    %253 = vector.broadcast %252 : i1 to vector<1x3x1xi1>
    %254 = vector.broadcast %253 : vector<1x3x1xi1> to vector<1x3x1xi1>
    %255 = arith.xori %251, %254 : vector<1x3x1xi1>
    %256 = arith.andi %255, %249 : vector<1x3x1xi1>
    %257 = vector.broadcast %245 : i32 to vector<1x3x1xi32>
    %258 = arith.addi %247, %257 : vector<1x3x1xi32>
    %259 = arith.select %256, %258, %247 : vector<1x3x1xi1>, vector<1x3x1xi32>
    %c1_i32_112 = arith.constant 1 : i32
    %260 = vector.broadcast %c1_i32_112 : i32 to vector<1x3x1xi32>
    %261 = arith.addi %259, %260 : vector<1x3x1xi32>
    %c0_i32_113 = arith.constant 0 : i32
    %262 = vector.broadcast %c0_i32_113 : i32 to vector<1x3x1xi32>
    %263 = arith.cmpi sge, %261, %262 : vector<1x3x1xi32>
    %c1_i32_114 = arith.constant 1 : i32
    %264 = vector.broadcast %c1_i32_114 : i32 to vector<1x3x1xi32>
    %265 = arith.addi %259, %264 : vector<1x3x1xi32>
    %c4_i32_115 = arith.constant 4 : i32
    %266 = vector.broadcast %c4_i32_115 : i32 to vector<1x3x1xi32>
    %267 = arith.cmpi slt, %265, %266 : vector<1x3x1xi32>
    %268 = arith.andi %263, %267 : vector<1x3x1xi1>
    %cst_116 = arith.constant 0.000000e+00 : f32
    %269 = vector.shape_cast %268 : vector<1x3x1xi1> to vector<1x3x1xi1>
    %270 = vector.broadcast %269 : vector<1x3x1xi1> to vector<4x3x4xi1>
    %271 = vector.broadcast %cst_116 : f32 to vector<4x3x4xf32>
    %272 = arith.select %270, %240, %271 : vector<4x3x4xi1>, vector<4x3x4xf32>
    %c0_117 = arith.constant 0 : index
    %c0_118 = arith.constant 0 : index
    %c0_119 = arith.constant 0 : index
    %273 = vector.load %arg8[%c0_117, %c0_118, %c0_119] : memref<4x8x4xf32, #tpu.memory_space<vmem>>, vector<4x3x4xf32>
    %274 = arith.addf %273, %272 : vector<4x3x4xf32>
    %c0_120 = arith.constant 0 : index
    %c0_121 = arith.constant 0 : index
    %c0_122 = arith.constant 0 : index
    %275 = vector.load %arg8[%c0_120, %c0_121, %c0_122] : memref<4x8x4xf32, #tpu.memory_space<vmem>>, vector<4x3x4xf32>
    tpu.vector_store %arg8[%c0_120, %c0_121, %c0_122], %274 {strides = array<i32>} : memref<4x8x4xf32, #tpu.memory_space<vmem>>, vector<4x3x4xf32>,
    %c0_123 = arith.constant 0 : index
    %c0_124 = arith.constant 0 : index
    %c0_125 = arith.constant 0 : index
    %276 = vector.load %arg8[%c0_123, %c0_124, %c0_125] : memref<4x8x4xf32, #tpu.memory_space<vmem>>, vector<4x8x4xf32>
    %c0_126 = arith.constant 0 : index
    %c0_127 = arith.constant 0 : index
    %277 = vector.load %arg5[%c0_126, %c0_127] : memref<1x4xf32, #tpu.memory_space<vmem>>, vector<1x4xf32>
    %278 = vector.shape_cast %277 : vector<1x4xf32> to vector<1x1x4xf32>
    %279 = vector.broadcast %278 : vector<1x1x4xf32> to vector<4x8x4xf32>
    %280 = arith.addf %276, %279 : vector<4x8x4xf32>
    %c0_128 = arith.constant 0 : index
    %c0_129 = arith.constant 0 : index
    %c0_130 = arith.constant 0 : index
    %281 = vector.load %arg1[%c0_128, %c0_129, %c0_130] : memref<4x8x4xf32, #tpu.memory_space<vmem>>, vector<4x8x4xf32>
    %c0_131 = arith.constant 0 : index
    %c0_132 = arith.constant 0 : index
    %c0_133 = arith.constant 0 : index
    %282 = vector.load %arg2[%c0_131, %c0_132, %c0_133] : memref<4x8x4xf32, #tpu.memory_space<vmem>>, vector<4x8x4xf32>
    %283 = arith.truncf %281 : vector<4x8x4xf32> to vector<4x8x4xbf16>
    %284 = arith.truncf %282 : vector<4x8x4xf32> to vector<4x8x4xbf16>
    %285 = arith.truncf %0 : vector<4x8x4xf32> to vector<4x8x4xbf16>
    "tpu.trace_start"() <{level = 10 : i32, message = "bqd,bkd->bqk"}> : () -> ()
    %cst_134 = arith.constant dense<0.000000e+00> : vector<4x8x8xf32>
    %286 = tpu.matmul %283, %284, %cst_134 {dimension_numbers = #tpu.dot_dimension_numbers<[2], [2], [1], [1], [0, 0, 0, 1, 1, 1], [0], [0]>} : vector<4x8x4xbf16>, vector<4x8x4xbf16>, vector<4x8x8xf32> -> vector<4x8x8xf32>
    "tpu.trace_stop"() : () -> ()
    %cst_135 = arith.constant 5.000000e-01 : f32
    %287 = vector.broadcast %cst_135 : f32 to vector<4x8x8xf32>
    %288 = arith.mulf %286, %287 : vector<4x8x8xf32>
    %cst_136 = arith.constant dense<0xFF800000> : vector<4x8xf32>
    %289 = vector.multi_reduction <maximumf>, %288, %cst_136 [2] : vector<4x8x8xf32> to vector<4x8xf32>
    %290 = vector.shape_cast %289 : vector<4x8xf32> to vector<4x8x1xf32>
    %291 = vector.broadcast %290 : vector<4x8x1xf32> to vector<4x8x8xf32>
    %292 = arith.subf %288, %291 : vector<4x8x8xf32>
    %293 = math.exp %292 : vector<4x8x8xf32>
    %cst_137 = arith.constant dense<0.000000e+00> : vector<4x8xf32>
    %294 = vector.multi_reduction <add>, %293, %cst_137 [2] : vector<4x8x8xf32> to vector<4x8xf32>
    %295 = vector.shape_cast %294 : vector<4x8xf32> to vector<4x8x1xf32>
    %296 = tpu.reciprocal %295 {approx = true} : vector<4x8x1xf32> -> vector<4x8x1xf32>
    %297 = vector.broadcast %296 : vector<4x8x1xf32> to vector<4x8x8xf32>
    %298 = arith.mulf %293, %297 : vector<4x8x8xf32>
    %299 = vector.shape_cast %298 : vector<4x8x8xf32> to vector<4x1x8x8xf32>
    %c0_138 = arith.constant 0 : index
    %c0_139 = arith.constant 0 : index
    %c0_140 = arith.constant 0 : index
    %c0_141 = arith.constant 0 : index
    %300 = vector.load %arg7[%c0_138, %c0_139, %c0_140, %c0_141] : memref<4x1x8x8xf32, #tpu.memory_space<vmem>>, vector<4x1x8x8xf32>
    tpu.vector_store %arg7[%c0_138, %c0_139, %c0_140, %c0_141], %299 {strides = array<i32>} : memref<4x1x8x8xf32, #tpu.memory_space<vmem>>, vector<4x1x8x8xf32>,
    %301 = arith.truncf %298 : vector<4x8x8xf32> to vector<4x8x8xbf16>
    "tpu.trace_start"() <{level = 10 : i32, message = "bqk,bkd->bqd"}> : () -> ()
    %cst_142 = arith.constant dense<0.000000e+00> : vector<4x8x4xf32>
    %302 = tpu.matmul %301, %285, %cst_142 {dimension_numbers = #tpu.dot_dimension_numbers<[2], [1], [1], [2], [0, 0, 0, 1, 1, 2], [0], [0]>} : vector<4x8x8xbf16>, vector<4x8x4xbf16>, vector<4x8x4xf32> -> vector<4x8x4xf32>
    "tpu.trace_stop"() : () -> ()
    %303 = arith.addf %302, %280 : vector<4x8x4xf32>
    %c0_143 = arith.constant 0 : index
    %c0_144 = arith.constant 0 : index
    %c0_145 = arith.constant 0 : index
    %304 = vector.load %arg6[%c0_143, %c0_144, %c0_145] : memref<4x8x4xf32, #tpu.memory_space<vmem>>, vector<4x8x4xf32>
    tpu.vector_store %arg6[%c0_143, %c0_144, %c0_145], %303 {strides = array<i32>} : memref<4x8x4xf32, #tpu.memory_space<vmem>>, vector<4x8x4xf32>,
    return
  }
  func.func @transform_0(%arg0: i32) -> (i32, i32, i32) {
    %c0_i32 = arith.constant 0 : i32
    %c0_i32_0 = arith.constant 0 : i32
    %c0_i32_1 = arith.constant 0 : i32
    return %arg0, %c0_i32, %c0_i32_0 : i32, i32, i32
  }
  func.func @transform_1(%arg0: i32) -> (i32, i32, i32) {
    %c0_i32 = arith.constant 0 : i32
    %c0_i32_0 = arith.constant 0 : i32
    %c0_i32_1 = arith.constant 0 : i32
    return %arg0, %c0_i32, %c0_i32_0 : i32, i32, i32
  }
  func.func @transform_2(%arg0: i32) -> (i32, i32, i32) {
    %c0_i32 = arith.constant 0 : i32
    %c0_i32_0 = arith.constant 0 : i32
    %c0_i32_1 = arith.constant 0 : i32
    return %arg0, %c0_i32, %c0_i32_0 : i32, i32, i32
  }
  func.func @transform_3(%arg0: i32) -> (i32, i32) {
    %c0_i32 = arith.constant 0 : i32
    %c0_i32_0 = arith.constant 0 : i32
    %c0_i32_1 = arith.constant 0 : i32
    return %c0_i32, %c0_i32_0 : i32, i32
  }
  func.func @transform_4(%arg0: i32) -> (i32, i32) {
    %c0_i32 = arith.constant 0 : i32
    %c0_i32_0 = arith.constant 0 : i32
    %c0_i32_1 = arith.constant 0 : i32
    return %c0_i32, %c0_i32_0 : i32, i32
  }
  func.func @transform_5(%arg0: i32) -> (i32, i32, i32) {
    %c0_i32 = arith.constant 0 : i32
    %c0_i32_0 = arith.constant 0 : i32
    %c0_i32_1 = arith.constant 0 : i32
    return %arg0, %c0_i32, %c0_i32_0 : i32, i32, i32
  }
  func.func @transform_6(%arg0: i32) -> (i32, i32, i32, i32) {
    %c0_i32 = arith.constant 0 : i32
    %c0_i32_0 = arith.constant 0 : i32
    %c0_i32_1 = arith.constant 0 : i32
    %c0_i32_2 = arith.constant 0 : i32
    return %arg0, %c0_i32, %c0_i32_0, %c0_i32_1 : i32, i32, i32, i32
  }
}

module attributes {stable_mosaic.version = 11 : i64} {
  func.func @_attn_lepe_kernel(%arg0: i32, %arg1: memref<4x8x4xf32, #tpu.memory_space<vmem>>, %arg2: memref<4x8x4xf32, #tpu.memory_space<vmem>>, %arg3: memref<4x8x4xf32, #tpu.memory_space<vmem>>, %arg4: memref<9x4xf32, #tpu.memory_space<vmem>>, %arg5: memref<1x4xf32, #tpu.memory_space<vmem>>, %arg6: memref<4x8x4xf32, #tpu.memory_space<vmem>>, %arg7: memref<4x1x8x8xf32, #tpu.memory_space<vmem>>, %arg8: memref<4x8x4xf32, #tpu.memory_space<vmem>>) attributes {dimension_semantics = [#tpu.dimension_semantics<parallel>], iteration_bounds = array<i64: 1>, scalar_prefetch = 0 : i64, scratch_operands = 1 : i64, tpu.core_type = #tpu.core_type<tc>, window_params = [{transform_indices = @transform_0, window_bounds = array<i64: 4, 8, 4>}, {transform_indices = @transform_1, window_bounds = array<i64: 4, 8, 4>}, {transform_indices = @transform_2, window_bounds = array<i64: 4, 8, 4>}, {pipeline_mode = #tpu.pipeline_mode<synchronous>, transform_indices = @transform_3, window_bounds = array<i64: 9, 4>}, {pipeline_mode = #tpu.pipeline_mode<synchronous>, transform_indices = @transform_4, window_bounds = array<i64: 1, 4>}, {transform_indices = @transform_5, window_bounds = array<i64: 4, 8, 4>}, {transform_indices = @transform_6, window_bounds = array<i64: 4, 1, 8, 8>}]} {
    %c0 = arith.constant 0 : index
    %c0_0 = arith.constant 0 : index
    %c0_1 = arith.constant 0 : index
    %0 = vector.load %arg3[%c0, %c0_0, %c0_1] : memref<4x8x4xf32, #tpu.memory_space<vmem>>, vector<4x8x4xf32>
    %c0_2 = arith.constant 0 : index
    %c0_3 = arith.constant 0 : index
    %1 = vector.load %arg4[%c0_2, %c0_3] : memref<9x4xf32, #tpu.memory_space<vmem>>, vector<9x4xf32>
    %cst = arith.constant 0.000000e+00 : f32
    %2 = vector.broadcast %cst : f32 to vector<4x8x4xf32>
    %c0_4 = arith.constant 0 : index
    %c0_5 = arith.constant 0 : index
    %c0_6 = arith.constant 0 : index
    %3 = vector.load %arg8[%c0_4, %c0_5, %c0_6] : memref<4x8x4xf32, #tpu.memory_space<vmem>>, vector<4x8x4xf32>
    tpu.vector_store %arg8[%c0_4, %c0_5, %c0_6], %2 {strides = array<i32>} : memref<4x8x4xf32, #tpu.memory_space<vmem>>, vector<4x8x4xf32>,
    %4 = vector.extract_strided_slice %1 {offsets = [0, 0], sizes = [1, 4], strides = [1, 1]} : vector<9x4xf32> to vector<1x4xf32>
    %5 = vector.shape_cast %4 : vector<1x4xf32> to vector<4xf32>
    %6 = vector.extract_strided_slice %0 {offsets = [0, 0, 0], sizes = [4, 5, 4], strides = [1, 1, 1]} : vector<4x8x4xf32> to vector<4x5x4xf32>
    %7 = vector.shape_cast %5 : vector<4xf32> to vector<1x1x4xf32>
    %8 = vector.broadcast %7 : vector<1x1x4xf32> to vector<4x5x4xf32>
    %9 = arith.mulf %6, %8 : vector<4x5x4xf32>
    %10 = tpu.iota {dimensions = array<i32: 1>} : vector<1x5x1xi32>
    %c3_i32 = arith.constant 3 : i32
    %11 = vector.broadcast %c3_i32 : i32 to vector<1x5x1xi32>
    %12 = arith.addi %11, %10 : vector<1x5x1xi32>
    %c2_i32 = arith.constant 2 : i32
    %c0_i32 = arith.constant 0 : i32
    %13 = arith.cmpi eq, %c2_i32, %c0_i32 : i32
    %c1_i32 = arith.constant 1 : i32
    %14 = arith.select %13, %c1_i32, %c2_i32 : i32
    %15 = vector.broadcast %14 : i32 to vector<1x5x1xi32>
    %16 = arith.remsi %12, %15 : vector<1x5x1xi32>
    %c0_i32_7 = arith.constant 0 : i32
    %17 = vector.broadcast %c0_i32_7 : i32 to vector<1x5x1xi32>
    %18 = arith.cmpi ne, %16, %17 : vector<1x5x1xi32>
    %c0_i32_8 = arith.constant 0 : i32
    %19 = vector.broadcast %c0_i32_8 : i32 to vector<1x5x1xi32>
    %20 = arith.cmpi slt, %16, %19 : vector<1x5x1xi32>
    %c0_i32_9 = arith.constant 0 : i32
    %21 = arith.cmpi slt, %14, %c0_i32_9 : i32
    %22 = vector.broadcast %21 : i1 to vector<1x5x1xi1>
    %23 = vector.broadcast %22 : vector<1x5x1xi1> to vector<1x5x1xi1>
    %24 = arith.xori %20, %23 : vector<1x5x1xi1>
    %25 = arith.andi %24, %18 : vector<1x5x1xi1>
    %26 = vector.broadcast %14 : i32 to vector<1x5x1xi32>
    %27 = arith.addi %16, %26 : vector<1x5x1xi32>
    %28 = arith.select %25, %27, %16 : vector<1x5x1xi1>, vector<1x5x1xi32>
    %c-1_i32 = arith.constant -1 : i32
    %29 = vector.broadcast %c-1_i32 : i32 to vector<1x5x1xi32>
    %30 = arith.addi %28, %29 : vector<1x5x1xi32>
    %c0_i32_10 = arith.constant 0 : i32
    %31 = vector.broadcast %c0_i32_10 : i32 to vector<1x5x1xi32>
    %32 = arith.cmpi sge, %30, %31 : vector<1x5x1xi32>
    %c-1_i32_11 = arith.constant -1 : i32
    %33 = vector.broadcast %c-1_i32_11 : i32 to vector<1x5x1xi32>
    %34 = arith.addi %28, %33 : vector<1x5x1xi32>
    %c2_i32_12 = arith.constant 2 : i32
    %35 = vector.broadcast %c2_i32_12 : i32 to vector<1x5x1xi32>
    %36 = arith.cmpi slt, %34, %35 : vector<1x5x1xi32>
    %37 = arith.andi %32, %36 : vector<1x5x1xi1>
    %cst_13 = arith.constant 0.000000e+00 : f32
    %38 = vector.shape_cast %37 : vector<1x5x1xi1> to vector<1x5x1xi1>
    %39 = vector.broadcast %38 : vector<1x5x1xi1> to vector<4x5x4xi1>
    %40 = vector.broadcast %cst_13 : f32 to vector<4x5x4xf32>
    %41 = arith.select %39, %9, %40 : vector<4x5x4xi1>, vector<4x5x4xf32>
    %c0_14 = arith.constant 0 : index
    %c3 = arith.constant 3 : index
    %c0_15 = arith.constant 0 : index
    %42 = vector.load %arg8[%c0_14, %c3, %c0_15] : memref<4x8x4xf32, #tpu.memory_space<vmem>>, vector<4x5x4xf32>
    %43 = arith.addf %42, %41 : vector<4x5x4xf32>
    %c0_16 = arith.constant 0 : index
    %c3_17 = arith.constant 3 : index
    %c0_18 = arith.constant 0 : index
    %44 = vector.load %arg8[%c0_16, %c3_17, %c0_18] : memref<4x8x4xf32, #tpu.memory_space<vmem>>, vector<4x5x4xf32>
    tpu.vector_store %arg8[%c0_16, %c3_17, %c0_18], %43 {strides = array<i32>} : memref<4x8x4xf32, #tpu.memory_space<vmem>>, vector<4x5x4xf32>,
    %45 = vector.extract_strided_slice %1 {offsets = [1, 0], sizes = [1, 4], strides = [1, 1]} : vector<9x4xf32> to vector<1x4xf32>
    %46 = vector.shape_cast %45 : vector<1x4xf32> to vector<4xf32>
    %47 = vector.extract_strided_slice %0 {offsets = [0, 0, 0], sizes = [4, 6, 4], strides = [1, 1, 1]} : vector<4x8x4xf32> to vector<4x6x4xf32>
    %48 = vector.shape_cast %46 : vector<4xf32> to vector<1x1x4xf32>
    %49 = vector.broadcast %48 : vector<1x1x4xf32> to vector<4x6x4xf32>
    %50 = arith.mulf %47, %49 : vector<4x6x4xf32>
    %c0_19 = arith.constant 0 : index
    %c2 = arith.constant 2 : index
    %c0_20 = arith.constant 0 : index
    %51 = vector.load %arg8[%c0_19, %c2, %c0_20] : memref<4x8x4xf32, #tpu.memory_space<vmem>>, vector<4x6x4xf32>
    %52 = arith.addf %51, %50 : vector<4x6x4xf32>
    %c0_21 = arith.constant 0 : index
    %c2_22 = arith.constant 2 : index
    %c0_23 = arith.constant 0 : index
    %53 = vector.load %arg8[%c0_21, %c2_22, %c0_23] : memref<4x8x4xf32, #tpu.memory_space<vmem>>, vector<4x6x4xf32>
    tpu.vector_store %arg8[%c0_21, %c2_22, %c0_23], %52 {strides = array<i32>} : memref<4x8x4xf32, #tpu.memory_space<vmem>>, vector<4x6x4xf32>,
    %54 = vector.extract_strided_slice %1 {offsets = [2, 0], sizes = [1, 4], strides = [1, 1]} : vector<9x4xf32> to vector<1x4xf32>
    %55 = vector.shape_cast %54 : vector<1x4xf32> to vector<4xf32>
    %56 = vector.extract_strided_slice %0 {offsets = [0, 0, 0], sizes = [4, 7, 4], strides = [1, 1, 1]} : vector<4x8x4xf32> to vector<4x7x4xf32>
    %57 = vector.shape_cast %55 : vector<4xf32> to vector<1x1x4xf32>
    %58 = vector.broadcast %57 : vector<1x1x4xf32> to vector<4x7x4xf32>
    %59 = arith.mulf %56, %58 : vector<4x7x4xf32>
    %60 = tpu.iota {dimensions = array<i32: 1>} : vector<1x7x1xi32>
    %c1_i32_24 = arith.constant 1 : i32
    %61 = vector.broadcast %c1_i32_24 : i32 to vector<1x7x1xi32>
    %62 = arith.addi %61, %60 : vector<1x7x1xi32>
    %c2_i32_25 = arith.constant 2 : i32
    %c0_i32_26 = arith.constant 0 : i32
    %63 = arith.cmpi eq, %c2_i32_25, %c0_i32_26 : i32
    %c1_i32_27 = arith.constant 1 : i32
    %64 = arith.select %63, %c1_i32_27, %c2_i32_25 : i32
    %65 = vector.broadcast %64 : i32 to vector<1x7x1xi32>
    %66 = arith.remsi %62, %65 : vector<1x7x1xi32>
    %c0_i32_28 = arith.constant 0 : i32
    %67 = vector.broadcast %c0_i32_28 : i32 to vector<1x7x1xi32>
    %68 = arith.cmpi ne, %66, %67 : vector<1x7x1xi32>
    %c0_i32_29 = arith.constant 0 : i32
    %69 = vector.broadcast %c0_i32_29 : i32 to vector<1x7x1xi32>
    %70 = arith.cmpi slt, %66, %69 : vector<1x7x1xi32>
    %c0_i32_30 = arith.constant 0 : i32
    %71 = arith.cmpi slt, %64, %c0_i32_30 : i32
    %72 = vector.broadcast %71 : i1 to vector<1x7x1xi1>
    %73 = vector.broadcast %72 : vector<1x7x1xi1> to vector<1x7x1xi1>
    %74 = arith.xori %70, %73 : vector<1x7x1xi1>
    %75 = arith.andi %74, %68 : vector<1x7x1xi1>
    %76 = vector.broadcast %64 : i32 to vector<1x7x1xi32>
    %77 = arith.addi %66, %76 : vector<1x7x1xi32>
    %78 = arith.select %75, %77, %66 : vector<1x7x1xi1>, vector<1x7x1xi32>
    %c1_i32_31 = arith.constant 1 : i32
    %79 = vector.broadcast %c1_i32_31 : i32 to vector<1x7x1xi32>
    %80 = arith.addi %78, %79 : vector<1x7x1xi32>
    %c0_i32_32 = arith.constant 0 : i32
    %81 = vector.broadcast %c0_i32_32 : i32 to vector<1x7x1xi32>
    %82 = arith.cmpi sge, %80, %81 : vector<1x7x1xi32>
    %c1_i32_33 = arith.constant 1 : i32
    %83 = vector.broadcast %c1_i32_33 : i32 to vector<1x7x1xi32>
    %84 = arith.addi %78, %83 : vector<1x7x1xi32>
    %c2_i32_34 = arith.constant 2 : i32
    %85 = vector.broadcast %c2_i32_34 : i32 to vector<1x7x1xi32>
    %86 = arith.cmpi slt, %84, %85 : vector<1x7x1xi32>
    %87 = arith.andi %82, %86 : vector<1x7x1xi1>
    %cst_35 = arith.constant 0.000000e+00 : f32
    %88 = vector.shape_cast %87 : vector<1x7x1xi1> to vector<1x7x1xi1>
    %89 = vector.broadcast %88 : vector<1x7x1xi1> to vector<4x7x4xi1>
    %90 = vector.broadcast %cst_35 : f32 to vector<4x7x4xf32>
    %91 = arith.select %89, %59, %90 : vector<4x7x4xi1>, vector<4x7x4xf32>
    %c0_36 = arith.constant 0 : index
    %c1 = arith.constant 1 : index
    %c0_37 = arith.constant 0 : index
    %92 = vector.load %arg8[%c0_36, %c1, %c0_37] : memref<4x8x4xf32, #tpu.memory_space<vmem>>, vector<4x7x4xf32>
    %93 = arith.addf %92, %91 : vector<4x7x4xf32>
    %c0_38 = arith.constant 0 : index
    %c1_39 = arith.constant 1 : index
    %c0_40 = arith.constant 0 : index
    %94 = vector.load %arg8[%c0_38, %c1_39, %c0_40] : memref<4x8x4xf32, #tpu.memory_space<vmem>>, vector<4x7x4xf32>
    tpu.vector_store %arg8[%c0_38, %c1_39, %c0_40], %93 {strides = array<i32>} : memref<4x8x4xf32, #tpu.memory_space<vmem>>, vector<4x7x4xf32>,
    %95 = vector.extract_strided_slice %1 {offsets = [3, 0], sizes = [1, 4], strides = [1, 1]} : vector<9x4xf32> to vector<1x4xf32>
    %96 = vector.shape_cast %95 : vector<1x4xf32> to vector<4xf32>
    %97 = vector.extract_strided_slice %0 {offsets = [0, 0, 0], sizes = [4, 7, 4], strides = [1, 1, 1]} : vector<4x8x4xf32> to vector<4x7x4xf32>
    %98 = vector.shape_cast %96 : vector<4xf32> to vector<1x1x4xf32>
    %99 = vector.broadcast %98 : vector<1x1x4xf32> to vector<4x7x4xf32>
    %100 = arith.mulf %97, %99 : vector<4x7x4xf32>
    %101 = tpu.iota {dimensions = array<i32: 1>} : vector<1x7x1xi32>
    %c1_i32_41 = arith.constant 1 : i32
    %102 = vector.broadcast %c1_i32_41 : i32 to vector<1x7x1xi32>
    %103 = arith.addi %102, %101 : vector<1x7x1xi32>
    %c2_i32_42 = arith.constant 2 : i32
    %c0_i32_43 = arith.constant 0 : i32
    %104 = arith.cmpi eq, %c2_i32_42, %c0_i32_43 : i32
    %c1_i32_44 = arith.constant 1 : i32
    %105 = arith.select %104, %c1_i32_44, %c2_i32_42 : i32
    %106 = vector.broadcast %105 : i32 to vector<1x7x1xi32>
    %107 = arith.remsi %103, %106 : vector<1x7x1xi32>
    %c0_i32_45 = arith.constant 0 : i32
    %108 = vector.broadcast %c0_i32_45 : i32 to vector<1x7x1xi32>
    %109 = arith.cmpi ne, %107, %108 : vector<1x7x1xi32>
    %c0_i32_46 = arith.constant 0 : i32
    %110 = vector.broadcast %c0_i32_46 : i32 to vector<1x7x1xi32>
    %111 = arith.cmpi slt, %107, %110 : vector<1x7x1xi32>
    %c0_i32_47 = arith.constant 0 : i32
    %112 = arith.cmpi slt, %105, %c0_i32_47 : i32
    %113 = vector.broadcast %112 : i1 to vector<1x7x1xi1>
    %114 = vector.broadcast %113 : vector<1x7x1xi1> to vector<1x7x1xi1>
    %115 = arith.xori %111, %114 : vector<1x7x1xi1>
    %116 = arith.andi %115, %109 : vector<1x7x1xi1>
    %117 = vector.broadcast %105 : i32 to vector<1x7x1xi32>
    %118 = arith.addi %107, %117 : vector<1x7x1xi32>
    %119 = arith.select %116, %118, %107 : vector<1x7x1xi1>, vector<1x7x1xi32>
    %c-1_i32_48 = arith.constant -1 : i32
    %120 = vector.broadcast %c-1_i32_48 : i32 to vector<1x7x1xi32>
    %121 = arith.addi %119, %120 : vector<1x7x1xi32>
    %c0_i32_49 = arith.constant 0 : i32
    %122 = vector.broadcast %c0_i32_49 : i32 to vector<1x7x1xi32>
    %123 = arith.cmpi sge, %121, %122 : vector<1x7x1xi32>
    %c-1_i32_50 = arith.constant -1 : i32
    %124 = vector.broadcast %c-1_i32_50 : i32 to vector<1x7x1xi32>
    %125 = arith.addi %119, %124 : vector<1x7x1xi32>
    %c2_i32_51 = arith.constant 2 : i32
    %126 = vector.broadcast %c2_i32_51 : i32 to vector<1x7x1xi32>
    %127 = arith.cmpi slt, %125, %126 : vector<1x7x1xi32>
    %128 = arith.andi %123, %127 : vector<1x7x1xi1>
    %cst_52 = arith.constant 0.000000e+00 : f32
    %129 = vector.shape_cast %128 : vector<1x7x1xi1> to vector<1x7x1xi1>
    %130 = vector.broadcast %129 : vector<1x7x1xi1> to vector<4x7x4xi1>
    %131 = vector.broadcast %cst_52 : f32 to vector<4x7x4xf32>
    %132 = arith.select %130, %100, %131 : vector<4x7x4xi1>, vector<4x7x4xf32>
    %c0_53 = arith.constant 0 : index
    %c1_54 = arith.constant 1 : index
    %c0_55 = arith.constant 0 : index
    %133 = vector.load %arg8[%c0_53, %c1_54, %c0_55] : memref<4x8x4xf32, #tpu.memory_space<vmem>>, vector<4x7x4xf32>
    %134 = arith.addf %133, %132 : vector<4x7x4xf32>
    %c0_56 = arith.constant 0 : index
    %c1_57 = arith.constant 1 : index
    %c0_58 = arith.constant 0 : index
    %135 = vector.load %arg8[%c0_56, %c1_57, %c0_58] : memref<4x8x4xf32, #tpu.memory_space<vmem>>, vector<4x7x4xf32>
    tpu.vector_store %arg8[%c0_56, %c1_57, %c0_58], %134 {strides = array<i32>} : memref<4x8x4xf32, #tpu.memory_space<vmem>>, vector<4x7x4xf32>,
    %136 = vector.extract_strided_slice %1 {offsets = [4, 0], sizes = [1, 4], strides = [1, 1]} : vector<9x4xf32> to vector<1x4xf32>
    %137 = vector.shape_cast %136 : vector<1x4xf32> to vector<4xf32>
    %138 = vector.shape_cast %137 : vector<4xf32> to vector<1x1x4xf32>
    %139 = vector.broadcast %138 : vector<1x1x4xf32> to vector<4x8x4xf32>
    %140 = arith.mulf %0, %139 : vector<4x8x4xf32>
    %c0_59 = arith.constant 0 : index
    %c0_60 = arith.constant 0 : index
    %c0_61 = arith.constant 0 : index
    %141 = vector.load %arg8[%c0_59, %c0_60, %c0_61] : memref<4x8x4xf32, #tpu.memory_space<vmem>>, vector<4x8x4xf32>
    %142 = arith.addf %141, %140 : vector<4x8x4xf32>
    %c0_62 = arith.constant 0 : index
    %c0_63 = arith.constant 0 : index
    %c0_64 = arith.constant 0 : index
    %143 = vector.load %arg8[%c0_62, %c0_63, %c0_64] : memref<4x8x4xf32, #tpu.memory_space<vmem>>, vector<4x8x4xf32>
    tpu.vector_store %arg8[%c0_62, %c0_63, %c0_64], %142 {strides = array<i32>} : memref<4x8x4xf32, #tpu.memory_space<vmem>>, vector<4x8x4xf32>,
    %144 = vector.extract_strided_slice %1 {offsets = [5, 0], sizes = [1, 4], strides = [1, 1]} : vector<9x4xf32> to vector<1x4xf32>
    %145 = vector.shape_cast %144 : vector<1x4xf32> to vector<4xf32>
    %146 = vector.extract_strided_slice %0 {offsets = [0, 1, 0], sizes = [4, 7, 4], strides = [1, 1, 1]} : vector<4x8x4xf32> to vector<4x7x4xf32>
    %147 = vector.shape_cast %145 : vector<4xf32> to vector<1x1x4xf32>
    %148 = vector.broadcast %147 : vector<1x1x4xf32> to vector<4x7x4xf32>
    %149 = arith.mulf %146, %148 : vector<4x7x4xf32>
    %150 = tpu.iota {dimensions = array<i32: 1>} : vector<1x7x1xi32>
    %c0_i32_65 = arith.constant 0 : i32
    %151 = vector.broadcast %c0_i32_65 : i32 to vector<1x7x1xi32>
    %152 = arith.addi %151, %150 : vector<1x7x1xi32>
    %c2_i32_66 = arith.constant 2 : i32
    %c0_i32_67 = arith.constant 0 : i32
    %153 = arith.cmpi eq, %c2_i32_66, %c0_i32_67 : i32
    %c1_i32_68 = arith.constant 1 : i32
    %154 = arith.select %153, %c1_i32_68, %c2_i32_66 : i32
    %155 = vector.broadcast %154 : i32 to vector<1x7x1xi32>
    %156 = arith.remsi %152, %155 : vector<1x7x1xi32>
    %c0_i32_69 = arith.constant 0 : i32
    %157 = vector.broadcast %c0_i32_69 : i32 to vector<1x7x1xi32>
    %158 = arith.cmpi ne, %156, %157 : vector<1x7x1xi32>
    %c0_i32_70 = arith.constant 0 : i32
    %159 = vector.broadcast %c0_i32_70 : i32 to vector<1x7x1xi32>
    %160 = arith.cmpi slt, %156, %159 : vector<1x7x1xi32>
    %c0_i32_71 = arith.constant 0 : i32
    %161 = arith.cmpi slt, %154, %c0_i32_71 : i32
    %162 = vector.broadcast %161 : i1 to vector<1x7x1xi1>
    %163 = vector.broadcast %162 : vector<1x7x1xi1> to vector<1x7x1xi1>
    %164 = arith.xori %160, %163 : vector<1x7x1xi1>
    %165 = arith.andi %164, %158 : vector<1x7x1xi1>
    %166 = vector.broadcast %154 : i32 to vector<1x7x1xi32>
    %167 = arith.addi %156, %166 : vector<1x7x1xi32>
    %168 = arith.select %165, %167, %156 : vector<1x7x1xi1>, vector<1x7x1xi32>
    %c1_i32_72 = arith.constant 1 : i32
    %169 = vector.broadcast %c1_i32_72 : i32 to vector<1x7x1xi32>
    %170 = arith.addi %168, %169 : vector<1x7x1xi32>
    %c0_i32_73 = arith.constant 0 : i32
    %171 = vector.broadcast %c0_i32_73 : i32 to vector<1x7x1xi32>
    %172 = arith.cmpi sge, %170, %171 : vector<1x7x1xi32>
    %c1_i32_74 = arith.constant 1 : i32
    %173 = vector.broadcast %c1_i32_74 : i32 to vector<1x7x1xi32>
    %174 = arith.addi %168, %173 : vector<1x7x1xi32>
    %c2_i32_75 = arith.constant 2 : i32
    %175 = vector.broadcast %c2_i32_75 : i32 to vector<1x7x1xi32>
    %176 = arith.cmpi slt, %174, %175 : vector<1x7x1xi32>
    %177 = arith.andi %172, %176 : vector<1x7x1xi1>
    %cst_76 = arith.constant 0.000000e+00 : f32
    %178 = vector.shape_cast %177 : vector<1x7x1xi1> to vector<1x7x1xi1>
    %179 = vector.broadcast %178 : vector<1x7x1xi1> to vector<4x7x4xi1>
    %180 = vector.broadcast %cst_76 : f32 to vector<4x7x4xf32>
    %181 = arith.select %179, %149, %180 : vector<4x7x4xi1>, vector<4x7x4xf32>
    %c0_77 = arith.constant 0 : index
    %c0_78 = arith.constant 0 : index
    %c0_79 = arith.constant 0 : index
    %182 = vector.load %arg8[%c0_77, %c0_78, %c0_79] : memref<4x8x4xf32, #tpu.memory_space<vmem>>, vector<4x7x4xf32>
    %183 = arith.addf %182, %181 : vector<4x7x4xf32>
    %c0_80 = arith.constant 0 : index
    %c0_81 = arith.constant 0 : index
    %c0_82 = arith.constant 0 : index
    %184 = vector.load %arg8[%c0_80, %c0_81, %c0_82] : memref<4x8x4xf32, #tpu.memory_space<vmem>>, vector<4x7x4xf32>
    tpu.vector_store %arg8[%c0_80, %c0_81, %c0_82], %183 {strides = array<i32>} : memref<4x8x4xf32, #tpu.memory_space<vmem>>, vector<4x7x4xf32>,
    %185 = vector.extract_strided_slice %1 {offsets = [6, 0], sizes = [1, 4], strides = [1, 1]} : vector<9x4xf32> to vector<1x4xf32>
    %186 = vector.shape_cast %185 : vector<1x4xf32> to vector<4xf32>
    %187 = vector.extract_strided_slice %0 {offsets = [0, 1, 0], sizes = [4, 7, 4], strides = [1, 1, 1]} : vector<4x8x4xf32> to vector<4x7x4xf32>
    %188 = vector.shape_cast %186 : vector<4xf32> to vector<1x1x4xf32>
    %189 = vector.broadcast %188 : vector<1x1x4xf32> to vector<4x7x4xf32>
    %190 = arith.mulf %187, %189 : vector<4x7x4xf32>
    %191 = tpu.iota {dimensions = array<i32: 1>} : vector<1x7x1xi32>
    %c0_i32_83 = arith.constant 0 : i32
    %192 = vector.broadcast %c0_i32_83 : i32 to vector<1x7x1xi32>
    %193 = arith.addi %192, %191 : vector<1x7x1xi32>
    %c2_i32_84 = arith.constant 2 : i32
    %c0_i32_85 = arith.constant 0 : i32
    %194 = arith.cmpi eq, %c2_i32_84, %c0_i32_85 : i32
    %c1_i32_86 = arith.constant 1 : i32
    %195 = arith.select %194, %c1_i32_86, %c2_i32_84 : i32
    %196 = vector.broadcast %195 : i32 to vector<1x7x1xi32>
    %197 = arith.remsi %193, %196 : vector<1x7x1xi32>
    %c0_i32_87 = arith.constant 0 : i32
    %198 = vector.broadcast %c0_i32_87 : i32 to vector<1x7x1xi32>
    %199 = arith.cmpi ne, %197, %198 : vector<1x7x1xi32>
    %c0_i32_88 = arith.constant 0 : i32
    %200 = vector.broadcast %c0_i32_88 : i32 to vector<1x7x1xi32>
    %201 = arith.cmpi slt, %197, %200 : vector<1x7x1xi32>
    %c0_i32_89 = arith.constant 0 : i32
    %202 = arith.cmpi slt, %195, %c0_i32_89 : i32
    %203 = vector.broadcast %202 : i1 to vector<1x7x1xi1>
    %204 = vector.broadcast %203 : vector<1x7x1xi1> to vector<1x7x1xi1>
    %205 = arith.xori %201, %204 : vector<1x7x1xi1>
    %206 = arith.andi %205, %199 : vector<1x7x1xi1>
    %207 = vector.broadcast %195 : i32 to vector<1x7x1xi32>
    %208 = arith.addi %197, %207 : vector<1x7x1xi32>
    %209 = arith.select %206, %208, %197 : vector<1x7x1xi1>, vector<1x7x1xi32>
    %c-1_i32_90 = arith.constant -1 : i32
    %210 = vector.broadcast %c-1_i32_90 : i32 to vector<1x7x1xi32>
    %211 = arith.addi %209, %210 : vector<1x7x1xi32>
    %c0_i32_91 = arith.constant 0 : i32
    %212 = vector.broadcast %c0_i32_91 : i32 to vector<1x7x1xi32>
    %213 = arith.cmpi sge, %211, %212 : vector<1x7x1xi32>
    %c-1_i32_92 = arith.constant -1 : i32
    %214 = vector.broadcast %c-1_i32_92 : i32 to vector<1x7x1xi32>
    %215 = arith.addi %209, %214 : vector<1x7x1xi32>
    %c2_i32_93 = arith.constant 2 : i32
    %216 = vector.broadcast %c2_i32_93 : i32 to vector<1x7x1xi32>
    %217 = arith.cmpi slt, %215, %216 : vector<1x7x1xi32>
    %218 = arith.andi %213, %217 : vector<1x7x1xi1>
    %cst_94 = arith.constant 0.000000e+00 : f32
    %219 = vector.shape_cast %218 : vector<1x7x1xi1> to vector<1x7x1xi1>
    %220 = vector.broadcast %219 : vector<1x7x1xi1> to vector<4x7x4xi1>
    %221 = vector.broadcast %cst_94 : f32 to vector<4x7x4xf32>
    %222 = arith.select %220, %190, %221 : vector<4x7x4xi1>, vector<4x7x4xf32>
    %c0_95 = arith.constant 0 : index
    %c0_96 = arith.constant 0 : index
    %c0_97 = arith.constant 0 : index
    %223 = vector.load %arg8[%c0_95, %c0_96, %c0_97] : memref<4x8x4xf32, #tpu.memory_space<vmem>>, vector<4x7x4xf32>
    %224 = arith.addf %223, %222 : vector<4x7x4xf32>
    %c0_98 = arith.constant 0 : index
    %c0_99 = arith.constant 0 : index
    %c0_100 = arith.constant 0 : index
    %225 = vector.load %arg8[%c0_98, %c0_99, %c0_100] : memref<4x8x4xf32, #tpu.memory_space<vmem>>, vector<4x7x4xf32>
    tpu.vector_store %arg8[%c0_98, %c0_99, %c0_100], %224 {strides = array<i32>} : memref<4x8x4xf32, #tpu.memory_space<vmem>>, vector<4x7x4xf32>,
    %226 = vector.extract_strided_slice %1 {offsets = [7, 0], sizes = [1, 4], strides = [1, 1]} : vector<9x4xf32> to vector<1x4xf32>
    %227 = vector.shape_cast %226 : vector<1x4xf32> to vector<4xf32>
    %228 = vector.extract_strided_slice %0 {offsets = [0, 2, 0], sizes = [4, 6, 4], strides = [1, 1, 1]} : vector<4x8x4xf32> to vector<4x6x4xf32>
    %229 = vector.shape_cast %227 : vector<4xf32> to vector<1x1x4xf32>
    %230 = vector.broadcast %229 : vector<1x1x4xf32> to vector<4x6x4xf32>
    %231 = arith.mulf %228, %230 : vector<4x6x4xf32>
    %c0_101 = arith.constant 0 : index
    %c0_102 = arith.constant 0 : index
    %c0_103 = arith.constant 0 : index
    %232 = vector.load %arg8[%c0_101, %c0_102, %c0_103] : memref<4x8x4xf32, #tpu.memory_space<vmem>>, vector<4x6x4xf32>
    %233 = arith.addf %232, %231 : vector<4x6x4xf32>
    %c0_104 = arith.constant 0 : index
    %c0_105 = arith.constant 0 : index
    %c0_106 = arith.constant 0 : index
    %234 = vector.load %arg8[%c0_104, %c0_105, %c0_106] : memref<4x8x4xf32, #tpu.memory_space<vmem>>, vector<4x6x4xf32>
    tpu.vector_store %arg8[%c0_104, %c0_105, %c0_106], %233 {strides = array<i32>} : memref<4x8x4xf32, #tpu.memory_space<vmem>>, vector<4x6x4xf32>,
    %235 = vector.extract_strided_slice %1 {offsets = [8, 0], sizes = [1, 4], strides = [1, 1]} : vector<9x4xf32> to vector<1x4xf32>
    %236 = vector.shape_cast %235 : vector<1x4xf32> to vector<4xf32>
    %237 = vector.extract_strided_slice %0 {offsets = [0, 3, 0], sizes = [4, 5, 4], strides = [1, 1, 1]} : vector<4x8x4xf32> to vector<4x5x4xf32>
    %238 = vector.shape_cast %236 : vector<4xf32> to vector<1x1x4xf32>
    %239 = vector.broadcast %238 : vector<1x1x4xf32> to vector<4x5x4xf32>
    %240 = arith.mulf %237, %239 : vector<4x5x4xf32>
    %241 = tpu.iota {dimensions = array<i32: 1>} : vector<1x5x1xi32>
    %c0_i32_107 = arith.constant 0 : i32
    %242 = vector.broadcast %c0_i32_107 : i32 to vector<1x5x1xi32>
    %243 = arith.addi %242, %241 : vector<1x5x1xi32>
    %c2_i32_108 = arith.constant 2 : i32
    %c0_i32_109 = arith.constant 0 : i32
    %244 = arith.cmpi eq, %c2_i32_108, %c0_i32_109 : i32
    %c1_i32_110 = arith.constant 1 : i32
    %245 = arith.select %244, %c1_i32_110, %c2_i32_108 : i32
    %246 = vector.broadcast %245 : i32 to vector<1x5x1xi32>
    %247 = arith.remsi %243, %246 : vector<1x5x1xi32>
    %c0_i32_111 = arith.constant 0 : i32
    %248 = vector.broadcast %c0_i32_111 : i32 to vector<1x5x1xi32>
    %249 = arith.cmpi ne, %247, %248 : vector<1x5x1xi32>
    %c0_i32_112 = arith.constant 0 : i32
    %250 = vector.broadcast %c0_i32_112 : i32 to vector<1x5x1xi32>
    %251 = arith.cmpi slt, %247, %250 : vector<1x5x1xi32>
    %c0_i32_113 = arith.constant 0 : i32
    %252 = arith.cmpi slt, %245, %c0_i32_113 : i32
    %253 = vector.broadcast %252 : i1 to vector<1x5x1xi1>
    %254 = vector.broadcast %253 : vector<1x5x1xi1> to vector<1x5x1xi1>
    %255 = arith.xori %251, %254 : vector<1x5x1xi1>
    %256 = arith.andi %255, %249 : vector<1x5x1xi1>
    %257 = vector.broadcast %245 : i32 to vector<1x5x1xi32>
    %258 = arith.addi %247, %257 : vector<1x5x1xi32>
    %259 = arith.select %256, %258, %247 : vector<1x5x1xi1>, vector<1x5x1xi32>
    %c1_i32_114 = arith.constant 1 : i32
    %260 = vector.broadcast %c1_i32_114 : i32 to vector<1x5x1xi32>
    %261 = arith.addi %259, %260 : vector<1x5x1xi32>
    %c0_i32_115 = arith.constant 0 : i32
    %262 = vector.broadcast %c0_i32_115 : i32 to vector<1x5x1xi32>
    %263 = arith.cmpi sge, %261, %262 : vector<1x5x1xi32>
    %c1_i32_116 = arith.constant 1 : i32
    %264 = vector.broadcast %c1_i32_116 : i32 to vector<1x5x1xi32>
    %265 = arith.addi %259, %264 : vector<1x5x1xi32>
    %c2_i32_117 = arith.constant 2 : i32
    %266 = vector.broadcast %c2_i32_117 : i32 to vector<1x5x1xi32>
    %267 = arith.cmpi slt, %265, %266 : vector<1x5x1xi32>
    %268 = arith.andi %263, %267 : vector<1x5x1xi1>
    %cst_118 = arith.constant 0.000000e+00 : f32
    %269 = vector.shape_cast %268 : vector<1x5x1xi1> to vector<1x5x1xi1>
    %270 = vector.broadcast %269 : vector<1x5x1xi1> to vector<4x5x4xi1>
    %271 = vector.broadcast %cst_118 : f32 to vector<4x5x4xf32>
    %272 = arith.select %270, %240, %271 : vector<4x5x4xi1>, vector<4x5x4xf32>
    %c0_119 = arith.constant 0 : index
    %c0_120 = arith.constant 0 : index
    %c0_121 = arith.constant 0 : index
    %273 = vector.load %arg8[%c0_119, %c0_120, %c0_121] : memref<4x8x4xf32, #tpu.memory_space<vmem>>, vector<4x5x4xf32>
    %274 = arith.addf %273, %272 : vector<4x5x4xf32>
    %c0_122 = arith.constant 0 : index
    %c0_123 = arith.constant 0 : index
    %c0_124 = arith.constant 0 : index
    %275 = vector.load %arg8[%c0_122, %c0_123, %c0_124] : memref<4x8x4xf32, #tpu.memory_space<vmem>>, vector<4x5x4xf32>
    tpu.vector_store %arg8[%c0_122, %c0_123, %c0_124], %274 {strides = array<i32>} : memref<4x8x4xf32, #tpu.memory_space<vmem>>, vector<4x5x4xf32>,
    %c0_125 = arith.constant 0 : index
    %c0_126 = arith.constant 0 : index
    %c0_127 = arith.constant 0 : index
    %276 = vector.load %arg8[%c0_125, %c0_126, %c0_127] : memref<4x8x4xf32, #tpu.memory_space<vmem>>, vector<4x8x4xf32>
    %c0_128 = arith.constant 0 : index
    %c0_129 = arith.constant 0 : index
    %277 = vector.load %arg5[%c0_128, %c0_129] : memref<1x4xf32, #tpu.memory_space<vmem>>, vector<1x4xf32>
    %278 = vector.shape_cast %277 : vector<1x4xf32> to vector<1x1x4xf32>
    %279 = vector.broadcast %278 : vector<1x1x4xf32> to vector<4x8x4xf32>
    %280 = arith.addf %276, %279 : vector<4x8x4xf32>
    %c0_130 = arith.constant 0 : index
    %c0_131 = arith.constant 0 : index
    %c0_132 = arith.constant 0 : index
    %281 = vector.load %arg1[%c0_130, %c0_131, %c0_132] : memref<4x8x4xf32, #tpu.memory_space<vmem>>, vector<4x8x4xf32>
    %c0_133 = arith.constant 0 : index
    %c0_134 = arith.constant 0 : index
    %c0_135 = arith.constant 0 : index
    %282 = vector.load %arg2[%c0_133, %c0_134, %c0_135] : memref<4x8x4xf32, #tpu.memory_space<vmem>>, vector<4x8x4xf32>
    %283 = arith.truncf %281 : vector<4x8x4xf32> to vector<4x8x4xbf16>
    %284 = arith.truncf %282 : vector<4x8x4xf32> to vector<4x8x4xbf16>
    %285 = arith.truncf %0 : vector<4x8x4xf32> to vector<4x8x4xbf16>
    "tpu.trace_start"() <{level = 10 : i32, message = "bqd,bkd->bqk"}> : () -> ()
    %cst_136 = arith.constant dense<0.000000e+00> : vector<4x8x8xf32>
    %286 = tpu.matmul %283, %284, %cst_136 {dimension_numbers = #tpu.dot_dimension_numbers<[2], [2], [1], [1], [0, 0, 0, 1, 1, 1], [0], [0]>} : vector<4x8x4xbf16>, vector<4x8x4xbf16>, vector<4x8x8xf32> -> vector<4x8x8xf32>
    "tpu.trace_stop"() : () -> ()
    %cst_137 = arith.constant 5.000000e-01 : f32
    %287 = vector.broadcast %cst_137 : f32 to vector<4x8x8xf32>
    %288 = arith.mulf %286, %287 : vector<4x8x8xf32>
    %cst_138 = arith.constant dense<0xFF800000> : vector<4x8xf32>
    %289 = vector.multi_reduction <maximumf>, %288, %cst_138 [2] : vector<4x8x8xf32> to vector<4x8xf32>
    %290 = vector.shape_cast %289 : vector<4x8xf32> to vector<4x8x1xf32>
    %291 = vector.broadcast %290 : vector<4x8x1xf32> to vector<4x8x8xf32>
    %292 = arith.subf %288, %291 : vector<4x8x8xf32>
    %293 = math.exp %292 : vector<4x8x8xf32>
    %cst_139 = arith.constant dense<0.000000e+00> : vector<4x8xf32>
    %294 = vector.multi_reduction <add>, %293, %cst_139 [2] : vector<4x8x8xf32> to vector<4x8xf32>
    %295 = vector.shape_cast %294 : vector<4x8xf32> to vector<4x8x1xf32>
    %296 = tpu.reciprocal %295 {approx = true} : vector<4x8x1xf32> -> vector<4x8x1xf32>
    %297 = vector.broadcast %296 : vector<4x8x1xf32> to vector<4x8x8xf32>
    %298 = arith.mulf %293, %297 : vector<4x8x8xf32>
    %299 = vector.shape_cast %298 : vector<4x8x8xf32> to vector<4x1x8x8xf32>
    %c0_140 = arith.constant 0 : index
    %c0_141 = arith.constant 0 : index
    %c0_142 = arith.constant 0 : index
    %c0_143 = arith.constant 0 : index
    %300 = vector.load %arg7[%c0_140, %c0_141, %c0_142, %c0_143] : memref<4x1x8x8xf32, #tpu.memory_space<vmem>>, vector<4x1x8x8xf32>
    tpu.vector_store %arg7[%c0_140, %c0_141, %c0_142, %c0_143], %299 {strides = array<i32>} : memref<4x1x8x8xf32, #tpu.memory_space<vmem>>, vector<4x1x8x8xf32>,
    %301 = arith.truncf %298 : vector<4x8x8xf32> to vector<4x8x8xbf16>
    "tpu.trace_start"() <{level = 10 : i32, message = "bqk,bkd->bqd"}> : () -> ()
    %cst_144 = arith.constant dense<0.000000e+00> : vector<4x8x4xf32>
    %302 = tpu.matmul %301, %285, %cst_144 {dimension_numbers = #tpu.dot_dimension_numbers<[2], [1], [1], [2], [0, 0, 0, 1, 1, 2], [0], [0]>} : vector<4x8x8xbf16>, vector<4x8x4xbf16>, vector<4x8x4xf32> -> vector<4x8x4xf32>
    "tpu.trace_stop"() : () -> ()
    %303 = arith.addf %302, %280 : vector<4x8x4xf32>
    %c0_145 = arith.constant 0 : index
    %c0_146 = arith.constant 0 : index
    %c0_147 = arith.constant 0 : index
    %304 = vector.load %arg6[%c0_145, %c0_146, %c0_147] : memref<4x8x4xf32, #tpu.memory_space<vmem>>, vector<4x8x4xf32>
    tpu.vector_store %arg6[%c0_145, %c0_146, %c0_147], %303 {strides = array<i32>} : memref<4x8x4xf32, #tpu.memory_space<vmem>>, vector<4x8x4xf32>,
    return
  }
  func.func @transform_0(%arg0: i32) -> (i32, i32, i32) {
    %c0_i32 = arith.constant 0 : i32
    %c0_i32_0 = arith.constant 0 : i32
    %c0_i32_1 = arith.constant 0 : i32
    return %arg0, %c0_i32, %c0_i32_0 : i32, i32, i32
  }
  func.func @transform_1(%arg0: i32) -> (i32, i32, i32) {
    %c0_i32 = arith.constant 0 : i32
    %c0_i32_0 = arith.constant 0 : i32
    %c0_i32_1 = arith.constant 0 : i32
    return %arg0, %c0_i32, %c0_i32_0 : i32, i32, i32
  }
  func.func @transform_2(%arg0: i32) -> (i32, i32, i32) {
    %c0_i32 = arith.constant 0 : i32
    %c0_i32_0 = arith.constant 0 : i32
    %c0_i32_1 = arith.constant 0 : i32
    return %arg0, %c0_i32, %c0_i32_0 : i32, i32, i32
  }
  func.func @transform_3(%arg0: i32) -> (i32, i32) {
    %c0_i32 = arith.constant 0 : i32
    %c0_i32_0 = arith.constant 0 : i32
    %c0_i32_1 = arith.constant 0 : i32
    return %c0_i32, %c0_i32_0 : i32, i32
  }
  func.func @transform_4(%arg0: i32) -> (i32, i32) {
    %c0_i32 = arith.constant 0 : i32
    %c0_i32_0 = arith.constant 0 : i32
    %c0_i32_1 = arith.constant 0 : i32
    return %c0_i32, %c0_i32_0 : i32, i32
  }
  func.func @transform_5(%arg0: i32) -> (i32, i32, i32) {
    %c0_i32 = arith.constant 0 : i32
    %c0_i32_0 = arith.constant 0 : i32
    %c0_i32_1 = arith.constant 0 : i32
    return %arg0, %c0_i32, %c0_i32_0 : i32, i32, i32
  }
  func.func @transform_6(%arg0: i32) -> (i32, i32, i32, i32) {
    %c0_i32 = arith.constant 0 : i32
    %c0_i32_0 = arith.constant 0 : i32
    %c0_i32_1 = arith.constant 0 : i32
    %c0_i32_2 = arith.constant 0 : i32
    return %arg0, %c0_i32, %c0_i32_0, %c0_i32_1 : i32, i32, i32, i32
  }
}

module attributes {stable_mosaic.version = 11 : i64} {
  func.func @_fused_linear_kernel(%arg0: i32, %arg1: memref<32x4xf32, #tpu.memory_space<vmem>>, %arg2: memref<32x4xf32, #tpu.memory_space<vmem>>, %arg3: memref<4x8xbf16, #tpu.memory_space<vmem>>, %arg4: memref<4x8xbf16, #tpu.memory_space<vmem>>, %arg5: memref<1x8xf32, #tpu.memory_space<vmem>>, %arg6: memref<32x8xf32, #tpu.memory_space<vmem>>, %arg7: memref<32x8xf32, #tpu.memory_space<vmem>>) attributes {dimension_semantics = [#tpu.dimension_semantics<parallel>], iteration_bounds = array<i64: 1>, scalar_prefetch = 0 : i64, scratch_operands = 0 : i64, tpu.core_type = #tpu.core_type<tc>, window_params = [{transform_indices = @transform_0, window_bounds = array<i64: 32, 4>}, {transform_indices = @transform_1, window_bounds = array<i64: 32, 4>}, {pipeline_mode = #tpu.pipeline_mode<synchronous>, transform_indices = @transform_2, window_bounds = array<i64: 4, 8>}, {pipeline_mode = #tpu.pipeline_mode<synchronous>, transform_indices = @transform_3, window_bounds = array<i64: 4, 8>}, {pipeline_mode = #tpu.pipeline_mode<synchronous>, transform_indices = @transform_4, window_bounds = array<i64: 1, 8>}, {transform_indices = @transform_5, window_bounds = array<i64: 32, 8>}, {transform_indices = @transform_6, window_bounds = array<i64: 32, 8>}]} {
    %c0 = arith.constant 0 : index
    %c0_0 = arith.constant 0 : index
    %0 = vector.load %arg1[%c0, %c0_0] : memref<32x4xf32, #tpu.memory_space<vmem>>, vector<32x4xf32>
    %1 = arith.truncf %0 : vector<32x4xf32> to vector<32x4xbf16>
    %c0_1 = arith.constant 0 : index
    %c0_2 = arith.constant 0 : index
    %2 = vector.load %arg3[%c0_1, %c0_2] : memref<4x8xbf16, #tpu.memory_space<vmem>>, vector<4x8xbf16>
    %cst = arith.constant dense<0.000000e+00> : vector<32x8xf32>
    %3 = tpu.matmul %1, %2, %cst {dimension_numbers = #tpu.dot_dimension_numbers<[1], [0], [0], [1], [0, 0, 1, 1], [], []>} : vector<32x4xbf16>, vector<4x8xbf16>, vector<32x8xf32> -> vector<32x8xf32>
    %c0_3 = arith.constant 0 : index
    %c0_4 = arith.constant 0 : index
    %4 = vector.load %arg2[%c0_3, %c0_4] : memref<32x4xf32, #tpu.memory_space<vmem>>, vector<32x4xf32>
    %5 = arith.truncf %4 : vector<32x4xf32> to vector<32x4xbf16>
    %c0_5 = arith.constant 0 : index
    %c0_6 = arith.constant 0 : index
    %6 = vector.load %arg4[%c0_5, %c0_6] : memref<4x8xbf16, #tpu.memory_space<vmem>>, vector<4x8xbf16>
    %cst_7 = arith.constant dense<0.000000e+00> : vector<32x8xf32>
    %7 = tpu.matmul %5, %6, %cst_7 {dimension_numbers = #tpu.dot_dimension_numbers<[1], [0], [0], [1], [0, 0, 1, 1], [], []>} : vector<32x4xbf16>, vector<4x8xbf16>, vector<32x8xf32> -> vector<32x8xf32>
    %8 = arith.addf %3, %7 : vector<32x8xf32>
    %c0_8 = arith.constant 0 : index
    %c0_9 = arith.constant 0 : index
    %9 = vector.load %arg5[%c0_8, %c0_9] : memref<1x8xf32, #tpu.memory_space<vmem>>, vector<1x8xf32>
    %10 = vector.broadcast %9 : vector<1x8xf32> to vector<32x8xf32>
    %11 = arith.addf %8, %10 : vector<32x8xf32>
    %c0_10 = arith.constant 0 : index
    %c0_11 = arith.constant 0 : index
    %12 = vector.load %arg6[%c0_10, %c0_11] : memref<32x8xf32, #tpu.memory_space<vmem>>, vector<32x8xf32>
    %13 = arith.addf %11, %12 : vector<32x8xf32>
    %c0_12 = arith.constant 0 : index
    %c0_13 = arith.constant 0 : index
    %14 = vector.load %arg7[%c0_12, %c0_13] : memref<32x8xf32, #tpu.memory_space<vmem>>, vector<32x8xf32>
    tpu.vector_store %arg7[%c0_12, %c0_13], %13 {strides = array<i32>} : memref<32x8xf32, #tpu.memory_space<vmem>>, vector<32x8xf32>,
    return
  }
  func.func @transform_0(%arg0: i32) -> (i32, i32) {
    %c0_i32 = arith.constant 0 : i32
    %c0_i32_0 = arith.constant 0 : i32
    return %arg0, %c0_i32 : i32, i32
  }
  func.func @transform_1(%arg0: i32) -> (i32, i32) {
    %c0_i32 = arith.constant 0 : i32
    %c0_i32_0 = arith.constant 0 : i32
    return %arg0, %c0_i32 : i32, i32
  }
  func.func @transform_2(%arg0: i32) -> (i32, i32) {
    %c0_i32 = arith.constant 0 : i32
    %c0_i32_0 = arith.constant 0 : i32
    %c0_i32_1 = arith.constant 0 : i32
    return %c0_i32, %c0_i32_0 : i32, i32
  }
  func.func @transform_3(%arg0: i32) -> (i32, i32) {
    %c0_i32 = arith.constant 0 : i32
    %c0_i32_0 = arith.constant 0 : i32
    %c0_i32_1 = arith.constant 0 : i32
    return %c0_i32, %c0_i32_0 : i32, i32
  }
  func.func @transform_4(%arg0: i32) -> (i32, i32) {
    %c0_i32 = arith.constant 0 : i32
    %c0_i32_0 = arith.constant 0 : i32
    %c0_i32_1 = arith.constant 0 : i32
    return %c0_i32, %c0_i32_0 : i32, i32
  }
  func.func @transform_5(%arg0: i32) -> (i32, i32) {
    %c0_i32 = arith.constant 0 : i32
    %c0_i32_0 = arith.constant 0 : i32
    return %arg0, %c0_i32 : i32, i32
  }
  func.func @transform_6(%arg0: i32) -> (i32, i32) {
    %c0_i32 = arith.constant 0 : i32
    %c0_i32_0 = arith.constant 0 : i32
    return %arg0, %c0_i32 : i32, i32
  }
}

module attributes {stable_mosaic.version = 11 : i64} {
  func.func @_fused_linear_kernel(%arg0: i32, %arg1: memref<32x32xf32, #tpu.memory_space<vmem>>, %arg2: memref<32x8xbf16, #tpu.memory_space<vmem>>, %arg3: memref<1x8xf32, #tpu.memory_space<vmem>>, %arg4: memref<32x8xf32, #tpu.memory_space<vmem>>, %arg5: memref<32x8xf32, #tpu.memory_space<vmem>>) attributes {dimension_semantics = [#tpu.dimension_semantics<parallel>], iteration_bounds = array<i64: 1>, scalar_prefetch = 0 : i64, scratch_operands = 0 : i64, tpu.core_type = #tpu.core_type<tc>, window_params = [{transform_indices = @transform_0, window_bounds = array<i64: 32, 32>}, {pipeline_mode = #tpu.pipeline_mode<synchronous>, transform_indices = @transform_1, window_bounds = array<i64: 32, 8>}, {pipeline_mode = #tpu.pipeline_mode<synchronous>, transform_indices = @transform_2, window_bounds = array<i64: 1, 8>}, {transform_indices = @transform_3, window_bounds = array<i64: 32, 8>}, {transform_indices = @transform_4, window_bounds = array<i64: 32, 8>}]} {
    %c0 = arith.constant 0 : index
    %c0_0 = arith.constant 0 : index
    %0 = vector.load %arg1[%c0, %c0_0] : memref<32x32xf32, #tpu.memory_space<vmem>>, vector<32x32xf32>
    %1 = arith.truncf %0 : vector<32x32xf32> to vector<32x32xbf16>
    %c0_1 = arith.constant 0 : index
    %c0_2 = arith.constant 0 : index
    %2 = vector.load %arg2[%c0_1, %c0_2] : memref<32x8xbf16, #tpu.memory_space<vmem>>, vector<32x8xbf16>
    %cst = arith.constant dense<0.000000e+00> : vector<32x8xf32>
    %3 = tpu.matmul %1, %2, %cst {dimension_numbers = #tpu.dot_dimension_numbers<[1], [0], [0], [1], [0, 0, 1, 1], [], []>} : vector<32x32xbf16>, vector<32x8xbf16>, vector<32x8xf32> -> vector<32x8xf32>
    %c0_3 = arith.constant 0 : index
    %c0_4 = arith.constant 0 : index
    %4 = vector.load %arg3[%c0_3, %c0_4] : memref<1x8xf32, #tpu.memory_space<vmem>>, vector<1x8xf32>
    %5 = vector.broadcast %4 : vector<1x8xf32> to vector<32x8xf32>
    %6 = arith.addf %3, %5 : vector<32x8xf32>
    %c0_5 = arith.constant 0 : index
    %c0_6 = arith.constant 0 : index
    %7 = vector.load %arg4[%c0_5, %c0_6] : memref<32x8xf32, #tpu.memory_space<vmem>>, vector<32x8xf32>
    %8 = arith.addf %6, %7 : vector<32x8xf32>
    %c0_7 = arith.constant 0 : index
    %c0_8 = arith.constant 0 : index
    %9 = vector.load %arg5[%c0_7, %c0_8] : memref<32x8xf32, #tpu.memory_space<vmem>>, vector<32x8xf32>
    tpu.vector_store %arg5[%c0_7, %c0_8], %8 {strides = array<i32>} : memref<32x8xf32, #tpu.memory_space<vmem>>, vector<32x8xf32>,
    return
  }
  func.func @transform_0(%arg0: i32) -> (i32, i32) {
    %c0_i32 = arith.constant 0 : i32
    %c0_i32_0 = arith.constant 0 : i32
    return %arg0, %c0_i32 : i32, i32
  }
  func.func @transform_1(%arg0: i32) -> (i32, i32) {
    %c0_i32 = arith.constant 0 : i32
    %c0_i32_0 = arith.constant 0 : i32
    %c0_i32_1 = arith.constant 0 : i32
    return %c0_i32, %c0_i32_0 : i32, i32
  }
  func.func @transform_2(%arg0: i32) -> (i32, i32) {
    %c0_i32 = arith.constant 0 : i32
    %c0_i32_0 = arith.constant 0 : i32
    %c0_i32_1 = arith.constant 0 : i32
    return %c0_i32, %c0_i32_0 : i32, i32
  }
  func.func @transform_3(%arg0: i32) -> (i32, i32) {
    %c0_i32 = arith.constant 0 : i32
    %c0_i32_0 = arith.constant 0 : i32
    return %arg0, %c0_i32 : i32, i32
  }
  func.func @transform_4(%arg0: i32) -> (i32, i32) {
    %c0_i32 = arith.constant 0 : i32
    %c0_i32_0 = arith.constant 0 : i32
    return %arg0, %c0_i32 : i32, i32
  }
}

module attributes {stable_mosaic.version = 11 : i64} {
  func.func @_fused_linear_kernel(%arg0: i32, %arg1: memref<32x8xf32, #tpu.memory_space<vmem>>, %arg2: memref<1x8xf32, #tpu.memory_space<vmem>>, %arg3: memref<1x8xf32, #tpu.memory_space<vmem>>, %arg4: memref<8x32xbf16, #tpu.memory_space<vmem>>, %arg5: memref<1x32xf32, #tpu.memory_space<vmem>>, %arg6: memref<32x32xf32, #tpu.memory_space<vmem>>) attributes {dimension_semantics = [#tpu.dimension_semantics<parallel>], iteration_bounds = array<i64: 1>, scalar_prefetch = 0 : i64, scratch_operands = 0 : i64, tpu.core_type = #tpu.core_type<tc>, window_params = [{transform_indices = @transform_0, window_bounds = array<i64: 32, 8>}, {pipeline_mode = #tpu.pipeline_mode<synchronous>, transform_indices = @transform_1, window_bounds = array<i64: 1, 8>}, {pipeline_mode = #tpu.pipeline_mode<synchronous>, transform_indices = @transform_2, window_bounds = array<i64: 1, 8>}, {pipeline_mode = #tpu.pipeline_mode<synchronous>, transform_indices = @transform_3, window_bounds = array<i64: 8, 32>}, {pipeline_mode = #tpu.pipeline_mode<synchronous>, transform_indices = @transform_4, window_bounds = array<i64: 1, 32>}, {transform_indices = @transform_5, window_bounds = array<i64: 32, 32>}]} {
    %c0 = arith.constant 0 : index
    %c0_0 = arith.constant 0 : index
    %0 = vector.load %arg1[%c0, %c0_0] : memref<32x8xf32, #tpu.memory_space<vmem>>, vector<32x8xf32>
    %cst = arith.constant dense<0.000000e+00> : vector<32xf32>
    %1 = vector.multi_reduction <add>, %0, %cst [1] : vector<32x8xf32> to vector<32xf32>
    %2 = vector.shape_cast %1 : vector<32xf32> to vector<32x1xf32>
    %cst_1 = arith.constant 8.000000e+00 : f32
    %3 = vector.broadcast %cst_1 : f32 to vector<32x1xf32>
    %4 = arith.divf %2, %3 : vector<32x1xf32>
    %5 = vector.broadcast %4 : vector<32x1xf32> to vector<32x8xf32>
    %6 = arith.subf %0, %5 : vector<32x8xf32>
    %7 = arith.mulf %6, %6 : vector<32x8xf32>
    %cst_2 = arith.constant dense<0.000000e+00> : vector<32xf32>
    %8 = vector.multi_reduction <add>, %7, %cst_2 [1] : vector<32x8xf32> to vector<32xf32>
    %9 = vector.shape_cast %8 : vector<32xf32> to vector<32x1xf32>
    %cst_3 = arith.constant 8.000000e+00 : f32
    %10 = vector.broadcast %cst_3 : f32 to vector<32x1xf32>
    %11 = arith.divf %9, %10 : vector<32x1xf32>
    %12 = vector.broadcast %4 : vector<32x1xf32> to vector<32x8xf32>
    %13 = arith.subf %0, %12 : vector<32x8xf32>
    %cst_4 = arith.constant 9.99999974E-6 : f32
    %14 = vector.broadcast %cst_4 : f32 to vector<32x1xf32>
    %15 = arith.addf %11, %14 : vector<32x1xf32>
    %16 = math.rsqrt %15 : vector<32x1xf32>
    %17 = vector.broadcast %16 : vector<32x1xf32> to vector<32x8xf32>
    %18 = arith.mulf %13, %17 : vector<32x8xf32>
    %c0_5 = arith.constant 0 : index
    %c0_6 = arith.constant 0 : index
    %19 = vector.load %arg2[%c0_5, %c0_6] : memref<1x8xf32, #tpu.memory_space<vmem>>, vector<1x8xf32>
    %20 = vector.broadcast %19 : vector<1x8xf32> to vector<32x8xf32>
    %21 = arith.mulf %18, %20 : vector<32x8xf32>
    %c0_7 = arith.constant 0 : index
    %c0_8 = arith.constant 0 : index
    %22 = vector.load %arg3[%c0_7, %c0_8] : memref<1x8xf32, #tpu.memory_space<vmem>>, vector<1x8xf32>
    %23 = vector.broadcast %22 : vector<1x8xf32> to vector<32x8xf32>
    %24 = arith.addf %21, %23 : vector<32x8xf32>
    %25 = arith.truncf %24 : vector<32x8xf32> to vector<32x8xbf16>
    %c0_9 = arith.constant 0 : index
    %c0_10 = arith.constant 0 : index
    %26 = vector.load %arg4[%c0_9, %c0_10] : memref<8x32xbf16, #tpu.memory_space<vmem>>, vector<8x32xbf16>
    %cst_11 = arith.constant dense<0.000000e+00> : vector<32x32xf32>
    %27 = tpu.matmul %25, %26, %cst_11 {dimension_numbers = #tpu.dot_dimension_numbers<[1], [0], [0], [1], [0, 0, 1, 1], [], []>} : vector<32x8xbf16>, vector<8x32xbf16>, vector<32x32xf32> -> vector<32x32xf32>
    %c0_12 = arith.constant 0 : index
    %c0_13 = arith.constant 0 : index
    %28 = vector.load %arg5[%c0_12, %c0_13] : memref<1x32xf32, #tpu.memory_space<vmem>>, vector<1x32xf32>
    %29 = vector.broadcast %28 : vector<1x32xf32> to vector<32x32xf32>
    %30 = arith.addf %27, %29 : vector<32x32xf32>
    %cst_14 = arith.constant 5.000000e-01 : f32
    %31 = vector.broadcast %cst_14 : f32 to vector<32x32xf32>
    %32 = arith.mulf %31, %30 : vector<32x32xf32>
    %cst_15 = arith.constant 0.707106769 : f32
    %33 = vector.broadcast %cst_15 : f32 to vector<32x32xf32>
    %34 = arith.mulf %30, %33 : vector<32x32xf32>
    %35 = math.erf %34 : vector<32x32xf32>
    %cst_16 = arith.constant 1.000000e+00 : f32
    %36 = vector.broadcast %cst_16 : f32 to vector<32x32xf32>
    %37 = arith.addf %36, %35 : vector<32x32xf32>
    %38 = arith.mulf %32, %37 : vector<32x32xf32>
    %c0_17 = arith.constant 0 : index
    %c0_18 = arith.constant 0 : index
    %39 = vector.load %arg6[%c0_17, %c0_18] : memref<32x32xf32, #tpu.memory_space<vmem>>, vector<32x32xf32>
    tpu.vector_store %arg6[%c0_17, %c0_18], %38 {strides = array<i32>} : memref<32x32xf32, #tpu.memory_space<vmem>>, vector<32x32xf32>,
    return
  }
  func.func @transform_0(%arg0: i32) -> (i32, i32) {
    %c0_i32 = arith.constant 0 : i32
    %c0_i32_0 = arith.constant 0 : i32
    return %arg0, %c0_i32 : i32, i32
  }
  func.func @transform_1(%arg0: i32) -> (i32, i32) {
    %c0_i32 = arith.constant 0 : i32
    %c0_i32_0 = arith.constant 0 : i32
    %c0_i32_1 = arith.constant 0 : i32
    return %c0_i32, %c0_i32_0 : i32, i32
  }
  func.func @transform_2(%arg0: i32) -> (i32, i32) {
    %c0_i32 = arith.constant 0 : i32
    %c0_i32_0 = arith.constant 0 : i32
    %c0_i32_1 = arith.constant 0 : i32
    return %c0_i32, %c0_i32_0 : i32, i32
  }
  func.func @transform_3(%arg0: i32) -> (i32, i32) {
    %c0_i32 = arith.constant 0 : i32
    %c0_i32_0 = arith.constant 0 : i32
    %c0_i32_1 = arith.constant 0 : i32
    return %c0_i32, %c0_i32_0 : i32, i32
  }
  func.func @transform_4(%arg0: i32) -> (i32, i32) {
    %c0_i32 = arith.constant 0 : i32
    %c0_i32_0 = arith.constant 0 : i32
    %c0_i32_1 = arith.constant 0 : i32
    return %c0_i32, %c0_i32_0 : i32, i32
  }
  func.func @transform_5(%arg0: i32) -> (i32, i32) {
    %c0_i32 = arith.constant 0 : i32
    %c0_i32_0 = arith.constant 0 : i32
    return %arg0, %c0_i32 : i32, i32
  }
}

</mosaic_0001>

<bundles_post_ra>
// kernel: cswin_block_forward.9
= control target key start
LH: loop header
LB: loop body
LE: loop exit
PB: predicated region body
PF: predicated region fallthrough
CT: control target
= control target key end

     0   :  { %vm45_vm0 = vcmask 1041408   ;;  %vm38_vm1 = vcmask 31744   ;;  %vm175_vm2 = vcmask 64512   ;;  %s309_s3 = inlined_call_operand.vmem [shape: bf16[4,8], index: 3, kind: input, shape index: {}]   ;;  %s310_s2 = inlined_call_operand.vmem [shape: bf16[4,8], index: 2, kind: input, shape index: {}]   ;;  %s311_s1 = inlined_call_operand.vmem [shape: f32[32,4], index: 1, kind: input, shape index: {}]   ;;  %s312_s0 = inlined_call_operand.vmem [shape: f32[32,4], index: 0, kind: input, shape index: {}]   ;;  %s313_s4 = inlined_call_operand.vmem [shape: f32[1,8], index: 4, kind: input, shape index: {}]   ;;  %s314_s5 = inlined_call_operand.vmem [shape: f32[32,8], index: 5, kind: input, shape index: {}]   ;;  %s315_s6 = inlined_call_operand.vmem [shape: f32[32,8], index: 6, kind: output, shape index: {}]  }
   0x1   :  { %v37_v0 = vld [vmem:[%s309_s3] sm:$0x3]  ;;  %v32_v5 = vld [vmem:[%s311_s1 + $0x8] sm:$0xff]  ;;  %v33_v10 = vld [vmem:[%s311_s1 + $0x10] sm:$0xff] }
   0x2   :  { %v30_v1 = vld [vmem:[%s310_s2] sm:$0x3]  ;;  %211 = vmatprep.subr.msk.bf16.mxu1 %vm45_vm0, %v37_v0  ;;  %v47_v3 = vsel %vm45_vm0, %v37_v0, 0  ;;  %v25_v7 = vld [vmem:[%s312_s0 + $0x8] sm:$0xff]  ;;  %v34_v11 = vld [vmem:[%s311_s1 + $0x18] sm:$0xff] }
   0x3   :  { %v31_v2 = vld [vmem:[%s311_s1] sm:$0xff]  ;;  %212 = vmatprep.subr.msk.bf16.mxu0 %vm45_vm0, %v30_v1  ;;  %v105_v4 = vsel %vm45_vm0, %v30_v1, 0  ;;  %196 = vmatpush3.bf16.msra.mxu1 %v47_v3  ;;  %v26_v12 = vld [vmem:[%s312_s0 + $0x10] sm:$0xff]  ;;  %v36_v13 = vpack.c.bf16 %v34_v11, %v33_v10  ;;  %v27_v14 = vld [vmem:[%s312_s0 + $0x18] sm:$0xff] }
   0x4   :  { %v24_v6 = vld [vmem:[%s312_s0] sm:$0xff]  ;;  %202 = vmatpush3.bf16.msra.mxu0 %v105_v4  ;;  %v35_v8 = vpack.c.bf16 %v32_v5, %v31_v2  ;;  %v29_v15 = vpack.c.bf16 %v27_v14, %v26_v12  ;;  %v169_v23 = vld [vmem:[%s314_s5 + $0x10] sm:$0xff]  ;;  %v170_v32 = vld [vmem:[%s314_s5 + $0x18] sm:$0xff] }
   0x5   :  { %v28_v9 = vpack.c.bf16 %v25_v7, %v24_v6  ;;  %v188_v18 = vld [vmem:[%s313_s4] ss:$0 sm:$0xff]  ;;  %v168_v36 = vld [vmem:[%s314_s5 + $0x8] sm:$0xff] }
   0x6   :  { %197 = vmatprep.mubr.msk.bf16.mxu1 %vm38_vm1, %v35_v8  ;;  %v167_v28 = vld [vmem:[%s314_s5] sm:$0xff] }
   0x7   :  { %203 = vmatprep.mubr.msk.bf16.mxu0 %vm38_vm1, %v28_v9  ;;  %198 = vmatmul.mubr.msk.bf16.vlgmr.msra.gmra.mrb[0].mxu1 %vm38_vm1, %v36_v13 }
   0x8   :  { %204 = vmatmul.mubr.msk.bf16.vlgmr.msra.gmra.mrb[0].mxu0 %vm38_vm1, %v29_v15 }
  0xda   :  { %v199_v16 = vpop.f32.mrb[0].mxu1 }
  0xdb   :  { %v205_v17 = vpop.f32.mrb[0].mxu0  ;;  %v83_v19 = vpop.f32.mrb[1].mxu1 }
  0xdc   :  { %v150_v20 = vadd.f32 %v205_v17, %v199_v16  ;;  %v141_v21 = vpop.f32.mrb[1].mxu0  ;;  %v200_v22 = vpop.f32.mrb[2].mxu1 }
  0xdd   :  { %v142_v24 = vadd.f32 %v141_v21, %v83_v19  ;;  %v206_v25 = vpop.f32.mrb[2].mxu0  ;;  %v86_v26 = vpop.f32.mrb[3].mxu1 }
  0xde   :  { %v165_v27 = vadd.f32 %v188_v18, %v150_v20  ;;  %v153_v29 = vadd.f32 %v206_v25, %v200_v22  ;;  %v144_v30 = vpop.f32.mrb[3].mxu0 }
  0xdf   :  { %v163_v31 = vadd.f32 %v188_v18, %v142_v24  ;;  %v145_v33 = vadd.f32 %v144_v30, %v86_v26 }
  0xe0   :  { %v173_v34 = vadd.f32 %v169_v23, %v165_v27  ;;  %v166_v35 = vadd.f32 %v188_v18, %v153_v29 }
  0xe1   :  { %v171_v37 = vadd.f32 %v167_v28, %v163_v31  ;;  %v164_v38 = vadd.f32 %v188_v18, %v145_v33 }
  0xe2   :  { %178 = vst.msk [vmem:[%s315_s6 + $0x10] sm:$0xff] %vm175_vm2, %v173_v34  ;;  %v174_v39 = vadd.f32 %v170_v32, %v166_v35 }
  0xe3   :  { %176 = vst.msk [vmem:[%s315_s6] sm:$0xff] %vm175_vm2, %v171_v37  ;;  %v172_v40 = vadd.f32 %v168_v36, %v164_v38 }
  0xe4   :  { %179 = vst.msk [vmem:[%s315_s6 + $0x18] sm:$0xff] %vm175_vm2, %v174_v39 }
  0xe5   :  { %177 = vst.msk [vmem:[%s315_s6 + $0x8] sm:$0xff] %vm175_vm2, %v172_v40 }

// kernel: cswin_block_forward.6
= control target key start
LH: loop header
LB: loop body
LE: loop exit
PB: predicated region body
PF: predicated region fallthrough
CT: control target
= control target key end

     0   :  { %vm31_vm0 = vcmask 64512   ;;  %vm123_vm1 = vcmask 1043456   ;;  %vm176_vm2 = vcmask 31744   ;;  %s317_s27 = smov 120   ;;  %s318_s28 = smov 124   ;;  %s507_s0 = inlined_call_operand.vmem [shape: f32[32,8], index: 0, kind: input, shape index: {}]   ;;  %s508_s3 = inlined_call_operand.vmem [shape: bf16[8,24], index: 3, kind: input, shape index: {}]   ;;  %s509_s1 = inlined_call_operand.vmem [shape: f32[1,8], index: 1, kind: input, shape index: {}]   ;;  %s510_s2 = inlined_call_operand.vmem [shape: f32[1,8], index: 2, kind: input, shape index: {}]   ;;  %s511_s4 = inlined_call_operand.vmem [shape: f32[1,24], index: 4, kind: input, shape index: {}]   ;;  %s512_s5 = inlined_call_operand.vmem [shape: f32[32,4], index: 5, kind: output, shape index: {0}]   ;;  %s513_s7 = inlined_call_operand.vmem [shape: f32[32,4], index: 7, kind: output, shape index: {2}]   ;;  %s514_s6 = inlined_call_operand.vmem [shape: f32[32,4], index: 6, kind: output, shape index: {1}]   ;;  %s515_s8 = inlined_call_operand.vmem [shape: f32[32,4], index: 8, kind: output, shape index: {3}]   ;;  %s516_s9 = inlined_call_operand.vmem [shape: f32[32,4], index: 9, kind: output, shape index: {4}]   ;;  %s517_s10 = inlined_call_operand.vmem [shape: f32[32,4], index: 10, kind: output, shape index: {5}]  }
   0x1   :  { %v27_v0 = vld [vmem:[%s507_s0] sm:$0xff]  ;;  %v29_v1 = vld [vmem:[%s507_s0 + $0x10] sm:$0xff]  ;;  %v28_v2 = vld [vmem:[%s507_s0 + $0x8] sm:$0xff]  ;;  %s319_s14 = smov 116   ;;  %s320_s15 = smov 112  }
   0x2   :  { %v32_v3 = vsel %vm31_vm0, %v27_v0, 0.0  ;;  %v38_v4 = vsel %vm31_vm0, %v29_v1, 0.0  ;;  %v30_v5 = vld [vmem:[%s507_s0 + $0x18] sm:$0xff]  ;;  %v35_v6 = vsel %vm31_vm0, %v28_v2, 0.0  ;;  %v109_v28 = vld [vmem:[%s508_s3] sm:$0xf] }
   0x3   :  { %33 = vadd.xlane.f32.xlu0 %v32_v3  ;;  %39 = vadd.xlane.f32.xlu1 %v38_v4  ;;  %v41_v7 = vsel %vm31_vm0, %v30_v5, 0.0  ;;  %v125_v29 = vsel %vm123_vm1, %v109_v28, 0  ;;  %v289_v44 = vld [vmem:[%s509_s1] ss:$0 sm:$0xff]  ;;  %s321_s16 = smov 108  }
   0x4   :  { %303 = vmatprep.subr.msk.bf16.mxu0 %vm123_vm1, %v109_v28  ;;  %v290_v50 = vld [vmem:[%s510_s2] ss:$0 sm:$0xff] }
   0x5   :  { %298 = vmatpush3.bf16.msra.mxu0 %v125_v29  ;;  %v291_v62 = vld [vmem:[%s511_s4] ss:$0 sm:$0xff] }
   0x7   :  { %36 = vadd.xlane.f32.xlu0 %v35_v6  ;;  %42 = vadd.xlane.f32.xlu1 %v41_v7 }
  0x90   :  { %v34_v8 = vpop.xlane.xlu0 %33  ;;  %v40_v9 = vpop.xlane.xlu1 %39 }
  0x91   :  { %v45_v10 = vmul.f32 0.125, %v34_v8  ;;  %v47_v11 = vmul.f32 0.125, %v40_v9 }
  0x93   :  { %v49_v12 = vsub.f32 %v27_v0, %v45_v10  ;;  %v51_v13 = vsub.f32 %v29_v1, %v47_v11 }
  0x94   :  { %v37_v14 = vpop.xlane.xlu0 %36  ;;  %v43_v15 = vpop.xlane.xlu1 %42 }
  0x95   :  { %v46_v16 = vmul.f32 0.125, %v37_v14  ;;  %v48_v17 = vmul.f32 0.125, %v43_v15  ;;  %v53_v18 = vmul.f32 %v49_v12, %v49_v12  ;;  %v55_v19 = vmul.f32 %v51_v13, %v51_v13 }
  0x97   :  { %v50_v20 = vsub.f32 %v28_v2, %v46_v16  ;;  %v52_v21 = vsub.f32 %v30_v5, %v48_v17  ;;  %v57_v22 = vsel %vm31_vm0, %v53_v18, 0.0  ;;  %v63_v23 = vsel %vm31_vm0, %v55_v19, 0.0 }
  0x98   :  { %58 = vadd.xlane.f32.xlu0 %v57_v22 }
  0x99   :  { %v54_v24 = vmul.f32 %v50_v20, %v50_v20  ;;  %v56_v25 = vmul.f32 %v52_v21, %v52_v21 }
  0x9b   :  { %v60_v26 = vsel %vm31_vm0, %v54_v24, 0.0  ;;  %v66_v27 = vsel %vm31_vm0, %v56_v25, 0.0 }
  0x9c   :  { %64 = vadd.xlane.f32.xlu0 %v63_v23  ;;  %61 = vadd.xlane.f32.xlu1 %v60_v26 }
  0xa0   :  { %67 = vadd.xlane.f32.xlu1 %v66_v27 }
 0x125   :  { %v59_v30 = vpop.xlane.xlu0 %58 }
 0x126   :  { %v69_v31 = vmul.f32 0.125, %v59_v30 }
 0x128   :  { %v73_v32 = vadd.f32 1e-05, %v69_v31 }
 0x129   :  { %v62_v33 = vpop.xlane.xlu1 %61  ;;  %v65_v34 = vpop.xlane.xlu0 %64 }
 0x12a   :  { %309 = vrsqrt.f32 %v73_v32  ;;  %v70_v35 = vmul.f32 0.125, %v62_v33  ;;  %v71_v36 = vmul.f32 0.125, %v65_v34 }
 0x12c   :  { %v74_v37 = vadd.f32 1e-05, %v70_v35  ;;  %v75_v38 = vadd.f32 1e-05, %v71_v36 }
 0x12d   :  { %v68_v39 = vpop.xlane.xlu1 %67 }
 0x12e   :  { %311 = vrsqrt.f32 %v74_v37  ;;  %v72_v40 = vmul.f32 0.125, %v68_v39 }
 0x12f   :  { %313 = vrsqrt.f32 %v75_v38 }
 0x130   :  { %v76_v41 = vadd.f32 1e-05, %v72_v40 }
 0x132   :  { %315 = vrsqrt.f32 %v76_v41 }
 0x134   :  { %v310_v42 = vpop.eup %309 }
 0x135   :  { %v81_v43 = vmul.f32 %v310_v42, %v49_v12 }
 0x137   :  { %v92_v48 = vmul.f32 %v289_v44, %v81_v43 }
 0x138   :  { %v312_v45 = vpop.eup %311 }
 0x139   :  { %v314_v46 = vpop.eup %313  ;;  %v82_v47 = vmul.f32 %v312_v45, %v50_v20  ;;  %v103_v54 = vadd.f32 %v290_v50, %v92_v48 }
 0x13a   :  { %v83_v49 = vmul.f32 %v314_v46, %v51_v13 }
 0x13b   :  { %v93_v51 = vmul.f32 %v289_v44, %v82_v47 }
 0x13c   :  { %v316_v52 = vpop.eup %315  ;;  %v94_v56 = vmul.f32 %v289_v44, %v83_v49 }
 0x13d   :  { %v84_v53 = vmul.f32 %v316_v52, %v52_v21  ;;  %v104_v55 = vadd.f32 %v290_v50, %v93_v51 }
 0x13e   :  { %v105_v59 = vadd.f32 %v290_v50, %v94_v56 }
 0x13f   :  { %v107_v57 = vpack.c.bf16 %v104_v55, %v103_v54  ;;  %v95_v58 = vmul.f32 %v289_v44, %v84_v53 }
 0x141   :  { %299 = vmatprep.mubr.msk.bf16.mxu0 %vm31_vm0, %v107_v57  ;;  %v106_v60 = vadd.f32 %v290_v50, %v95_v58 }
 0x143   :  { %v108_v61 = vpack.c.bf16 %v106_v60, %v105_v59 }
 0x145   :  { %300 = vmatmul.mubr.msk.bf16.vlgmr.msra.gmra.mrb[0].mxu0 %vm31_vm0, %v108_v61 }
 0x218   :  { %v301_v63 = vpop.f32.mrb[0].mxu0 }
 0x219   :  { %v170_v0 = vadd.f32 %v301_v63, %v291_v62  ;;  %v161_v1 = vpop.f32.mrb[1].mxu0 }
 0x21a   :  { %v162_v2 = vadd.f32 %v291_v62, %v161_v1  ;;  %v302_v3 = vpop.f32.mrb[2].mxu0 }
 0x21b   :  { %179 = vst.msk [vmem:[%s512_s5 + $0x10] sm:$0xff] %vm176_vm2, %v170_v0  ;;  %v173_v4 = vadd.f32 %v302_v3, %v291_v62  ;;  %205 = vrot.lane.b32.xlu0 %v170_v0, %s317_s27  ;;  %189 = vrot.lane.b32.xlu1 %v170_v0, %s318_s28  ;;  %v164_v5 = vpop.f32.mrb[3].mxu0 }
 0x21c   :  { %177 = vst.msk [vmem:[%s512_s5] sm:$0xff] %vm176_vm2, %v162_v2  ;;  %v165_v6 = vadd.f32 %v291_v62, %v164_v5 }
 0x21d   :  { %180 = vst.msk [vmem:[%s512_s5 + $0x18] sm:$0xff] %vm176_vm2, %v173_v4 }
 0x21e   :  { %178 = vst.msk [vmem:[%s512_s5 + $0x8] sm:$0xff] %vm176_vm2, %v165_v6 }
 0x21f   :  { %221 = vrot.lane.b32.xlu0 %v170_v0, %s319_s14  ;;  %191 = vrot.lane.b32.xlu1 %v173_v4, %s318_s28 }
 0x223   :  { %237 = vrot.lane.b32.xlu0 %v170_v0, %s320_s15  ;;  %207 = vrot.lane.b32.xlu1 %v173_v4, %s317_s27 }
 0x227   :  { %223 = vrot.lane.b32.xlu1 %v173_v4, %s319_s14  ;;  %185 = vrot.lane.b32.xlu0 %v162_v2, %s318_s28 }
 0x22b   :  { %239 = vrot.lane.b32.xlu1 %v173_v4, %s320_s15  ;;  %201 = vrot.lane.b32.xlu0 %v162_v2, %s317_s27 }
 0x22f   :  { %187 = vrot.lane.b32.xlu1 %v165_v6, %s318_s28  ;;  %217 = vrot.lane.b32.xlu0 %v162_v2, %s319_s14 }
 0x233   :  { %203 = vrot.lane.b32.xlu1 %v165_v6, %s317_s27  ;;  %233 = vrot.lane.b32.xlu0 %v162_v2, %s320_s15 }
 0x237   :  { %219 = vrot.lane.b32.xlu1 %v165_v6, %s319_s14  ;;  %249 = vrot.lane.b32.xlu0 %v162_v2, %s321_s16 }
 0x23b   :  { %235 = vrot.lane.b32.xlu1 %v165_v6, %s320_s15  ;;  %253 = vrot.lane.b32.xlu0 %v170_v0, %s321_s16 }
 0x23f   :  { %251 = vrot.lane.b32.xlu1 %v165_v6, %s321_s16 }
 0x243   :  { %255 = vrot.lane.b32.xlu1 %v173_v4, %s321_s16 }
 0x28d   :  { %v206_v7 = vpop.permute.xlu0 %205  ;;  %v190_v8 = vpop.permute.xlu1 %189 }
 0x28e   :  { %215 = vst.msk [vmem:[%s513_s7 + $0x10] sm:$0xff] %vm176_vm2, %v206_v7  ;;  %199 = vst.msk [vmem:[%s514_s6 + $0x10] sm:$0xff] %vm176_vm2, %v190_v8 }
 0x291   :  { %v222_v9 = vpop.permute.xlu0 %221  ;;  %v192_v10 = vpop.permute.xlu1 %191 }
 0x292   :  { %231 = vst.msk [vmem:[%s515_s8 + $0x10] sm:$0xff] %vm176_vm2, %v222_v9  ;;  %200 = vst.msk [vmem:[%s514_s6 + $0x18] sm:$0xff] %vm176_vm2, %v192_v10 }
 0x295   :  { %v238_v11 = vpop.permute.xlu0 %237  ;;  %v208_v12 = vpop.permute.xlu1 %207 }
 0x296   :  { %247 = vst.msk [vmem:[%s516_s9 + $0x10] sm:$0xff] %vm176_vm2, %v238_v11  ;;  %216 = vst.msk [vmem:[%s513_s7 + $0x18] sm:$0xff] %vm176_vm2, %v208_v12 }
 0x299   :  { %v224_v13 = vpop.permute.xlu1 %223  ;;  %v186_v14 = vpop.permute.xlu0 %185 }
 0x29a   :  { %232 = vst.msk [vmem:[%s515_s8 + $0x18] sm:$0xff] %vm176_vm2, %v224_v13  ;;  %197 = vst.msk [vmem:[%s514_s6] sm:$0xff] %vm176_vm2, %v186_v14 }
 0x29d   :  { %v240_v15 = vpop.permute.xlu1 %239  ;;  %v202_v16 = vpop.permute.xlu0 %201 }
 0x29e   :  { %248 = vst.msk [vmem:[%s516_s9 + $0x18] sm:$0xff] %vm176_vm2, %v240_v15  ;;  %213 = vst.msk [vmem:[%s513_s7] sm:$0xff] %vm176_vm2, %v202_v16 }
 0x2a1   :  { %v188_v17 = vpop.permute.xlu1 %187  ;;  %v218_v18 = vpop.permute.xlu0 %217 }
 0x2a2   :  { %198 = vst.msk [vmem:[%s514_s6 + $0x8] sm:$0xff] %vm176_vm2, %v188_v17  ;;  %229 = vst.msk [vmem:[%s515_s8] sm:$0xff] %vm176_vm2, %v218_v18 }
 0x2a5   :  { %v204_v19 = vpop.permute.xlu1 %203  ;;  %v234_v20 = vpop.permute.xlu0 %233 }
 0x2a6   :  { %214 = vst.msk [vmem:[%s513_s7 + $0x8] sm:$0xff] %vm176_vm2, %v204_v19  ;;  %245 = vst.msk [vmem:[%s516_s9] sm:$0xff] %vm176_vm2, %v234_v20 }
 0x2a9   :  { %v220_v21 = vpop.permute.xlu1 %219  ;;  %v250_v22 = vpop.permute.xlu0 %249 }
 0x2aa   :  { %230 = vst.msk [vmem:[%s515_s8 + $0x8] sm:$0xff] %vm176_vm2, %v220_v21  ;;  %261 = vst.msk [vmem:[%s517_s10] sm:$0xff] %vm176_vm2, %v250_v22 }
 0x2ad   :  { %v236_v23 = vpop.permute.xlu1 %235  ;;  %v254_v24 = vpop.permute.xlu0 %253 }
 0x2ae   :  { %246 = vst.msk [vmem:[%s516_s9 + $0x8] sm:$0xff] %vm176_vm2, %v236_v23  ;;  %263 = vst.msk [vmem:[%s517_s10 + $0x10] sm:$0xff] %vm176_vm2, %v254_v24 }
 0x2b1   :  { %v252_v25 = vpop.permute.xlu1 %251 }
 0x2b2   :  { %262 = vst.msk [vmem:[%s517_s10 + $0x8] sm:$0xff] %vm176_vm2, %v252_v25 }
 0x2b5   :  { %v256_v26 = vpop.permute.xlu1 %255 }
 0x2b6   :  { %264 = vst.msk [vmem:[%s517_s10 + $0x18] sm:$0xff] %vm176_vm2, %v256_v26 }

// kernel: cswin_block_forward.7
= control target key start
LH: loop header
LB: loop body
LE: loop exit
PB: predicated region body
PF: predicated region fallthrough
CT: control target
= control target key end

     0   :  { %vm29_vm0 = vcmask 31744   ;;  %v924_v0 = vmov 0.0   ;;  %vm925_vm1 = vmmov 0   ;;  %vm582_vm2 = vcmask 64512   ;;  %s1372_s1 = inlined_call_operand.vmem [shape: f32[4,8,4], index: 1, kind: input, shape index: {}]   ;;  %s1373_s0 = inlined_call_operand.vmem [shape: f32[4,8,4], index: 0, kind: input, shape index: {}]   ;;  %s1374_s2 = inlined_call_operand.vmem [shape: f32[4,8,4], index: 2, kind: input, shape index: {}]   ;;  %s1375_s3 = inlined_call_operand.vmem [shape: f32[9,4], index: 3, kind: input, shape index: {}]   ;;  %s1376_s6 = inlined_call_operand.vmem [shape: f32[4,1,8,8], index: 6, kind: output, shape index: {1}]   ;;  %s1377_s4 = inlined_call_operand.vmem [shape: f32[1,4], index: 4, kind: input, shape index: {}]   ;;  %s1378_s5 = inlined_call_operand.vmem [shape: f32[4,8,4], index: 5, kind: output, shape index: {0}]  }
   0x1   :  { %858 = vmatprep.subr.bf16.mxu0 %v924_v0  ;;  %v378_v1 = vld [vmem:[%s1372_s1] sm:$0xff]  ;;  %30 = vst.msk [vmem:[#allocation2] sm:$0xff] %vm29_vm0, %v924_v0  ;;  %31 = vst.msk [vmem:[#allocation2 + $0x8] sm:$0xff] %vm29_vm0, %v924_v0  ;;  %864 = vmatprep.subr.bf16.mxu1 %v924_v0  ;;  %v379_v2 = vld [vmem:[%s1372_s1 + $0x8] sm:$0xff]  ;;  %vm638_vm3 = vcmask 1043456   ;;  %vm75_vm8 = vcmask 28672  }
   0x2   :  { %32 = vst.msk [vmem:[#allocation2 + $0x10] sm:$0xff] %vm29_vm0, %v924_v0  ;;  %33 = vst.msk [vmem:[#allocation2 + $0x18] sm:$0xff] %vm29_vm0, %v924_v0  ;;  %v386_v3 = vpack.c.bf16 %v378_v1, %v378_v1  ;;  %v387_v4 = vpack.c.bf16 %v379_v2, %v379_v2  ;;  %860 = vmatprep.mubr.msk.bf16.mxu0 %vm925_vm1, %v924_v0  ;;  %866 = vmatprep.mubr.msk.bf16.mxu1 %vm925_vm1, %v924_v0  ;;  %v380_v5 = vld [vmem:[%s1372_s1 + $0x10] sm:$0xff]  ;;  %v381_v6 = vld [vmem:[%s1372_s1 + $0x18] sm:$0xff]  ;;  %vm96_vm10 = vcmask 29696   ;;  %vm140_vm11 = vcmask 30720  }
   0x3   :  { %v374_v9 = vld [vmem:[%s1373_s0] sm:$0xff]  ;;  %v375_v10 = vld [vmem:[%s1373_s0 + $0x8] sm:$0xff]  ;;  %v388_v11 = vpack.c.bf16 %v380_v5, %v380_v5  ;;  %v389_v12 = vpack.c.bf16 %v381_v6, %v381_v6  ;;  %v376_v17 = vld [vmem:[%s1373_s0 + $0x10] sm:$0xff] }
   0x4   :  { %v398_v7 = vsel %vm29_vm0, %v386_v3, 0  ;;  %v444_v8 = vsel %vm29_vm0, %v387_v4, 0  ;;  %v382_v13 = vpack.c.bf16 %v374_v9, %v374_v9  ;;  %v383_v14 = vpack.c.bf16 %v375_v10, %v375_v10  ;;  %v377_v18 = vld [vmem:[%s1373_s0 + $0x18] sm:$0xff]  ;;  %v1042_v2 = vld [vmem:[%s1374_s2] sm:$0xff]  ;;  %v24_v5 = vld [vmem:[%s1374_s2 + $0x8] sm:$0xff] }
   0x5   :  { %859 = vmatpush3.bf16.xpose.msra.mxu0 %v398_v7  ;;  %865 = vmatpush3.bf16.xpose.msra.mxu1 %v444_v8  ;;  %v490_v15 = vsel %vm29_vm0, %v388_v11, 0  ;;  %v536_v16 = vsel %vm29_vm0, %v389_v12, 0  ;;  %v384_v19 = vpack.c.bf16 %v376_v17, %v376_v17  ;;  %v385_v20 = vpack.c.bf16 %v377_v18, %v377_v18  ;;  %v1053_v8 = vld [vmem:[%s1374_s2 + $0x10] sm:$0xff]  ;;  %v1063_v11 = vld [vmem:[%s1374_s2 + $0x18] sm:$0xff] }
   0x6   :  { %870 = vmatprep.subr.bf16.mxu0 %v924_v0  ;;  %876 = vmatprep.subr.bf16.mxu1 %v924_v0  ;;  %v390_v3 = vpack.c.bf16 %v1042_v2, %v1042_v2  ;;  %v391_v6 = vpack.c.bf16 %v24_v5, %v24_v5  ;;  %v392_v9 = vpack.c.bf16 %v1053_v8, %v1053_v8 }
   0x7   :  { %v393_v12 = vpack.c.bf16 %v1063_v11, %v1063_v11 }
   0x8   :  { %v640_v4 = vsel %vm638_vm3, %v390_v3, 0  ;;  %v686_v7 = vsel %vm638_vm3, %v391_v6, 0  ;;  %v1058_v10 = vsel %vm638_vm3, %v392_v9, 0 }
   0xc   :  { %861 = vmatmul.mubr.msk.bf16.vlgmr.msra.gmra.mrb[0].mxu0 %vm29_vm0, %v382_v13  ;;  %867 = vmatmul.mubr.msk.bf16.vlgmr.msra.gmra.mrb[0].mxu1 %vm29_vm0, %v383_v14  ;;  %v1067_v13 = vsel %vm638_vm3, %v393_v12, 0  ;;  %v34_v14 = vlaneseq }
   0xd   :  { %871 = vmatpush3.bf16.xpose.msra.mxu0 %v490_v15  ;;  %877 = vmatpush3.bf16.xpose.msra.mxu1 %v536_v16  ;;  %v832_v15 = vld [vmem:[%s1375_s3 + $0x8] ss:$0 sm:$0xff] }
   0xe   :  { %872 = vmatprep.mubr.msk.bf16.mxu0 %vm925_vm1, %v924_v0  ;;  %878 = vmatprep.mubr.msk.bf16.mxu1 %vm925_vm1, %v924_v0  ;;  %v35_v16 = vshrl.u32 %v34_v14, 7  ;;  %v1073_v17 = vmul.f32 %v832_v15, %v1042_v2  ;;  %v328_v18 = vmul.f32 %v832_v15, %v24_v5 }
   0xf   :  { %882 = vmatprep.subr.bf16.mxu0 %v924_v0  ;;  %888 = vmatprep.subr.bf16.mxu1 %v924_v0 }
  0x10   :  { %v336_v3 = vrot.slane %v328_v18, 3 }
  0x14   :  { %873 = vmatmul.mubr.msk.bf16.vlgmr.msra.gmra.mrb[4].mxu0 %vm29_vm0, %v384_v19  ;;  %879 = vmatmul.mubr.msk.bf16.vlgmr.msra.gmra.mrb[4].mxu1 %vm29_vm0, %v385_v20  ;;  %v1076_v19 = vmul.f32 %v832_v15, %v1053_v8  ;;  %v1079_v20 = vmul.f32 %v832_v15, %v1063_v11 }
  0x15   :  { %884 = vmatprep.mubr.msk.bf16.mxu0 %vm925_vm1, %v924_v0  ;;  %890 = vmatprep.mubr.msk.bf16.mxu1 %vm925_vm1, %v924_v0 }
  0x16   :  { %883 = vmatpush3.bf16.msra.mxu0 %v640_v4  ;;  %889 = vmatpush3.bf16.msra.mxu1 %v686_v7 }
  0x17   :  { %894 = vmatprep.subr.bf16.mxu0 %v924_v0  ;;  %900 = vmatprep.subr.bf16.mxu1 %v924_v0 }
  0xdf   :  { %v434_v21 = vpop.f32.mrb[0].mxu0  ;;  %v480_v22 = vpop.f32.mrb[0].mxu1 }
  0xe0   :  { %v578_v23 = vmul.f32 0.5, %v434_v21  ;;  %v862_v24 = vpop.f32.mrb[1].mxu0  ;;  %v579_v25 = vmul.f32 0.5, %v480_v22  ;;  %v868_v26 = vpop.f32.mrb[1].mxu1  ;;  %v44_v21 = vadd.s32 3, %v35_v16  ;;  %v109_v22 = vadd.s32 1, %v35_v16 }
  0xe1   :  { %v437_v27 = vpop.f32.mrb[2].mxu0  ;;  %v483_v28 = vpop.f32.mrb[2].mxu1  ;;  %v82_v26 = vsub.s32 1, %v35_v16 }
  0xe2   :  { %v863_v29 = vpop.f32.mrb[3].mxu0  ;;  %v583_v30 = vsel %vm582_vm2, %v578_v23, -inf  ;;  %v869_v31 = vpop.f32.mrb[3].mxu1  ;;  %v586_v32 = vsel %vm582_vm2, %v579_v25, -inf  ;;  %v114_v24 = vand.u32 1, %v109_v22  ;;  %v103_v27 = vsub.s32 2, %v35_v16 }
  0xe3   :  { %584 = vmax.xlane.f32.xlu0 %v583_v30  ;;  %v147_v28 = vsub.s32 3, %v35_v16  ;;  %v27_v29 = vld [vmem:[%s1375_s3] sm:$0xff]  ;;  %v177_v30 = vsub.s32 4, %v35_v16  ;;  %v197_v31 = vsub.s32 5, %v35_v16 }
  0xe7   :  { %587 = vmax.xlane.f32.xlu0 %v586_v32  ;;  %v526_v33 = vpop.f32.mrb[4].mxu0  ;;  %v572_v34 = vpop.f32.mrb[4].mxu1 }
  0xe8   :  { %v580_v35 = vmul.f32 0.5, %v526_v33  ;;  %v874_v36 = vpop.f32.mrb[5].mxu0  ;;  %v581_v37 = vmul.f32 0.5, %v572_v34  ;;  %v880_v38 = vpop.f32.mrb[5].mxu1  ;;  %v1084_v33 = vadd.s32 1, %v114_v24  ;;  %v207_v34 = vand.u32 1, %v35_v16 }
  0xe9   :  { %v529_v39 = vpop.f32.mrb[6].mxu0  ;;  %v575_v40 = vpop.f32.mrb[6].mxu1  ;;  %v293_v36 = vsub.s32 7, %v35_v16  ;;  %v1086_v38 = vrot.slane %v27_v29, %v82_v26 }
  0xea   :  { %v875_v41 = vpop.f32.mrb[7].mxu0  ;;  %v589_v42 = vsel %vm582_vm2, %v580_v35, -inf  ;;  %v881_v43 = vpop.f32.mrb[7].mxu1  ;;  %v592_v44 = vsel %vm582_vm2, %v581_v37, -inf  ;;  %v1088_v39 = vrot.slane %v27_v29, %v103_v27  ;;  %v1090_v40 = vrot.slane %v27_v29, %v147_v28 }
  0xeb   :  { %590 = vmax.xlane.f32.xlu1 %v589_v42  ;;  %v1092_v41 = vadd.s32 4294967295, %v114_v24  ;;  %v1094_v42 = vrot.slane %v27_v29, %v177_v30  ;;  %v1096_v43 = vrot.slane %v27_v29, %v197_v31  ;;  %vm124_vm5 = vcmp.lt.s32.totalorder %v1084_v33, 2 }
  0xec   :  { %v1137_v7 = vmul.f32 %v1086_v38, %v1053_v8  ;;  %v337_v27 = vrot.slane %v1076_v19, 3  ;;  %v1182_v31 = vmul.f32 %v1086_v38, %v1063_v11  ;;  %v152_v19 = vmul.f32 %v1090_v40, %v1063_v11 }
  0xed   :  { %vm154_vm6 = vcmp.ge.s32.totalorder %v1092_v41, 0  ;;  %v1157_v18 = vmul.f32 %v1094_v42, %v1053_v8  ;;  %v199_v33 = vmul.f32 %v1096_v43, %v1042_v2 }
  0xef   :  { %593 = vmax.xlane.f32.xlu1 %v592_v44  ;;  %v294_v44 = vrot.slane %v27_v29, %v293_v36 }
  0xf1   :  { %v1176_v26 = vmul.f32 %v294_v44, %v1053_v8 }
 0x170   :  { %v585_v45 = vpop.xlane.xlu0 %584 }
 0x171   :  { %v595_v46 = vsub.f32 %v578_v23, %v585_v45  ;;  %v49_v23 = vand.u32 1, %v44_v21 }
 0x173   :  { %v599_v47 = vmul.f32 1.442695, %v595_v46  ;;  %v57_v32 = vadd.s32 4294967295, %v49_v23  ;;  %v1099_v46 = vmul.f32 %v1086_v38, %v24_v5  ;;  %v201_v23 = vmul.f32 %v1096_v43, %v1053_v8 }
 0x174   :  { %v588_v48 = vpop.xlane.xlu0 %587 }
 0x175   :  { %908 = vpow2.f32 %v599_v47  ;;  %v596_v49 = vsub.f32 %v579_v25, %v588_v48  ;;  %v36_v25 = vsub.s32 0, %v35_v16  ;;  %vm58_vm4 = vcmp.ge.s32.totalorder %v57_v32, 0 }
 0x176   :  { %v106_v47 = vmul.f32 %v1088_v39, %v24_v5  ;;  %v1103_v48 = vadd.s32 1, %v207_v34  ;;  %v1210_v32 = vmul.f32 %v1094_v42, %v1063_v11 }
 0x177   :  { %v601_v50 = vmul.f32 1.442695, %v596_v49 }
 0x178   :  { %v591_v51 = vpop.xlane.xlu1 %590  ;;  %vm217_vm7 = vcmp.lt.s32.totalorder %v1103_v48, 2 }
 0x179   :  { %910 = vpow2.f32 %v601_v50  ;;  %v597_v52 = vsub.f32 %v580_v35, %v591_v51  ;;  %v251_v35 = vsub.s32 6, %v35_v16  ;;  %v1108_v50 = vmul.f32 %v294_v44, %v1042_v2 }
 0x17a   :  { %v1110_v51 = vadd.s32 4294967295, %v207_v34  ;;  %v1142_v12 = vsel %vm217_vm7, %v336_v3, 0.0  ;;  %v151_v16 = vmul.f32 %v1090_v40, %v1053_v8  ;;  %v108_v34 = vmul.f32 %v1088_v39, %v1063_v11 }
 0x17b   :  { %v603_v53 = vmul.f32 1.442695, %v597_v52  ;;  %v1105_v49 = vrot.slane %v27_v29, %v251_v35  ;;  %v1189_v36 = vsel %vm217_vm7, %v337_v27, 0.0  ;;  %v1221_v3 = vmul.f32 %v294_v44, %v1063_v11 }
 0x17c   :  { %v594_v54 = vpop.xlane.xlu1 %593  ;;  %vm258_vm9 = vcmp.ge.s32.totalorder %v1110_v51, 0  ;;  %v105_v27 = vmul.f32 %v1088_v39, %v1042_v2 }
 0x17d   :  { %912 = vpow2.f32 %v603_v53  ;;  %v598_v55 = vsub.f32 %v581_v37, %v594_v54  ;;  %v37_v37 = vrot.slane %v27_v29, %v36_v25  ;;  %v1117_v53 = vsel %vm124_vm5, %v106_v47, 0.0 }
 0x17e   :  { %v150_v54 = vmul.f32 %v1090_v40, %v24_v5  ;;  %v255_v24 = vmul.f32 %v1105_v49, %v1053_v8  ;;  %v1173_v25 = vsel %vm154_vm6, %v151_v16, 0.0  ;;  %v227_v29 = vrot.slane %v201_v23, 1 }
 0x17f   :  { %v1023_v56 = vpop.eup %908  ;;  %v605_v57 = vmul.f32 1.442695, %v598_v55  ;;  %v39_v45 = vmul.f32 %v37_v37, %v24_v5  ;;  %v38_v55 = vmul.f32 %v37_v37, %v1042_v2  ;;  %v40_v6 = vmul.f32 %v37_v37, %v1053_v8 }
 0x180   :  { %v607_v58 = vsel %vm582_vm2, %v1023_v56, 0.0  ;;  %v41_v28 = vmul.f32 %v37_v37, %v1063_v11  ;;  %v269_v30 = vrot.slane %v255_v24, 1  ;;  %v67_v37 = vld [vmem:[#allocation2 + $0x3] sm:$0x1f]  ;;  %v253_v41 = vmul.f32 %v1105_v49, %v1042_v2 }
 0x181   :  { %914 = vpow2.f32 %v605_v57  ;;  %608 = vadd.xlane.f32.xlu0 %v607_v58  ;;  %v1113_v52 = vsel %vm58_vm4, %v39_v45, 0.0  ;;  %v1123_v57 = vmul.f32 %v1094_v42, %v24_v5  ;;  %v200_v58 = vmul.f32 %v1096_v43, %v24_v5 }
 0x182   :  { %v1151_v15 = vsel %vm58_vm4, %v40_v6, 0.0  ;;  %v63_v35 = vsel %vm58_vm4, %v38_v55, 0.0  ;;  %v1198_v45 = vsel %vm217_vm7, %v227_v29, 0.0  ;;  %v1202_v47 = vsel %vm258_vm9, %v269_v30, 0.0 }
 0x183   :  { %v1027_v59 = vpop.eup %910  ;;  %v226_v4 = vrot.slane %v200_v58, 1  ;;  %v1214_v55 = vsel %vm154_vm6, %v152_v19, 0.0  ;;  %v202_v58 = vmul.f32 %v1096_v43, %v1063_v11  ;;  %v71_v6 = vadd.f32 %v67_v37, %v63_v35 }
 0x184   :  { %v610_v60 = vsel %vm582_vm2, %v1027_v59, 0.0 }
 0x185   :  { %611 = vadd.xlane.f32.xlu1 %v610_v60  ;;  %v1128_v60 = vsel %vm154_vm6, %v150_v54, 0.0  ;;  %v1148_v14 = vsel %vm217_vm7, %v226_v4, 0.0  ;;  %v1206_v54 = vsel %vm124_vm5, %v108_v34, 0.0  ;;  %v338_v4 = vrot.slane %v1079_v20, 3  ;;  %76 = vst.msk [vmem:[#allocation2 + $0x3] sm:$0x1f] %vm75_vm8, %v71_v6 }
 0x186   :  { %v149_v34 = vmul.f32 %v1090_v40, %v1042_v2 }
 0x187   :  { %v1031_v61 = vpop.eup %912  ;;  %v1226_v16 = vsel %vm217_vm7, %v338_v4, 0.0 }
 0x188   :  { %v613_v62 = vsel %vm582_vm2, %v1031_v61, 0.0 }
 0x189   :  { %614 = vadd.xlane.f32.xlu0 %v613_v62  ;;  %v254_v62 = vmul.f32 %v1105_v49, %v24_v5 }
 0x18b   :  { %v1035_v63 = vpop.eup %914  ;;  %v268_v9 = vrot.slane %v254_v62, 1  ;;  %v256_v62 = vmul.f32 %v1105_v49, %v1063_v11  ;;  %v84_v11 = vmul.f32 %v1086_v38, %v1042_v2  ;;  %v159_v38 = vsel %vm154_vm6, %v149_v34, 0.0  ;;  %v68_v34 = vld [vmem:[#allocation2 + $0xb] sm:$0x1f] }
 0x18c   :  { %v616_v1 = vsel %vm582_vm2, %v1035_v63, 0.0  ;;  %v88_v20 = vld [vmem:[#allocation2 + $0x2] sm:$0x3f] }
 0x18d   :  { %617 = vadd.xlane.f32.xlu1 %v616_v1  ;;  %v1131_v1 = vmul.f32 %v294_v44, %v24_v5  ;;  %v107_v5 = vmul.f32 %v1088_v39, %v1053_v8  ;;  %v1161_v21 = vsel %vm258_vm9, %v268_v9, 0.0  ;;  %v1192_v8 = vsel %vm58_vm4, %v41_v28, 0.0 }
 0x18e   :  { %v228_v9 = vrot.slane %v202_v58, 1  ;;  %v92_v44 = vadd.f32 %v88_v20, %v84_v11  ;;  %v128_v28 = vsel %vm124_vm5, %v105_v27, 0.0  ;;  %v179_v39 = vmul.f32 %v1094_v42, %v1042_v2 }
 0x18f   :  { %v1165_v22 = vsel %vm124_vm5, %v107_v5, 0.0  ;;  %v270_v5 = vrot.slane %v256_v62, 1  ;;  %v225_v62 = vrot.slane %v199_v33, 1  ;;  %v307_v11 = vrot.slane %v1108_v50, 2 }
 0x190   :  { %v1231_v23 = vsel %vm217_vm7, %v228_v9, 0.0  ;;  %97 = vst.msk [vmem:[#allocation2 + $0x2] sm:$0x3f] %vm96_vm10, %v92_v44  ;;  %v267_v9 = vrot.slane %v253_v41, 1  ;;  %v335_v2 = vrot.slane %v1073_v17, 3  ;;  %v72_v17 = vadd.f32 %v68_v34, %v1113_v52 }
 0x191   :  { %v1235_v24 = vsel %vm258_vm9, %v270_v5, 0.0  ;;  %v233_v40 = vsel %vm217_vm7, %v225_v62, 0.0 }
 0x192   :  { %v275_v42 = vsel %vm258_vm9, %v267_v9, 0.0  ;;  %v343_v27 = vsel %vm217_vm7, %v335_v2, 0.0  ;;  %77 = vst.msk [vmem:[#allocation2 + $0xb] sm:$0x1f] %vm75_vm8, %v72_v17  ;;  %v310_v17 = vrot.slane %v1221_v3, 2 }
 0x197   :  { %v132_v29 = vld [vmem:[#allocation2 + $0x1] sm:$0x7f] }
 0x198   :  { %v136_v30 = vadd.f32 %v132_v29, %v128_v28 }
 0x19a   :  { %141 = vst.msk [vmem:[#allocation2 + $0x1] sm:$0x7f] %vm140_vm11, %v136_v30 }
 0x1a1   :  { %v163_v35 = vld [vmem:[#allocation2 + $0x1] sm:$0x7f] }
 0x1a2   :  { %v167_v19 = vadd.f32 %v163_v35, %v159_v38 }
 0x1a4   :  { %171 = vst.msk [vmem:[#allocation2 + $0x1] sm:$0x7f] %vm140_vm11, %v167_v19 }
 0x1ab   :  { %v183_v37 = vld [vmem:[#allocation2] sm:$0xff] }
 0x1ac   :  { %v187_v58 = vadd.f32 %v183_v37, %v179_v39  ;;  %v69_v39 = vld [vmem:[#allocation2 + $0x13] sm:$0x1f] }
 0x1ae   :  { %191 = vst.msk [vmem:[#allocation2] sm:$0xff] %vm29_vm0, %v187_v58  ;;  %v70_v58 = vld [vmem:[#allocation2 + $0x1b] sm:$0x1f] }
 0x1b5   :  { %v237_v4 = vld [vmem:[#allocation2] sm:$0x7f] }
 0x1b6   :  { %v241_v6 = vadd.f32 %v237_v4, %v233_v40 }
 0x1b8   :  { %245 = vst.msk [vmem:[#allocation2] sm:$0x7f] %vm140_vm11, %v241_v6 }
 0x1bf   :  { %v279_v43 = vld [vmem:[#allocation2] sm:$0x7f] }
 0x1c0   :  { %v283_v5 = vadd.f32 %v279_v43, %v275_v42 }
 0x1c2   :  { %287 = vst.msk [vmem:[#allocation2] sm:$0x7f] %vm140_vm11, %v283_v5 }
 0x1c9   :  { %v299_v20 = vld [vmem:[#allocation2] sm:$0x3f] }
 0x1ca   :  { %v315_v44 = vadd.f32 %v307_v11, %v299_v20 }
 0x1cc   :  { %319 = vst.msk [vmem:[#allocation2] sm:$0x3f] %vm96_vm10, %v315_v44 }
 0x1d3   :  { %v347_v51 = vld [vmem:[#allocation2] sm:$0x1f] }
 0x1d4   :  { %v351_v29 = vadd.f32 %v347_v51, %v343_v27 }
 0x1d6   :  { %355 = vst.msk [vmem:[#allocation2] sm:$0x1f] %vm75_vm8, %v351_v29 }
 0x20e   :  { %v609_v49 = vpop.xlane.xlu0 %608 }
 0x20f   :  { %916 = vrcp.f32 %v609_v49 }
 0x212   :  { %v612_v28 = vpop.xlane.xlu1 %611 }
 0x213   :  { %918 = vrcp.f32 %v612_v28 }
 0x216   :  { %v615_v30 = vpop.xlane.xlu0 %614 }
 0x217   :  { %920 = vrcp.f32 %v615_v30 }
 0x219   :  { %v917_v50 = vpop.eup %916 }
 0x21a   :  { %v623_v38 = vmul.f32 %v917_v50, %v1023_v56  ;;  %v618_v35 = vpop.xlane.xlu1 %617  ;;  %v73_v56 = vadd.f32 %v69_v39, %v1151_v15  ;;  %v74_v15 = vadd.f32 %v70_v58, %v1192_v8  ;;  %v308_v50 = vrot.slane %v1131_v1, 2 }
 0x21b   :  { %922 = vrcp.f32 %v618_v35 }
 0x21c   :  { %627 = vst.msk [vmem:[%s1376_s6] sm:$0xff] %vm582_vm2, %v623_v38  ;;  %v631_v48 = vpack.c.bf16 %v623_v38, %v623_v38 }
 0x21d   :  { %v919_v19 = vpop.eup %918  ;;  %78 = vst.msk [vmem:[#allocation2 + $0x13] sm:$0x1f] %vm75_vm8, %v73_v56  ;;  %79 = vst.msk [vmem:[#allocation2 + $0x1b] sm:$0x1f] %vm75_vm8, %v74_v15  ;;  %v359_v56 = vld [vmem:[#allocation2] sm:$0xff] }
 0x21e   :  { %v624_v33 = vmul.f32 %v919_v19, %v1027_v59  ;;  %885 = vmatmul.mubr.msk.bf16.vlgmr.msra.gmra.mrb[8].mxu0 %vm582_vm2, %v631_v48 }
 0x21f   :  { %895 = vmatpush3.bf16.msra.mxu0 %v1058_v10  ;;  %896 = vmatprep.mubr.msk.bf16.mxu0 %vm925_vm1, %v924_v0  ;;  %v89_v10 = vld [vmem:[#allocation2 + $0xa] sm:$0x3f] }
 0x220   :  { %628 = vst.msk [vmem:[%s1376_s6 + $0x8] sm:$0xff] %vm582_vm2, %v624_v33  ;;  %v632_v52 = vpack.c.bf16 %v624_v33, %v624_v33  ;;  %v93_v40 = vadd.f32 %v89_v10, %v1099_v46 }
 0x221   :  { %v921_v37 = vpop.eup %920 }
 0x222   :  { %v625_v59 = vmul.f32 %v921_v37, %v1031_v61  ;;  %891 = vmatmul.mubr.msk.bf16.vlgmr.msra.gmra.mrb[8].mxu1 %vm582_vm2, %v632_v52  ;;  %98 = vst.msk [vmem:[#allocation2 + $0xa] sm:$0x3f] %vm96_vm10, %v93_v40  ;;  %v833_v52 = vld [vmem:[%s1377_s4] ss:$0 sm:$0xff] }
 0x223   :  { %901 = vmatpush3.bf16.msra.mxu1 %v1067_v13  ;;  %902 = vmatprep.mubr.msk.bf16.mxu1 %vm925_vm1, %v924_v0 }
 0x224   :  { %629 = vst.msk [vmem:[%s1376_s6 + $0x10] sm:$0xff] %vm582_vm2, %v625_v59  ;;  %v633_v62 = vpack.c.bf16 %v625_v59, %v625_v59  ;;  %v90_v13 = vld [vmem:[#allocation2 + $0x12] sm:$0x3f]  ;;  %v91_v46 = vld [vmem:[#allocation2 + $0x1a] sm:$0x3f] }
 0x225   :  { %v923_v61 = vpop.eup %922  ;;  %v94_v8 = vadd.f32 %v90_v13, %v1137_v7 }
 0x226   :  { %v626_v41 = vmul.f32 %v923_v61, %v1035_v63  ;;  %897 = vmatmul.mubr.msk.bf16.vlgmr.msra.gmra.mrb[12].mxu0 %vm582_vm2, %v633_v62  ;;  %v95_v63 = vadd.f32 %v91_v46, %v1182_v31 }
 0x227   :  { %99 = vst.msk [vmem:[#allocation2 + $0x12] sm:$0x3f] %vm96_vm10, %v94_v8 }
 0x228   :  { %630 = vst.msk [vmem:[%s1376_s6 + $0x18] sm:$0xff] %vm582_vm2, %v626_v41  ;;  %v634_v0 = vpack.c.bf16 %v626_v41, %v626_v41 }
 0x229   :  { %v133_v4 = vld [vmem:[#allocation2 + $0x9] sm:$0x7f]  ;;  %100 = vst.msk [vmem:[#allocation2 + $0x1a] sm:$0x3f] %vm96_vm10, %v95_v63 }
 0x22a   :  { %903 = vmatmul.mubr.msk.bf16.vlgmr.msra.gmra.mrb[12].mxu1 %vm582_vm2, %v634_v0  ;;  %v137_v6 = vadd.f32 %v133_v4, %v1117_v53 }
 0x22c   :  { %142 = vst.msk [vmem:[#allocation2 + $0x9] sm:$0x7f] %vm140_vm11, %v137_v6 }
 0x22e   :  { %v134_v9 = vld [vmem:[#allocation2 + $0x11] sm:$0x7f] }
 0x22f   :  { %v138_v42 = vadd.f32 %v134_v9, %v1165_v22 }
 0x230   :  { %v135_v7 = vld [vmem:[#allocation2 + $0x19] sm:$0x7f] }
 0x231   :  { %143 = vst.msk [vmem:[#allocation2 + $0x11] sm:$0x7f] %vm140_vm11, %v138_v42  ;;  %v139_v43 = vadd.f32 %v135_v7, %v1206_v54 }
 0x233   :  { %v164_v5 = vld [vmem:[#allocation2 + $0x9] sm:$0x7f]  ;;  %144 = vst.msk [vmem:[#allocation2 + $0x19] sm:$0x7f] %vm140_vm11, %v139_v43 }
 0x234   :  { %v168_v11 = vadd.f32 %v164_v5, %v1128_v60 }
 0x236   :  { %172 = vst.msk [vmem:[#allocation2 + $0x9] sm:$0x7f] %vm140_vm11, %v168_v11 }
 0x238   :  { %v165_v53 = vld [vmem:[#allocation2 + $0x11] sm:$0x7f] }
 0x239   :  { %v169_v31 = vadd.f32 %v165_v53, %v1173_v25 }
 0x23a   :  { %v166_v20 = vld [vmem:[#allocation2 + $0x19] sm:$0x7f] }
 0x23b   :  { %173 = vst.msk [vmem:[#allocation2 + $0x11] sm:$0x7f] %vm140_vm11, %v169_v31  ;;  %v170_v22 = vadd.f32 %v166_v20, %v1214_v55 }
 0x23d   :  { %v184_v44 = vld [vmem:[#allocation2 + $0x8] sm:$0xff]  ;;  %174 = vst.msk [vmem:[#allocation2 + $0x19] sm:$0x7f] %vm140_vm11, %v170_v22 }
 0x23e   :  { %v188_v2 = vadd.f32 %v184_v44, %v1123_v57 }
 0x240   :  { %192 = vst.msk [vmem:[#allocation2 + $0x8] sm:$0xff] %vm29_vm0, %v188_v2 }
 0x242   :  { %v185_v60 = vld [vmem:[#allocation2 + $0x10] sm:$0xff] }
 0x243   :  { %v189_v54 = vadd.f32 %v185_v60, %v1157_v18 }
 0x244   :  { %v186_v49 = vld [vmem:[#allocation2 + $0x18] sm:$0xff] }
 0x245   :  { %193 = vst.msk [vmem:[#allocation2 + $0x10] sm:$0xff] %vm29_vm0, %v189_v54  ;;  %v190_v25 = vadd.f32 %v186_v49, %v1210_v32 }
 0x247   :  { %v238_v27 = vld [vmem:[#allocation2 + $0x8] sm:$0x7f]  ;;  %194 = vst.msk [vmem:[#allocation2 + $0x18] sm:$0xff] %vm29_vm0, %v190_v25 }
 0x248   :  { %v242_v28 = vadd.f32 %v238_v27, %v1148_v14 }
 0x24a   :  { %246 = vst.msk [vmem:[#allocation2 + $0x8] sm:$0x7f] %vm140_vm11, %v242_v28 }
 0x24c   :  { %v239_v57 = vld [vmem:[#allocation2 + $0x10] sm:$0x7f] }
 0x24d   :  { %v243_v55 = vadd.f32 %v239_v57, %v1198_v45 }
 0x24e   :  { %v240_v51 = vld [vmem:[#allocation2 + $0x18] sm:$0x7f] }
 0x24f   :  { %247 = vst.msk [vmem:[#allocation2 + $0x10] sm:$0x7f] %vm140_vm11, %v243_v55  ;;  %v244_v18 = vadd.f32 %v240_v51, %v1231_v23  ;;  %v309_v23 = vrot.slane %v1176_v26, 2 }
 0x251   :  { %v280_v29 = vld [vmem:[#allocation2 + $0x8] sm:$0x7f]  ;;  %248 = vst.msk [vmem:[#allocation2 + $0x18] sm:$0x7f] %vm140_vm11, %v244_v18 }
 0x252   :  { %v284_v30 = vadd.f32 %v280_v29, %v1161_v21 }
 0x254   :  { %288 = vst.msk [vmem:[#allocation2 + $0x8] sm:$0x7f] %vm140_vm11, %v284_v30 }
 0x256   :  { %v281_v14 = vld [vmem:[#allocation2 + $0x10] sm:$0x7f] }
 0x257   :  { %v285_v32 = vadd.f32 %v281_v14, %v1202_v47 }
 0x258   :  { %v282_v45 = vld [vmem:[#allocation2 + $0x18] sm:$0x7f] }
 0x259   :  { %289 = vst.msk [vmem:[#allocation2 + $0x10] sm:$0x7f] %vm140_vm11, %v285_v32  ;;  %v286_v34 = vadd.f32 %v282_v45, %v1235_v24 }
 0x25b   :  { %v300_v38 = vld [vmem:[#allocation2 + $0x8] sm:$0x3f]  ;;  %290 = vst.msk [vmem:[#allocation2 + $0x18] sm:$0x7f] %vm140_vm11, %v286_v34 }
 0x25c   :  { %v316_v35 = vadd.f32 %v308_v50, %v300_v38 }
 0x25e   :  { %320 = vst.msk [vmem:[#allocation2 + $0x8] sm:$0x3f] %vm96_vm10, %v316_v35 }
 0x260   :  { %v301_v21 = vld [vmem:[#allocation2 + $0x10] sm:$0x3f] }
 0x261   :  { %v317_v48 = vadd.f32 %v309_v23, %v301_v21 }
 0x262   :  { %v302_v1 = vld [vmem:[#allocation2 + $0x18] sm:$0x3f] }
 0x263   :  { %321 = vst.msk [vmem:[#allocation2 + $0x10] sm:$0x3f] %vm96_vm10, %v317_v48  ;;  %v318_v47 = vadd.f32 %v310_v17, %v302_v1 }
 0x265   :  { %v348_v19 = vld [vmem:[#allocation2 + $0x8] sm:$0x1f]  ;;  %322 = vst.msk [vmem:[#allocation2 + $0x18] sm:$0x3f] %vm96_vm10, %v318_v47 }
 0x266   :  { %v352_v39 = vadd.f32 %v348_v19, %v1142_v12  ;;  %v370_v12 = vadd.f32 %v833_v52, %v359_v56 }
 0x268   :  { %356 = vst.msk [vmem:[#allocation2 + $0x8] sm:$0x1f] %vm75_vm8, %v352_v39 }
 0x26a   :  { %v349_v26 = vld [vmem:[#allocation2 + $0x10] sm:$0x1f] }
 0x26b   :  { %v353_v24 = vadd.f32 %v349_v26, %v1189_v36 }
 0x26c   :  { %v350_v33 = vld [vmem:[#allocation2 + $0x18] sm:$0x1f] }
 0x26d   :  { %357 = vst.msk [vmem:[#allocation2 + $0x10] sm:$0x1f] %vm75_vm8, %v353_v24  ;;  %v354_v3 = vadd.f32 %v350_v33, %v1226_v16 }
 0x26f   :  { %358 = vst.msk [vmem:[#allocation2 + $0x18] sm:$0x1f] %vm75_vm8, %v354_v3  ;;  %v360_v37 = vld [vmem:[#allocation2 + $0x8] sm:$0xff] }
 0x270   :  { %v371_v10 = vadd.f32 %v833_v52, %v360_v37 }
 0x274   :  { %v361_v36 = vld [vmem:[#allocation2 + $0x10] sm:$0xff] }
 0x275   :  { %v372_v13 = vadd.f32 %v833_v52, %v361_v36 }
 0x276   :  { %v362_v8 = vld [vmem:[#allocation2 + $0x18] sm:$0xff] }
 0x277   :  { %v373_v9 = vadd.f32 %v833_v52, %v362_v8 }
 0x2f1   :  { %v676_v58 = vpop.f32.mrb[8].mxu0 }
 0x2f2   :  { %v677_v59 = vadd.f32 %v676_v58, %v370_v12  ;;  %v886_v15 = vpop.f32.mrb[9].mxu0 }
 0x2f3   :  { %v679_v62 = vpop.f32.mrb[10].mxu0 }
 0x2f4   :  { %820 = vst.msk [vmem:[%s1378_s5] sm:$0xff] %vm29_vm0, %v677_v59  ;;  %v887_v16 = vpop.f32.mrb[11].mxu0 }
 0x2f5   :  { %v722_v40 = vpop.f32.mrb[8].mxu1 }
 0x2f6   :  { %v723_v61 = vadd.f32 %v722_v40, %v371_v10  ;;  %v892_v41 = vpop.f32.mrb[9].mxu1 }
 0x2f7   :  { %v725_v0 = vpop.f32.mrb[10].mxu1 }
 0x2f8   :  { %821 = vst.msk [vmem:[%s1378_s5 + $0x8] sm:$0xff] %vm29_vm0, %v723_v61  ;;  %v893_v46 = vpop.f32.mrb[11].mxu1 }
 0x2f9   :  { %v768_v63 = vpop.f32.mrb[12].mxu0 }
 0x2fa   :  { %v769_v4 = vadd.f32 %v768_v63, %v372_v13  ;;  %v898_v6 = vpop.f32.mrb[13].mxu0 }
 0x2fb   :  { %v771_v42 = vpop.f32.mrb[14].mxu0 }
 0x2fc   :  { %822 = vst.msk [vmem:[%s1378_s5 + $0x10] sm:$0xff] %vm29_vm0, %v769_v4  ;;  %v899_v7 = vpop.f32.mrb[15].mxu0 }
 0x2fd   :  { %v814_v43 = vpop.f32.mrb[12].mxu1 }
 0x2fe   :  { %v815_v5 = vadd.f32 %v814_v43, %v373_v9  ;;  %v904_v11 = vpop.f32.mrb[13].mxu1 }
 0x2ff   :  { %v817_v53 = vpop.f32.mrb[14].mxu1 }
 0x300   :  { %823 = vst.msk [vmem:[%s1378_s5 + $0x18] sm:$0xff] %vm29_vm0, %v815_v5  ;;  %v905_v31 = vpop.f32.mrb[15].mxu1 }

// kernel: cswin_block_forward.8
= control target key start
LH: loop header
LB: loop body
LE: loop exit
PB: predicated region body
PF: predicated region fallthrough
CT: control target
= control target key end

     0   :  { %vm29_vm0 = vcmask 31744   ;;  %v938_v0 = vmov 0.0   ;;  %vm939_vm1 = vmmov 0   ;;  %vm596_vm2 = vcmask 64512   ;;  %s1370_s1 = inlined_call_operand.vmem [shape: f32[4,8,4], index: 1, kind: input, shape index: {}]   ;;  %s1371_s0 = inlined_call_operand.vmem [shape: f32[4,8,4], index: 0, kind: input, shape index: {}]   ;;  %s1372_s2 = inlined_call_operand.vmem [shape: f32[4,8,4], index: 2, kind: input, shape index: {}]   ;;  %s1373_s3 = inlined_call_operand.vmem [shape: f32[9,4], index: 3, kind: input, shape index: {}]   ;;  %s1374_s6 = inlined_call_operand.vmem [shape: f32[4,1,8,8], index: 6, kind: output, shape index: {1}]   ;;  %s1375_s4 = inlined_call_operand.vmem [shape: f32[1,4], index: 4, kind: input, shape index: {}]   ;;  %s1376_s5 = inlined_call_operand.vmem [shape: f32[4,8,4], index: 5, kind: output, shape index: {0}]  }
   0x1   :  { %872 = vmatprep.subr.bf16.mxu0 %v938_v0  ;;  %v392_v1 = vld [vmem:[%s1370_s1] sm:$0xff]  ;;  %30 = vst.msk [vmem:[#allocation2] sm:$0xff] %vm29_vm0, %v938_v0  ;;  %31 = vst.msk [vmem:[#allocation2 + $0x8] sm:$0xff] %vm29_vm0, %v938_v0  ;;  %878 = vmatprep.subr.bf16.mxu1 %v938_v0  ;;  %v393_v2 = vld [vmem:[%s1370_s1 + $0x8] sm:$0xff]  ;;  %vm652_vm3 = vcmask 1043456   ;;  %vm75_vm7 = vcmask 26624  }
   0x2   :  { %32 = vst.msk [vmem:[#allocation2 + $0x10] sm:$0xff] %vm29_vm0, %v938_v0  ;;  %33 = vst.msk [vmem:[#allocation2 + $0x18] sm:$0xff] %vm29_vm0, %v938_v0  ;;  %v400_v3 = vpack.c.bf16 %v392_v1, %v392_v1  ;;  %v401_v4 = vpack.c.bf16 %v393_v2, %v393_v2  ;;  %874 = vmatprep.mubr.msk.bf16.mxu0 %vm939_vm1, %v938_v0  ;;  %880 = vmatprep.mubr.msk.bf16.mxu1 %vm939_vm1, %v938_v0  ;;  %v394_v5 = vld [vmem:[%s1370_s1 + $0x10] sm:$0xff]  ;;  %v395_v6 = vld [vmem:[%s1370_s1 + $0x18] sm:$0xff]  ;;  %vm96_vm8 = vcmask 27648   ;;  %vm140_vm9 = vcmask 28672  }
   0x3   :  { %v388_v9 = vld [vmem:[%s1371_s0] sm:$0xff]  ;;  %v389_v10 = vld [vmem:[%s1371_s0 + $0x8] sm:$0xff]  ;;  %v402_v11 = vpack.c.bf16 %v394_v5, %v394_v5  ;;  %v403_v12 = vpack.c.bf16 %v395_v6, %v395_v6  ;;  %v390_v17 = vld [vmem:[%s1371_s0 + $0x10] sm:$0xff]  ;;  %vm184_vm10 = vcmask 30720  }
   0x4   :  { %v412_v7 = vsel %vm29_vm0, %v400_v3, 0  ;;  %v458_v8 = vsel %vm29_vm0, %v401_v4, 0  ;;  %v396_v13 = vpack.c.bf16 %v388_v9, %v388_v9  ;;  %v397_v14 = vpack.c.bf16 %v389_v10, %v389_v10  ;;  %v391_v18 = vld [vmem:[%s1371_s0 + $0x18] sm:$0xff]  ;;  %v1056_v2 = vld [vmem:[%s1372_s2] sm:$0xff]  ;;  %v24_v5 = vld [vmem:[%s1372_s2 + $0x8] sm:$0xff] }
   0x5   :  { %873 = vmatpush3.bf16.xpose.msra.mxu0 %v412_v7  ;;  %879 = vmatpush3.bf16.xpose.msra.mxu1 %v458_v8  ;;  %v504_v15 = vsel %vm29_vm0, %v402_v11, 0  ;;  %v550_v16 = vsel %vm29_vm0, %v403_v12, 0  ;;  %v398_v19 = vpack.c.bf16 %v390_v17, %v390_v17  ;;  %v399_v20 = vpack.c.bf16 %v391_v18, %v391_v18  ;;  %v1067_v8 = vld [vmem:[%s1372_s2 + $0x10] sm:$0xff]  ;;  %v1077_v11 = vld [vmem:[%s1372_s2 + $0x18] sm:$0xff] }
   0x6   :  { %884 = vmatprep.subr.bf16.mxu0 %v938_v0  ;;  %890 = vmatprep.subr.bf16.mxu1 %v938_v0  ;;  %v404_v3 = vpack.c.bf16 %v1056_v2, %v1056_v2  ;;  %v405_v6 = vpack.c.bf16 %v24_v5, %v24_v5  ;;  %v406_v9 = vpack.c.bf16 %v1067_v8, %v1067_v8 }
   0x7   :  { %v407_v12 = vpack.c.bf16 %v1077_v11, %v1077_v11 }
   0x8   :  { %v654_v4 = vsel %vm652_vm3, %v404_v3, 0  ;;  %v700_v7 = vsel %vm652_vm3, %v405_v6, 0  ;;  %v1072_v10 = vsel %vm652_vm3, %v406_v9, 0 }
   0xc   :  { %875 = vmatmul.mubr.msk.bf16.vlgmr.msra.gmra.mrb[0].mxu0 %vm29_vm0, %v396_v13  ;;  %881 = vmatmul.mubr.msk.bf16.vlgmr.msra.gmra.mrb[0].mxu1 %vm29_vm0, %v397_v14  ;;  %v1081_v13 = vsel %vm652_vm3, %v407_v12, 0  ;;  %v34_v14 = vlaneseq }
   0xd   :  { %885 = vmatpush3.bf16.xpose.msra.mxu0 %v504_v15  ;;  %891 = vmatpush3.bf16.xpose.msra.mxu1 %v550_v16  ;;  %v846_v15 = vld [vmem:[%s1373_s3 + $0x8] ss:$0 sm:$0xff] }
   0xe   :  { %886 = vmatprep.mubr.msk.bf16.mxu0 %vm939_vm1, %v938_v0  ;;  %892 = vmatprep.mubr.msk.bf16.mxu1 %vm939_vm1, %v938_v0  ;;  %v1086_v16 = vshrl.u32 %v34_v14, 7  ;;  %v1089_v17 = vmul.f32 %v846_v15, %v1056_v2  ;;  %v1091_v18 = vmul.f32 %v846_v15, %v24_v5 }
   0xf   :  { %896 = vmatprep.subr.bf16.mxu0 %v938_v0  ;;  %902 = vmatprep.subr.bf16.mxu1 %v938_v0 }
  0x14   :  { %887 = vmatmul.mubr.msk.bf16.vlgmr.msra.gmra.mrb[4].mxu0 %vm29_vm0, %v398_v19  ;;  %893 = vmatmul.mubr.msk.bf16.vlgmr.msra.gmra.mrb[4].mxu1 %vm29_vm0, %v399_v20  ;;  %v1094_v19 = vmul.f32 %v846_v15, %v1067_v8  ;;  %v1097_v20 = vmul.f32 %v846_v15, %v1077_v11 }
  0x15   :  { %898 = vmatprep.mubr.msk.bf16.mxu0 %vm939_vm1, %v938_v0  ;;  %904 = vmatprep.mubr.msk.bf16.mxu1 %vm939_vm1, %v938_v0 }
  0x16   :  { %897 = vmatpush3.bf16.msra.mxu0 %v654_v4  ;;  %903 = vmatpush3.bf16.msra.mxu1 %v700_v7 }
  0x17   :  { %908 = vmatprep.subr.bf16.mxu0 %v938_v0  ;;  %914 = vmatprep.subr.bf16.mxu1 %v938_v0 }
  0xdf   :  { %v448_v21 = vpop.f32.mrb[0].mxu0  ;;  %v494_v22 = vpop.f32.mrb[0].mxu1 }
  0xe0   :  { %v592_v23 = vmul.f32 0.5, %v448_v21  ;;  %v876_v24 = vpop.f32.mrb[1].mxu0  ;;  %v593_v25 = vmul.f32 0.5, %v494_v22  ;;  %v882_v26 = vpop.f32.mrb[1].mxu1  ;;  %v44_v21 = vadd.s32 5, %v1086_v16  ;;  %v109_v22 = vadd.s32 3, %v1086_v16 }
  0xe1   :  { %v451_v27 = vpop.f32.mrb[2].mxu0  ;;  %v497_v28 = vpop.f32.mrb[2].mxu1  ;;  %v82_v26 = vsub.s32 1, %v1086_v16 }
  0xe2   :  { %v877_v29 = vpop.f32.mrb[3].mxu0  ;;  %v597_v30 = vsel %vm596_vm2, %v592_v23, -inf  ;;  %v883_v31 = vpop.f32.mrb[3].mxu1  ;;  %v600_v32 = vsel %vm596_vm2, %v593_v25, -inf  ;;  %v49_v24 = vand.u32 3, %v44_v21  ;;  %v114_v27 = vand.u32 3, %v109_v22 }
  0xe3   :  { %598 = vmax.xlane.f32.xlu0 %v597_v30  ;;  %v27_v29 = vld [vmem:[%s1373_s3] sm:$0xff]  ;;  %v103_v31 = vsub.s32 2, %v1086_v16 }
  0xe4   :  { %v57_v30 = vadd.s32 4294967295, %v49_v24 }
  0xe6   :  { %vm58_vm4 = vcmp.ge.s32.totalorder %v57_v30, 0 }
  0xe7   :  { %601 = vmax.xlane.f32.xlu0 %v600_v32  ;;  %v540_v33 = vpop.f32.mrb[4].mxu0  ;;  %v586_v34 = vpop.f32.mrb[4].mxu1  ;;  %v147_v32 = vsub.s32 3, %v1086_v16 }
  0xe8   :  { %v594_v35 = vmul.f32 0.5, %v540_v33  ;;  %v888_v36 = vpop.f32.mrb[5].mxu0  ;;  %v595_v37 = vmul.f32 0.5, %v586_v34  ;;  %v894_v38 = vpop.f32.mrb[5].mxu1  ;;  %v191_v33 = vsub.s32 4, %v1086_v16  ;;  %v1110_v34 = vadd.s32 1, %v114_v27 }
  0xe9   :  { %v543_v39 = vpop.f32.mrb[6].mxu0  ;;  %v589_v40 = vpop.f32.mrb[6].mxu1  ;;  %v211_v36 = vsub.s32 5, %v1086_v16  ;;  %v83_v38 = vrot.slane %v27_v29, %v82_v26  ;;  %v67_v27 = vld [vmem:[#allocation2 + $0x5] sm:$0x7] }
  0xea   :  { %v889_v41 = vpop.f32.mrb[7].mxu0  ;;  %v603_v42 = vsel %vm596_vm2, %v594_v35, -inf  ;;  %v895_v43 = vpop.f32.mrb[7].mxu1  ;;  %v606_v44 = vsel %vm596_vm2, %v595_v37, -inf  ;;  %v265_v39 = vsub.s32 6, %v1086_v16  ;;  %v307_v40 = vsub.s32 7, %v1086_v16 }
  0xeb   :  { %604 = vmax.xlane.f32.xlu1 %v603_v42  ;;  %v104_v41 = vrot.slane %v27_v29, %v103_v31  ;;  %v148_v42 = vrot.slane %v27_v29, %v147_v32  ;;  %v1117_v43 = vrot.slane %v27_v29, %v191_v33  ;;  %vm124_vm5 = vcmp.lt.s32.totalorder %v1110_v34, 4 }
  0xec   :  { %v1152_v3 = vmul.f32 %v83_v38, %v1067_v8  ;;  %v221_v34 = vand.u32 3, %v1086_v16 }
  0xed   :  { %v107_v4 = vmul.f32 %v104_v41, %v1067_v8  ;;  %v151_v7 = vmul.f32 %v148_v42, %v1067_v8  ;;  %v1161_v9 = vmul.f32 %v1117_v43, %v1067_v8  ;;  %v152_v26 = vmul.f32 %v148_v42, %v1077_v11 }
  0xef   :  { %607 = vmax.xlane.f32.xlu1 %v606_v44  ;;  %v308_v44 = vrot.slane %v27_v29, %v307_v40 }
  0xf1   :  { %v1179_v21 = vmul.f32 %v308_v44, %v1067_v8  ;;  %v1211_v33 = vmul.f32 %v308_v44, %v1077_v11 }
 0x170   :  { %v599_v45 = vpop.xlane.xlu0 %598 }
 0x171   :  { %v609_v46 = vsub.f32 %v592_v23, %v599_v45  ;;  %v153_v23 = vadd.s32 1, %v1086_v16 }
 0x173   :  { %v613_v47 = vmul.f32 1.442695, %v609_v46  ;;  %v158_v28 = vand.u32 3, %v153_v23  ;;  %v1120_v46 = vmul.f32 %v83_v38, %v24_v5  ;;  %v1183_v23 = vmul.f32 %v83_v38, %v1077_v11 }
 0x174   :  { %v602_v48 = vpop.xlane.xlu0 %601 }
 0x175   :  { %922 = vpow2.f32 %v613_v47  ;;  %v610_v49 = vsub.f32 %v593_v25, %v602_v48  ;;  %v36_v25 = vsub.s32 0, %v1086_v16  ;;  %v212_v47 = vrot.slane %v27_v29, %v211_v36 }
 0x176   :  { %v106_v48 = vmul.f32 %v104_v41, %v24_v5  ;;  %v1236_v16 = vadd.s32 4294967295, %v221_v34 }
 0x177   :  { %v615_v50 = vmul.f32 1.442695, %v610_v49  ;;  %v150_v49 = vmul.f32 %v148_v42, %v24_v5  ;;  %v1168_v12 = vmul.f32 %v212_v47, %v1067_v8 }
 0x178   :  { %v605_v51 = vpop.xlane.xlu1 %604  ;;  %vm272_vm12 = vcmp.ge.s32.totalorder %v1236_v16, 0  ;;  %v350_v16 = vrot.slane %v1091_v18, 5  ;;  %v352_v18 = vrot.slane %v1097_v20, 5 }
 0x179   :  { %924 = vpow2.f32 %v615_v50  ;;  %v611_v52 = vsub.f32 %v594_v35, %v605_v51  ;;  %v1112_v35 = vadd.s32 4294967295, %v158_v28  ;;  %v1123_v50 = vrot.slane %v27_v29, %v265_v39 }
 0x17a   :  { %v1126_v51 = vmul.f32 %v308_v44, %v1056_v2 }
 0x17b   :  { %v617_v53 = vmul.f32 1.442695, %v611_v52  ;;  %vm167_vm6 = vcmp.ge.s32.totalorder %v1112_v35, 0  ;;  %v1172_v14 = vmul.f32 %v1123_v50, %v1067_v8  ;;  %v1200_v31 = vmul.f32 %v1123_v50, %v1077_v11 }
 0x17c   :  { %v608_v54 = vpop.xlane.xlu1 %607  ;;  %v1176_v15 = vsel %vm167_vm6, %v151_v7, 0.0  ;;  %v1208_v30 = vsel %vm167_vm6, %v152_v26, 0.0 }
 0x17d   :  { %926 = vpow2.f32 %v617_v53  ;;  %v612_v55 = vsub.f32 %v595_v37, %v608_v54  ;;  %v37_v37 = vrot.slane %v27_v29, %v36_v25  ;;  %v1132_v53 = vmul.f32 %v1117_v43, %v24_v5 }
 0x17e   :  { %v1136_v54 = vsel %vm124_vm5, %v106_v48, 0.0  ;;  %v108_v25 = vmul.f32 %v104_v41, %v1077_v11  ;;  %v1193_v29 = vmul.f32 %v1117_v43, %v1077_v11 }
 0x17f   :  { %v1037_v56 = vpop.eup %922  ;;  %v619_v57 = vmul.f32 1.442695, %v612_v55  ;;  %v39_v45 = vmul.f32 %v37_v37, %v24_v5  ;;  %v1140_v55 = vsel %vm167_vm6, %v150_v49, 0.0  ;;  %v41_v22 = vmul.f32 %v37_v37, %v1077_v11 }
 0x180   :  { %v621_v58 = vsel %vm596_vm2, %v1037_v56, 0.0  ;;  %v1204_v32 = vsel %vm124_vm5, %v108_v25, 0.0  ;;  %v267_v25 = vmul.f32 %v1123_v50, %v1056_v2 }
 0x181   :  { %928 = vpow2.f32 %v619_v57  ;;  %622 = vadd.xlane.f32.xlu0 %v621_v58  ;;  %v1129_v52 = vsel %vm58_vm4, %v39_v45, 0.0  ;;  %v1142_v57 = vmul.f32 %v212_v47, %v24_v5  ;;  %v1145_v58 = vmul.f32 %v1123_v50, %v24_v5 }
 0x182   :  { %v1189_v28 = vsel %vm58_vm4, %v41_v22, 0.0  ;;  %v105_v45 = vmul.f32 %v104_v41, %v1056_v2  ;;  %v193_v41 = vmul.f32 %v1117_v43, %v1056_v2  ;;  %v1228_v22 = vadd.s32 1, %v221_v34 }
 0x183   :  { %v1041_v59 = vpop.eup %924  ;;  %v349_v50 = vrot.slane %v1089_v17, 5 }
 0x184   :  { %v624_v60 = vsel %vm596_vm2, %v1041_v59, 0.0  ;;  %v128_v48 = vsel %vm124_vm5, %v105_v45, 0.0  ;;  %vm231_vm11 = vcmp.lt.s32.totalorder %v1228_v22, 4 }
 0x185   :  { %625 = vadd.xlane.f32.xlu1 %v624_v60  ;;  %v1147_v60 = vmul.f32 %v308_v44, %v24_v5  ;;  %v1165_v5 = vsel %vm124_vm5, %v107_v4, 0.0  ;;  %v149_v44 = vmul.f32 %v148_v42, %v1056_v2  ;;  %v213_v4 = vmul.f32 %v212_v47, %v1056_v2 }
 0x187   :  { %v1045_v61 = vpop.eup %926  ;;  %v239_v35 = vrot.slane %v213_v4, 1 }
 0x188   :  { %v627_v62 = vsel %vm596_vm2, %v1045_v61, 0.0 }
 0x189   :  { %628 = vadd.xlane.f32.xlu0 %v627_v62  ;;  %v40_v62 = vmul.f32 %v37_v37, %v1067_v8  ;;  %v1196_v8 = vmul.f32 %v212_v47, %v1077_v11  ;;  %v247_v42 = vsel %vm231_vm11, %v239_v35, 0.0  ;;  %v281_v47 = vrot.slane %v267_v25, 3 }
 0x18b   :  { %v1049_v63 = vpop.eup %928  ;;  %v1156_v6 = vsel %vm58_vm4, %v40_v62, 0.0 }
 0x18c   :  { %v630_v1 = vsel %vm596_vm2, %v1049_v63, 0.0 }
 0x18d   :  { %631 = vadd.xlane.f32.xlu1 %v630_v1  ;;  %v38_v1 = vmul.f32 %v37_v37, %v1056_v2  ;;  %v84_v37 = vmul.f32 %v83_v38, %v1056_v2  ;;  %v172_v38 = vsel %vm167_vm6, %v149_v44, 0.0 }
 0x18f   :  { %v63_v24 = vsel %vm58_vm4, %v38_v1, 0.0 }
 0x190   :  { %v71_v36 = vadd.f32 %v67_v27, %v63_v24  ;;  %v289_v27 = vsel %vm272_vm12, %v281_v47, 0.0 }
 0x192   :  { %76 = vst.msk [vmem:[#allocation2 + $0x5] sm:$0x7] %vm75_vm7, %v71_v36 }
 0x199   :  { %v88_v39 = vld [vmem:[#allocation2 + $0x4] sm:$0xf] }
 0x19a   :  { %v92_v40 = vadd.f32 %v88_v39, %v84_v37  ;;  %v321_v39 = vrot.slane %v1126_v51, 4 }
 0x19c   :  { %97 = vst.msk [vmem:[#allocation2 + $0x4] sm:$0xf] %vm96_vm8, %v92_v40 }
 0x1a3   :  { %v132_v49 = vld [vmem:[#allocation2 + $0x3] sm:$0x1f] }
 0x1a4   :  { %v136_v11 = vadd.f32 %v132_v49, %v128_v48  ;;  %v357_v48 = vsel %vm231_vm11, %v349_v50, 0.0 }
 0x1a6   :  { %141 = vst.msk [vmem:[#allocation2 + $0x3] sm:$0x1f] %vm140_vm9, %v136_v11 }
 0x1ad   :  { %v176_v62 = vld [vmem:[#allocation2 + $0x1] sm:$0x7f] }
 0x1ae   :  { %v180_v1 = vadd.f32 %v176_v62, %v172_v38  ;;  %v68_v62 = vld [vmem:[#allocation2 + $0xd] sm:$0x7] }
 0x1af   :  { %v72_v17 = vadd.f32 %v68_v62, %v1129_v52 }
 0x1b0   :  { %185 = vst.msk [vmem:[#allocation2 + $0x1] sm:$0x7f] %vm184_vm10, %v180_v1 }
 0x1b1   :  { %77 = vst.msk [vmem:[#allocation2 + $0xd] sm:$0x7] %vm75_vm7, %v72_v17  ;;  %v283_v17 = vrot.slane %v1172_v14, 3 }
 0x1b7   :  { %v197_v7 = vld [vmem:[#allocation2] sm:$0xff] }
 0x1b8   :  { %v201_v24 = vadd.f32 %v197_v7, %v193_v41  ;;  %v69_v7 = vld [vmem:[#allocation2 + $0x15] sm:$0x7] }
 0x1ba   :  { %205 = vst.msk [vmem:[#allocation2] sm:$0xff] %vm29_vm0, %v201_v24 }
 0x1c1   :  { %v251_v43 = vld [vmem:[#allocation2] sm:$0x7f] }
 0x1c2   :  { %v255_v26 = vadd.f32 %v251_v43, %v247_v42  ;;  %v70_v42 = vld [vmem:[#allocation2 + $0x1d] sm:$0x7] }
 0x1c4   :  { %259 = vst.msk [vmem:[#allocation2] sm:$0x7f] %vm184_vm10, %v255_v26 }
 0x1cb   :  { %v293_v36 = vld [vmem:[#allocation2] sm:$0x1f] }
 0x1cc   :  { %v297_v37 = vadd.f32 %v293_v36, %v289_v27 }
 0x1ce   :  { %301 = vst.msk [vmem:[#allocation2] sm:$0x1f] %vm140_vm9, %v297_v37 }
 0x1d5   :  { %v313_v40 = vld [vmem:[#allocation2] sm:$0xf] }
 0x1d6   :  { %v329_v2 = vadd.f32 %v321_v39, %v313_v40 }
 0x1d8   :  { %333 = vst.msk [vmem:[#allocation2] sm:$0xf] %vm96_vm8, %v329_v2 }
 0x1df   :  { %v361_v49 = vld [vmem:[#allocation2] sm:$0x7] }
 0x1e0   :  { %v365_v11 = vadd.f32 %v361_v49, %v357_v48 }
 0x1e2   :  { %369 = vst.msk [vmem:[#allocation2] sm:$0x7] %vm75_vm7, %v365_v11  ;;  %v241_v11 = vrot.slane %v1168_v12, 1 }
 0x20e   :  { %v623_v45 = vpop.xlane.xlu0 %622 }
 0x20f   :  { %930 = vrcp.f32 %v623_v45 }
 0x212   :  { %v626_v44 = vpop.xlane.xlu1 %625 }
 0x213   :  { %932 = vrcp.f32 %v626_v44 }
 0x216   :  { %v629_v38 = vpop.xlane.xlu0 %628 }
 0x217   :  { %934 = vrcp.f32 %v629_v38 }
 0x219   :  { %v931_v51 = vpop.eup %930 }
 0x21a   :  { %v637_v1 = vmul.f32 %v931_v51, %v1037_v56  ;;  %v632_v41 = vpop.xlane.xlu1 %631  ;;  %v73_v56 = vadd.f32 %v69_v7, %v1156_v6  ;;  %v74_v6 = vadd.f32 %v70_v42, %v1189_v28  ;;  %v242_v51 = vrot.slane %v1196_v8, 1 }
 0x21b   :  { %936 = vrcp.f32 %v632_v41  ;;  %v291_v7 = vsel %vm272_vm12, %v283_v17, 0.0 }
 0x21c   :  { %641 = vst.msk [vmem:[%s1374_s6] sm:$0xff] %vm596_vm2, %v637_v1  ;;  %v645_v34 = vpack.c.bf16 %v637_v1, %v637_v1  ;;  %v282_v1 = vrot.slane %v1145_v58, 3  ;;  %v250_v12 = vsel %vm231_vm11, %v242_v51, 0.0  ;;  %v284_v58 = vrot.slane %v1200_v31, 3 }
 0x21d   :  { %v933_v4 = vpop.eup %932  ;;  %78 = vst.msk [vmem:[#allocation2 + $0x15] sm:$0x7] %vm75_vm7, %v73_v56  ;;  %79 = vst.msk [vmem:[#allocation2 + $0x1d] sm:$0x7] %vm75_vm7, %v74_v6  ;;  %v323_v31 = vrot.slane %v1179_v21, 4 }
 0x21e   :  { %v638_v24 = vmul.f32 %v933_v4, %v1041_v59  ;;  %899 = vmatmul.mubr.msk.bf16.vlgmr.msra.gmra.mrb[8].mxu0 %vm596_vm2, %v645_v34  ;;  %v290_v34 = vsel %vm272_vm12, %v282_v1, 0.0  ;;  %v292_v14 = vsel %vm272_vm12, %v284_v58, 0.0 }
 0x21f   :  { %909 = vmatpush3.bf16.msra.mxu0 %v1072_v10  ;;  %910 = vmatprep.mubr.msk.bf16.mxu0 %vm939_vm1, %v938_v0  ;;  %v89_v10 = vld [vmem:[#allocation2 + $0xc] sm:$0xf] }
 0x220   :  { %642 = vst.msk [vmem:[%s1374_s6 + $0x8] sm:$0xff] %vm596_vm2, %v638_v24  ;;  %v646_v52 = vpack.c.bf16 %v638_v24, %v638_v24  ;;  %v93_v43 = vadd.f32 %v89_v10, %v1120_v46 }
 0x221   :  { %v935_v35 = vpop.eup %934 }
 0x222   :  { %v639_v59 = vmul.f32 %v935_v35, %v1045_v61  ;;  %905 = vmatmul.mubr.msk.bf16.vlgmr.msra.gmra.mrb[8].mxu1 %vm596_vm2, %v646_v52  ;;  %98 = vst.msk [vmem:[#allocation2 + $0xc] sm:$0xf] %vm96_vm8, %v93_v43  ;;  %v322_v35 = vrot.slane %v1147_v60, 4  ;;  %v324_v43 = vrot.slane %v1211_v33, 4  ;;  %v358_v60 = vsel %vm231_vm11, %v350_v16, 0.0 }
 0x223   :  { %915 = vmatpush3.bf16.msra.mxu1 %v1081_v13  ;;  %916 = vmatprep.mubr.msk.bf16.mxu1 %vm939_vm1, %v938_v0 }
 0x224   :  { %643 = vst.msk [vmem:[%s1374_s6 + $0x10] sm:$0xff] %vm596_vm2, %v639_v59  ;;  %v647_v25 = vpack.c.bf16 %v639_v59, %v639_v59  ;;  %v90_v13 = vld [vmem:[#allocation2 + $0x14] sm:$0xf]  ;;  %v91_v46 = vld [vmem:[#allocation2 + $0x1c] sm:$0xf] }
 0x225   :  { %v937_v61 = vpop.eup %936  ;;  %v94_v28 = vadd.f32 %v90_v13, %v1152_v3 }
 0x226   :  { %v640_v26 = vmul.f32 %v937_v61, %v1049_v63  ;;  %911 = vmatmul.mubr.msk.bf16.vlgmr.msra.gmra.mrb[12].mxu0 %vm596_vm2, %v647_v25  ;;  %v95_v63 = vadd.f32 %v91_v46, %v1183_v23 }
 0x227   :  { %99 = vst.msk [vmem:[#allocation2 + $0x14] sm:$0xf] %vm96_vm8, %v94_v28  ;;  %v351_v28 = vrot.slane %v1094_v19, 5  ;;  %v847_v19 = vld [vmem:[%s1375_s4] ss:$0 sm:$0xff] }
 0x228   :  { %644 = vst.msk [vmem:[%s1374_s6 + $0x18] sm:$0xff] %vm596_vm2, %v640_v26  ;;  %v648_v0 = vpack.c.bf16 %v640_v26, %v640_v26 }
 0x229   :  { %v133_v47 = vld [vmem:[#allocation2 + $0xb] sm:$0x1f]  ;;  %100 = vst.msk [vmem:[#allocation2 + $0x1c] sm:$0xf] %vm96_vm8, %v95_v63  ;;  %v359_v21 = vsel %vm231_vm11, %v351_v28, 0.0  ;;  %v360_v63 = vsel %vm231_vm11, %v352_v18, 0.0 }
 0x22a   :  { %917 = vmatmul.mubr.msk.bf16.vlgmr.msra.gmra.mrb[12].mxu1 %vm596_vm2, %v648_v0  ;;  %v137_v27 = vadd.f32 %v133_v47, %v1136_v54 }
 0x22c   :  { %142 = vst.msk [vmem:[#allocation2 + $0xb] sm:$0x1f] %vm140_vm9, %v137_v27 }
 0x22e   :  { %v134_v36 = vld [vmem:[#allocation2 + $0x13] sm:$0x1f] }
 0x22f   :  { %v138_v37 = vadd.f32 %v134_v36, %v1165_v5  ;;  %v373_v36 = vld [vmem:[#allocation2] sm:$0xff] }
 0x230   :  { %v135_v3 = vld [vmem:[#allocation2 + $0x1b] sm:$0x1f] }
 0x231   :  { %143 = vst.msk [vmem:[#allocation2 + $0x13] sm:$0x1f] %vm140_vm9, %v138_v37  ;;  %v139_v39 = vadd.f32 %v135_v3, %v1204_v32  ;;  %v384_v37 = vadd.f32 %v847_v19, %v373_v36 }
 0x233   :  { %v177_v40 = vld [vmem:[#allocation2 + $0x9] sm:$0x7f]  ;;  %144 = vst.msk [vmem:[#allocation2 + $0x1b] sm:$0x1f] %vm140_vm9, %v139_v39 }
 0x234   :  { %v181_v2 = vadd.f32 %v177_v40, %v1140_v55  ;;  %v240_v55 = vrot.slane %v1142_v57, 1  ;;  %v249_v57 = vsel %vm231_vm11, %v241_v11, 0.0 }
 0x236   :  { %186 = vst.msk [vmem:[#allocation2 + $0x9] sm:$0x7f] %vm184_vm10, %v181_v2 }
 0x238   :  { %v178_v54 = vld [vmem:[#allocation2 + $0x11] sm:$0x7f] }
 0x239   :  { %v182_v23 = vadd.f32 %v178_v54, %v1176_v15  ;;  %v248_v15 = vsel %vm231_vm11, %v240_v55, 0.0 }
 0x23a   :  { %v179_v50 = vld [vmem:[#allocation2 + $0x19] sm:$0x7f] }
 0x23b   :  { %187 = vst.msk [vmem:[#allocation2 + $0x11] sm:$0x7f] %vm184_vm10, %v182_v23  ;;  %v183_v5 = vadd.f32 %v179_v50, %v1208_v30 }
 0x23d   :  { %v198_v45 = vld [vmem:[#allocation2 + $0x8] sm:$0xff]  ;;  %188 = vst.msk [vmem:[#allocation2 + $0x19] sm:$0x7f] %vm184_vm10, %v183_v5 }
 0x23e   :  { %v202_v48 = vadd.f32 %v198_v45, %v1132_v53 }
 0x240   :  { %206 = vst.msk [vmem:[#allocation2 + $0x8] sm:$0xff] %vm29_vm0, %v202_v48 }
 0x242   :  { %v199_v32 = vld [vmem:[#allocation2 + $0x10] sm:$0xff] }
 0x243   :  { %v203_v49 = vadd.f32 %v199_v32, %v1161_v9 }
 0x244   :  { %v200_v30 = vld [vmem:[#allocation2 + $0x18] sm:$0xff] }
 0x245   :  { %207 = vst.msk [vmem:[#allocation2 + $0x10] sm:$0xff] %vm29_vm0, %v203_v49  ;;  %v204_v44 = vadd.f32 %v200_v30, %v1193_v29 }
 0x247   :  { %v252_v53 = vld [vmem:[#allocation2 + $0x8] sm:$0x7f]  ;;  %208 = vst.msk [vmem:[#allocation2 + $0x18] sm:$0xff] %vm29_vm0, %v204_v44 }
 0x248   :  { %v256_v38 = vadd.f32 %v252_v53, %v248_v15 }
 0x24a   :  { %260 = vst.msk [vmem:[#allocation2 + $0x8] sm:$0x7f] %vm184_vm10, %v256_v38 }
 0x24c   :  { %v253_v9 = vld [vmem:[#allocation2 + $0x10] sm:$0x7f] }
 0x24d   :  { %v257_v62 = vadd.f32 %v253_v9, %v249_v57 }
 0x24e   :  { %v254_v29 = vld [vmem:[#allocation2 + $0x18] sm:$0x7f] }
 0x24f   :  { %261 = vst.msk [vmem:[#allocation2 + $0x10] sm:$0x7f] %vm184_vm10, %v257_v62  ;;  %v258_v41 = vadd.f32 %v254_v29, %v250_v12 }
 0x251   :  { %v294_v4 = vld [vmem:[#allocation2 + $0x8] sm:$0x1f]  ;;  %262 = vst.msk [vmem:[#allocation2 + $0x18] sm:$0x7f] %vm184_vm10, %v258_v41 }
 0x252   :  { %v298_v8 = vadd.f32 %v294_v4, %v290_v34 }
 0x254   :  { %302 = vst.msk [vmem:[#allocation2 + $0x8] sm:$0x1f] %vm140_vm9, %v298_v8 }
 0x256   :  { %v295_v24 = vld [vmem:[#allocation2 + $0x10] sm:$0x1f] }
 0x257   :  { %v299_v56 = vadd.f32 %v295_v24, %v291_v7 }
 0x258   :  { %v296_v52 = vld [vmem:[#allocation2 + $0x18] sm:$0x1f] }
 0x259   :  { %303 = vst.msk [vmem:[#allocation2 + $0x10] sm:$0x1f] %vm140_vm9, %v299_v56  ;;  %v300_v42 = vadd.f32 %v296_v52, %v292_v14 }
 0x25b   :  { %v314_v59 = vld [vmem:[#allocation2 + $0x8] sm:$0xf]  ;;  %304 = vst.msk [vmem:[#allocation2 + $0x18] sm:$0x1f] %vm140_vm9, %v300_v42 }
 0x25c   :  { %v330_v6 = vadd.f32 %v322_v35, %v314_v59 }
 0x25e   :  { %334 = vst.msk [vmem:[#allocation2 + $0x8] sm:$0xf] %vm96_vm8, %v330_v6 }
 0x260   :  { %v315_v10 = vld [vmem:[#allocation2 + $0x10] sm:$0xf] }
 0x261   :  { %v331_v25 = vadd.f32 %v323_v31, %v315_v10 }
 0x262   :  { %v316_v61 = vld [vmem:[#allocation2 + $0x18] sm:$0xf] }
 0x263   :  { %335 = vst.msk [vmem:[#allocation2 + $0x10] sm:$0xf] %vm96_vm8, %v331_v25  ;;  %v332_v26 = vadd.f32 %v324_v43, %v316_v61 }
 0x265   :  { %v362_v13 = vld [vmem:[#allocation2 + $0x8] sm:$0x7]  ;;  %336 = vst.msk [vmem:[#allocation2 + $0x18] sm:$0xf] %vm96_vm8, %v332_v26 }
 0x266   :  { %v366_v0 = vadd.f32 %v362_v13, %v358_v60 }
 0x268   :  { %370 = vst.msk [vmem:[#allocation2 + $0x8] sm:$0x7] %vm75_vm7, %v366_v0 }
 0x26a   :  { %v363_v46 = vld [vmem:[#allocation2 + $0x10] sm:$0x7] }
 0x26b   :  { %v367_v33 = vadd.f32 %v363_v46, %v359_v21 }
 0x26c   :  { %v364_v47 = vld [vmem:[#allocation2 + $0x18] sm:$0x7] }
 0x26d   :  { %371 = vst.msk [vmem:[#allocation2 + $0x10] sm:$0x7] %vm75_vm7, %v367_v33  ;;  %v368_v27 = vadd.f32 %v364_v47, %v360_v63 }
 0x26f   :  { %372 = vst.msk [vmem:[#allocation2 + $0x18] sm:$0x7] %vm75_vm7, %v368_v27  ;;  %v374_v3 = vld [vmem:[#allocation2 + $0x8] sm:$0xff] }
 0x270   :  { %v385_v20 = vadd.f32 %v847_v19, %v374_v3 }
 0x274   :  { %v375_v23 = vld [vmem:[#allocation2 + $0x10] sm:$0xff] }
 0x275   :  { %v386_v48 = vadd.f32 %v847_v19, %v375_v23 }
 0x276   :  { %v376_v32 = vld [vmem:[#allocation2 + $0x18] sm:$0xff] }
 0x277   :  { %v387_v44 = vadd.f32 %v847_v19, %v376_v32 }
 0x2f1   :  { %v690_v39 = vpop.f32.mrb[8].mxu0 }
 0x2f2   :  { %v691_v40 = vadd.f32 %v690_v39, %v384_v37  ;;  %v900_v2 = vpop.f32.mrb[9].mxu0 }
 0x2f3   :  { %v693_v54 = vpop.f32.mrb[10].mxu0 }
 0x2f4   :  { %834 = vst.msk [vmem:[%s1376_s5] sm:$0xff] %vm29_vm0, %v691_v40  ;;  %v901_v22 = vpop.f32.mrb[11].mxu0 }
 0x2f5   :  { %v736_v50 = vpop.f32.mrb[8].mxu1 }
 0x2f6   :  { %v737_v5 = vadd.f32 %v736_v50, %v385_v20  ;;  %v906_v45 = vpop.f32.mrb[9].mxu1 }
 0x2f7   :  { %v739_v55 = vpop.f32.mrb[10].mxu1 }
 0x2f8   :  { %835 = vst.msk [vmem:[%s1376_s5 + $0x8] sm:$0xff] %vm29_vm0, %v737_v5  ;;  %v907_v49 = vpop.f32.mrb[11].mxu1 }
 0x2f9   :  { %v782_v15 = vpop.f32.mrb[12].mxu0 }
 0x2fa   :  { %v783_v11 = vadd.f32 %v782_v15, %v386_v48  ;;  %v912_v30 = vpop.f32.mrb[13].mxu0 }
 0x2fb   :  { %v785_v53 = vpop.f32.mrb[14].mxu0 }
 0x2fc   :  { %836 = vst.msk [vmem:[%s1376_s5 + $0x10] sm:$0xff] %vm29_vm0, %v783_v11  ;;  %v913_v38 = vpop.f32.mrb[15].mxu0 }
 0x2fd   :  { %v828_v57 = vpop.f32.mrb[12].mxu1 }
 0x2fe   :  { %v829_v51 = vadd.f32 %v828_v57, %v387_v44  ;;  %v918_v9 = vpop.f32.mrb[13].mxu1 }
 0x2ff   :  { %v831_v62 = vpop.f32.mrb[14].mxu1 }
 0x300   :  { %837 = vst.msk [vmem:[%s1376_s5 + $0x18] sm:$0xff] %vm29_vm0, %v829_v51  ;;  %v919_v1 = vpop.f32.mrb[15].mxu1 }

// kernel: cswin_block_forward.11
= control target key start
LH: loop header
LB: loop body
LE: loop exit
PB: predicated region body
PF: predicated region fallthrough
CT: control target
= control target key end

     0   :  { %vm47_vm0 = vcmask 261120   ;;  %vm111_vm1 = vcmask 64512   ;;  %s209_s1 = inlined_call_operand.vmem [shape: bf16[32,8], index: 1, kind: input, shape index: {}]   ;;  %s210_s0 = inlined_call_operand.vmem [shape: f32[32,32], index: 0, kind: input, shape index: {}]   ;;  %s211_s2 = inlined_call_operand.vmem [shape: f32[1,8], index: 2, kind: input, shape index: {}]   ;;  %s212_s3 = inlined_call_operand.vmem [shape: f32[32,8], index: 3, kind: input, shape index: {}]   ;;  %s213_s4 = inlined_call_operand.vmem [shape: f32[32,8], index: 4, kind: output, shape index: {}]  }
   0x1   :  { %v137_v0 = vld [vmem:[%s209_s1] sm:$0xff]   ;;  %v138_v1 = vld [vmem:[%s209_s1 + $0x8] sm:$0xff]   ;;  %v20_v5 = vld [vmem:[%s210_s0 + $0x10] sm:$0xff] }
   0x2   :  { %129 = vmatprep.subr.bf16.mxu0 %v137_v0  ;;  %v18_v2 = vld [vmem:[%s210_s0] sm:$0xff]  ;;  %v19_v3 = vld [vmem:[%s210_s0 + $0x8] sm:$0xff]  ;;  %v21_v6 = vld [vmem:[%s210_s0 + $0x18] sm:$0xff] }
   0x3   :  { %130 = vmatpush3.bf16.msra.mxu0 %v137_v0  ;;  %v22_v4 = vpack.c.bf16 %v19_v3, %v18_v2  ;;  %v23_v7 = vpack.c.bf16 %v21_v6, %v20_v5  ;;  %v120_v8 = vld [vmem:[%s211_s2] ss:$0 sm:$0xff]  ;;  %v105_v10 = vld [vmem:[%s212_s3 + $0x10] sm:$0xff]  ;;  %v106_v16 = vld [vmem:[%s212_s3 + $0x18] sm:$0xff] }
   0x4   :  { %131 = vmatprep.subr.bf16.mxu0 %v138_v1  ;;  %v103_v13 = vld [vmem:[%s212_s3] sm:$0xff]  ;;  %v104_v20 = vld [vmem:[%s212_s3 + $0x8] sm:$0xff] }
   0x5   :  { %133 = vmatprep.mubr.msk.bf16.mxu0 %vm47_vm0, %v22_v4 }
   0x7   :  { %132 = vmatpush3.bf16.msra.mxu0 %v138_v1 }
   0xa   :  { %134 = vmatmul.mubr.msk.bf16.vlgmr.msra.gmra.mrb[0].mxu0 %vm47_vm0, %v23_v7 }
  0xdd   :  { %v135_v9 = vpop.f32.mrb[0].mxu0 }
  0xde   :  { %v97_v11 = vadd.f32 %v135_v9, %v120_v8  ;;  %v88_v12 = vpop.f32.mrb[1].mxu0 }
  0xdf   :  { %v89_v14 = vadd.f32 %v120_v8, %v88_v12  ;;  %v136_v15 = vpop.f32.mrb[2].mxu0 }
  0xe0   :  { %v109_v17 = vadd.f32 %v105_v10, %v97_v11  ;;  %v100_v18 = vadd.f32 %v136_v15, %v120_v8  ;;  %v91_v19 = vpop.f32.mrb[3].mxu0 }
  0xe1   :  { %v107_v21 = vadd.f32 %v103_v13, %v89_v14  ;;  %v92_v22 = vadd.f32 %v120_v8, %v91_v19 }
  0xe2   :  { %114 = vst.msk [vmem:[%s213_s4 + $0x10] sm:$0xff] %vm111_vm1, %v109_v17  ;;  %v110_v23 = vadd.f32 %v106_v16, %v100_v18 }
  0xe3   :  { %112 = vst.msk [vmem:[%s213_s4] sm:$0xff] %vm111_vm1, %v107_v21  ;;  %v108_v24 = vadd.f32 %v104_v20, %v92_v22 }
  0xe4   :  { %115 = vst.msk [vmem:[%s213_s4 + $0x18] sm:$0xff] %vm111_vm1, %v110_v23 }
  0xe5   :  { %113 = vst.msk [vmem:[%s213_s4 + $0x8] sm:$0xff] %vm111_vm1, %v108_v24 }

// kernel: cswin_block_forward.10
= control target key start
LH: loop header
LB: loop body
LE: loop exit
PB: predicated region body
PF: predicated region fallthrough
CT: control target
= control target key end

     0   :  { %vm25_vm0 = vcmask 64512   ;;  %vm117_vm1 = vcmask 1043456   ;;  %vm190_vm2 = vcmask 261120   ;;  %s306_s0 = inlined_call_operand.vmem [shape: f32[32,8], index: 0, kind: input, shape index: {}]   ;;  %s307_s3 = inlined_call_operand.vmem [shape: bf16[8,32], index: 3, kind: input, shape index: {}]   ;;  %s308_s1 = inlined_call_operand.vmem [shape: f32[1,8], index: 1, kind: input, shape index: {}]   ;;  %s309_s2 = inlined_call_operand.vmem [shape: f32[1,8], index: 2, kind: input, shape index: {}]   ;;  %s310_s4 = inlined_call_operand.vmem [shape: f32[1,32], index: 4, kind: input, shape index: {}]   ;;  %s311_s5 = inlined_call_operand.vmem [shape: f32[32,32], index: 5, kind: output, shape index: {}]  }
   0x1   :  { %v21_v0 = vld [vmem:[%s306_s0] sm:$0xff]  ;;  %v23_v1 = vld [vmem:[%s306_s0 + $0x10] sm:$0xff]  ;;  %v22_v2 = vld [vmem:[%s306_s0 + $0x8] sm:$0xff] }
   0x2   :  { %v26_v3 = vsel %vm25_vm0, %v21_v0, 0.0  ;;  %v32_v4 = vsel %vm25_vm0, %v23_v1, 0.0  ;;  %v24_v5 = vld [vmem:[%s306_s0 + $0x18] sm:$0xff]  ;;  %v29_v6 = vsel %vm25_vm0, %v22_v2, 0.0  ;;  %v103_v28 = vld [vmem:[%s307_s3] sm:$0xf] }
   0x3   :  { %27 = vadd.xlane.f32.xlu0 %v26_v3  ;;  %33 = vadd.xlane.f32.xlu1 %v32_v4  ;;  %v35_v7 = vsel %vm25_vm0, %v24_v5, 0.0  ;;  %v119_v29 = vsel %vm117_vm1, %v103_v28, 0  ;;  %v199_v44 = vld [vmem:[%s308_s1] ss:$0 sm:$0xff] }
   0x4   :  { %213 = vmatprep.subr.msk.bf16.mxu0 %vm117_vm1, %v103_v28  ;;  %v200_v50 = vld [vmem:[%s309_s2] ss:$0 sm:$0xff] }
   0x5   :  { %208 = vmatpush3.bf16.msra.mxu0 %v119_v29  ;;  %v201_v62 = vld [vmem:[%s310_s4] ss:$0 sm:$0xff] }
   0x7   :  { %30 = vadd.xlane.f32.xlu0 %v29_v6  ;;  %36 = vadd.xlane.f32.xlu1 %v35_v7 }
  0x90   :  { %v28_v8 = vpop.xlane.xlu0 %27  ;;  %v34_v9 = vpop.xlane.xlu1 %33 }
  0x91   :  { %v39_v10 = vmul.f32 0.125, %v28_v8  ;;  %v41_v11 = vmul.f32 0.125, %v34_v9 }
  0x93   :  { %v43_v12 = vsub.f32 %v21_v0, %v39_v10  ;;  %v45_v13 = vsub.f32 %v23_v1, %v41_v11 }
  0x94   :  { %v31_v14 = vpop.xlane.xlu0 %30  ;;  %v37_v15 = vpop.xlane.xlu1 %36 }
  0x95   :  { %v40_v16 = vmul.f32 0.125, %v31_v14  ;;  %v42_v17 = vmul.f32 0.125, %v37_v15  ;;  %v47_v18 = vmul.f32 %v43_v12, %v43_v12  ;;  %v49_v19 = vmul.f32 %v45_v13, %v45_v13 }
  0x97   :  { %v44_v20 = vsub.f32 %v22_v2, %v40_v16  ;;  %v46_v21 = vsub.f32 %v24_v5, %v42_v17  ;;  %v51_v22 = vsel %vm25_vm0, %v47_v18, 0.0  ;;  %v57_v23 = vsel %vm25_vm0, %v49_v19, 0.0 }
  0x98   :  { %52 = vadd.xlane.f32.xlu0 %v51_v22 }
  0x99   :  { %v48_v24 = vmul.f32 %v44_v20, %v44_v20  ;;  %v50_v25 = vmul.f32 %v46_v21, %v46_v21 }
  0x9b   :  { %v54_v26 = vsel %vm25_vm0, %v48_v24, 0.0  ;;  %v60_v27 = vsel %vm25_vm0, %v50_v25, 0.0 }
  0x9c   :  { %58 = vadd.xlane.f32.xlu0 %v57_v23  ;;  %55 = vadd.xlane.f32.xlu1 %v54_v26 }
  0xa0   :  { %61 = vadd.xlane.f32.xlu1 %v60_v27 }
 0x125   :  { %v53_v30 = vpop.xlane.xlu0 %52 }
 0x126   :  { %v63_v31 = vmul.f32 0.125, %v53_v30 }
 0x128   :  { %v67_v32 = vadd.f32 1e-05, %v63_v31 }
 0x129   :  { %v56_v33 = vpop.xlane.xlu1 %55  ;;  %v59_v34 = vpop.xlane.xlu0 %58 }
 0x12a   :  { %214 = vrsqrt.f32 %v67_v32  ;;  %v64_v35 = vmul.f32 0.125, %v56_v33  ;;  %v65_v36 = vmul.f32 0.125, %v59_v34 }
 0x12c   :  { %v68_v37 = vadd.f32 1e-05, %v64_v35  ;;  %v69_v38 = vadd.f32 1e-05, %v65_v36 }
 0x12d   :  { %v62_v39 = vpop.xlane.xlu1 %61 }
 0x12e   :  { %216 = vrsqrt.f32 %v68_v37  ;;  %v66_v40 = vmul.f32 0.125, %v62_v39 }
 0x12f   :  { %218 = vrsqrt.f32 %v69_v38 }
 0x130   :  { %v70_v41 = vadd.f32 1e-05, %v66_v40 }
 0x132   :  { %220 = vrsqrt.f32 %v70_v41 }
 0x134   :  { %v215_v42 = vpop.eup %214 }
 0x135   :  { %v75_v43 = vmul.f32 %v215_v42, %v43_v12 }
 0x137   :  { %v86_v48 = vmul.f32 %v199_v44, %v75_v43 }
 0x138   :  { %v217_v45 = vpop.eup %216 }
 0x139   :  { %v219_v46 = vpop.eup %218  ;;  %v76_v47 = vmul.f32 %v217_v45, %v44_v20  ;;  %v97_v54 = vadd.f32 %v200_v50, %v86_v48 }
 0x13a   :  { %v77_v49 = vmul.f32 %v219_v46, %v45_v13 }
 0x13b   :  { %v87_v51 = vmul.f32 %v199_v44, %v76_v47 }
 0x13c   :  { %v221_v52 = vpop.eup %220  ;;  %v88_v56 = vmul.f32 %v199_v44, %v77_v49 }
 0x13d   :  { %v78_v53 = vmul.f32 %v221_v52, %v46_v21  ;;  %v98_v55 = vadd.f32 %v200_v50, %v87_v51 }
 0x13e   :  { %v99_v59 = vadd.f32 %v200_v50, %v88_v56 }
 0x13f   :  { %v101_v57 = vpack.c.bf16 %v98_v55, %v97_v54  ;;  %v89_v58 = vmul.f32 %v199_v44, %v78_v53 }
 0x141   :  { %209 = vmatprep.mubr.msk.bf16.mxu0 %vm25_vm0, %v101_v57  ;;  %v100_v60 = vadd.f32 %v200_v50, %v89_v58 }
 0x143   :  { %v102_v61 = vpack.c.bf16 %v100_v60, %v99_v59 }
 0x145   :  { %210 = vmatmul.mubr.msk.bf16.vlgmr.msra.gmra.mrb[0].mxu0 %vm25_vm0, %v102_v61 }
 0x218   :  { %v211_v63 = vpop.f32.mrb[0].mxu0 }
 0x219   :  { %v164_v0 = vadd.f32 %v211_v63, %v201_v62  ;;  %v155_v1 = vpop.f32.mrb[1].mxu0 }
 0x21a   :  { %v156_v2 = vadd.f32 %v201_v62, %v155_v1  ;;  %v212_v3 = vpop.f32.mrb[2].mxu0 }
 0x21b   :  { %v176_v4 = vmul.f32 0.70710677, %v164_v0  ;;  %v167_v5 = vadd.f32 %v212_v3, %v201_v62  ;;  %v158_v6 = vpop.f32.mrb[3].mxu0  ;;  %v172_v13 = vmul.f32 0.5, %v164_v0 }
 0x21c   :  { %v174_v7 = vmul.f32 0.70710677, %v156_v2  ;;  %v159_v8 = vadd.f32 %v201_v62, %v158_v6  ;;  %v170_v16 = vmul.f32 0.5, %v156_v2 }
 0x21d   :  { %222 = verf.f32 %v176_v4  ;;  %v177_v9 = vmul.f32 0.70710677, %v167_v5  ;;  %v173_v20 = vmul.f32 0.5, %v167_v5 }
 0x21e   :  { %224 = verf.f32 %v174_v7  ;;  %v175_v10 = vmul.f32 0.70710677, %v159_v8  ;;  %v171_v23 = vmul.f32 0.5, %v159_v8 }
 0x21f   :  { %226 = verf.f32 %v177_v9 }
 0x220   :  { %228 = verf.f32 %v175_v10 }
 0x227   :  { %v223_v11 = vpop.eup %222 }
 0x228   :  { %v225_v12 = vpop.eup %224  ;;  %v184_v14 = vadd.f32 1.0, %v223_v11 }
 0x229   :  { %v227_v15 = vpop.eup %226  ;;  %v182_v17 = vadd.f32 1.0, %v225_v12 }
 0x22a   :  { %v229_v18 = vpop.eup %228  ;;  %v188_v19 = vmul.f32 %v184_v14, %v172_v13  ;;  %v185_v21 = vadd.f32 1.0, %v227_v15 }
 0x22b   :  { %v186_v22 = vmul.f32 %v182_v17, %v170_v16  ;;  %v183_v24 = vadd.f32 1.0, %v229_v18 }
 0x22c   :  { %193 = vst.msk [vmem:[%s311_s5 + $0x10] sm:$0xff] %vm190_vm2, %v188_v19  ;;  %v189_v25 = vmul.f32 %v185_v21, %v173_v20 }
 0x22d   :  { %191 = vst.msk [vmem:[%s311_s5] sm:$0xff] %vm190_vm2, %v186_v22  ;;  %v187_v26 = vmul.f32 %v183_v24, %v171_v23 }
 0x22e   :  { %194 = vst.msk [vmem:[%s311_s5 + $0x18] sm:$0xff] %vm190_vm2, %v189_v25 }
 0x22f   :  { %192 = vst.msk [vmem:[%s311_s5 + $0x8] sm:$0xff] %vm190_vm2, %v187_v26 }

</bundles_post_ra>
